<compile_context>
chip_gen: v7x
topology: tpu7x:2x2x1
jax: 0.10.0
libtpu: 0.0.40
codegen_flags: <defaults>
</compile_context>

<pallas_src>
import jax
import jax.numpy as jnp
from jax.experimental import pallas as pl
from jax.experimental.pallas import tpu as pltpu

# ---------------- configuration -------------------------------------------
DIST_BIN_SIZE = 50
IGNORE_BIN = DIST_BIN_SIZE            # 50
NUM_BINS = DIST_BIN_SIZE + 1          # 51 embedding rows
DIST_EMB = 8                          # dist_emb_size
GRAPH = 14                            # graph size (forced by the hard-coded 8 * 196)
GG = GRAPH * GRAPH                    # 196 matrix cells
P_PAD = 256                           # cells padded to 2 full lane tiles (multiple of 128)
HIDDEN = 32                           # hidden_size for the test


# ---------------- Pallas kernel --------------------------------------------
def densematemb_kernel(dist_ref, mext_ref, rsum_ref, u_ref, bias_ref, out_ref):
    # dist_ref: [TB, P_PAD] f32   flattened (i*14+j) distance matrix, zero-padded lanes
    # mext_ref: [TB, GRAPH] f32   extended point masks (two 1.0 columns prepended)
    # rsum_ref: [GRAPH, P_PAD] bf16   0/1 incidence: column p has 1s at rows i(p) and j(p)
    # u_ref:    [NUM_BINS, P_PAD, H] bf16   folded (emb_table x mlp.W) block table
    # bias_ref: [1, H] f32
    # out_ref:  [TB, H] f32
    d = dist_ref[...]

    # --- torch.bucketize(d, [0, 50, ..., 2400], right=True) == #boundaries <= d ---
    idx = jnp.zeros_like(d)
    for kb in range(DIST_BIN_SIZE - 1):                     # 49 boundaries, VPU-cheap
        idx = idx + (d >= jnp.float32(50.0 * kb)).astype(jnp.float32)

    # --- dist_mat_mask = mask[i(p)] OR mask[j(p)], built on the MXU (no lane shuffles) ---
    mb = (mext_ref[...] != 0.0).astype(jnp.bfloat16)        # binarize (exact in bf16)
    msum = jnp.dot(mb, rsum_ref[...], preferred_element_type=jnp.float32)   # [TB, P_PAD]
    idx = jnp.where(msum > 0.0, jnp.float32(IGNORE_BIN), idx)

    # --- fused embedding gather + Linear:  y[b] = sum_k (idx[b,:] == k) @ U[k] ---
    tb = d.shape[0]
    h = out_ref.shape[-1]
    acc = jnp.zeros((tb, h), dtype=jnp.float32)
    for k in range(NUM_BINS):
        onehot_k = (idx == jnp.float32(k)).astype(jnp.bfloat16)            # [TB, P_PAD]
        acc = acc + jnp.dot(onehot_k, u_ref[k], preferred_element_type=jnp.float32)

    # --- assumed mlp(): Linear bias + ReLU ---
    out_ref[...] = jnp.maximum(acc + bias_ref[...], 0.0)


# ---------------- wrapper ----------------------------------------------------
def densematemb_forward(point_dist_mat, point_masks, params, *, max_tb=128):
    emb_table, w, bias = params           # [51, 8], [1568, H] (stored [in, out]), [H]
    B, G, G2 = point_dist_mat.shape
    assert G == G2 == GRAPH and point_masks.shape == (B, G - 2)
    H = w.shape[1]

    # --- parameter folding (input-independent; done once per call here) ---
    w3 = w.reshape(GG, DIST_EMB, H)
    u = jnp.einsum("ke,peh->kph", emb_table, w3)                     # [51, 196, H]
    u = jnp.pad(u, ((0, 0), (0, P_PAD - GG), (0, 0))).astype(jnp.bfloat16)   # zero pad cells
    p = jnp.arange(P_PAD)
    i_of_p = jnp.where(p < GG, p // GRAPH, GRAPH)                    # GRAPH = sentinel
    j_of_p = jnp.where(p < GG, p % GRAPH, GRAPH)
    rows = jnp.arange(GRAPH)[:, None]
    rsum = ((rows == i_of_p[None, :]).astype(jnp.float32)
            + (rows == j_of_p[None, :]).astype(jnp.float32)).astype(jnp.bfloat16)
    bias2d = bias.reshape(1, H).astype(jnp.float32)

    # --- input plumbing: F.pad(masks,(2,0),1.0), flatten dist, pad batch to TB multiple ---
    mext = jnp.pad(point_masks.astype(jnp.float32), ((0, 0), (2, 0)), constant_values=1.0)
    dist_flat = point_dist_mat.reshape(B, GG).astype(jnp.float32)
    tb = min(max_tb, ((B + 7) // 8) * 8)
    b_pad = ((B + tb - 1) // tb) * tb
    dist_flat = jnp.pad(dist_flat, ((0, b_pad - B), (0, P_PAD - GG)))
    mext = jnp.pad(mext, ((0, b_pad - B), (0, 0)), constant_values=1.0)

    y = pl.pallas_call(
        densematemb_kernel,
        out_shape=jax.ShapeDtypeStruct((b_pad, H), jnp.float32),
        grid=(b_pad // tb,),
        in_specs=[
            pl.BlockSpec((tb, P_PAD), lambda i: (i, 0)),             # dist tile (pipelined)
            pl.BlockSpec((tb, GRAPH), lambda i: (i, 0)),             # mask tile (pipelined)
            pl.BlockSpec((GRAPH, P_PAD), lambda i: (0, 0)),          # resident params
            pl.BlockSpec((NUM_BINS, P_PAD, H), lambda i: (0, 0, 0)),
            pl.BlockSpec((1, H), lambda i: (0, 0)),
        ],
        out_specs=pl.BlockSpec((tb, H), lambda i: (i, 0)),
        compiler_params=pltpu.CompilerParams(
            dimension_semantics=("parallel",),
            vmem_limit_bytes=32 * 1024 * 1024),
    )(dist_flat, mext, rsum, u, bias2d)

    y = y[:B]                                                        # drop batch padding
    # .view(B,1,H).repeat(1, G-2, 1) -- pure broadcast, done in the wrapper
    return jnp.broadcast_to(y[:, None, :], (B, G - 2, H))


# ---------------- pure-JAX reference (mirrors the torch module) --------------
def reference(point_dist_mat, point_masks, params):
    emb_table, w, bias = params
    B, G, _ = point_dist_mat.shape
    H = w.shape[1]
    boundaries = jnp.arange(DIST_BIN_SIZE - 1, dtype=jnp.float32) * 50.0
    mext = jnp.pad(point_masks.astype(jnp.float32), ((0, 0), (2, 0)), constant_values=1.0)
    cat = jnp.searchsorted(boundaries, point_dist_mat, side="right")   # bucketize right=True
    mask = jnp.logical_or(mext[:, None, :] != 0, mext[:, :, None] != 0)
    cat = jnp.where(mask, IGNORE_BIN, cat)
    emb = emb_table[cat]                                               # [B, G, G, E]
    feat = emb.reshape(B, G * G * DIST_EMB)
    y = jnp.maximum(feat @ w + bias, 0.0)                              # assumed mlp()
    return jnp.broadcast_to(y[:, None, :], (B, G - 2, H))


# ---------------- deterministic params ---------------------------------------
def _xavier_uniform(key, shape):
    fan_in, fan_out = shape
    bound = (6.0 / (fan_in + fan_out)) ** 0.5
    return jax.random.uniform(key, shape, jnp.float32, -bound, bound)


# ---------------- main --------------------------------------------------------
if __name__ == "__main__":
    key = jax.random.PRNGKey(0)
    kd, km, kt, kw, kb = jax.random.split(key, 5)

    B, H = 2, HIDDEN
    point_dist_mat = jax.random.uniform(kd, (B, GRAPH, GRAPH), jnp.float32, 0.0, 3000.0)
    point_masks = jax.random.bernoulli(km, 0.25, (B, GRAPH - 2)).astype(jnp.float32)

    emb_table = _xavier_uniform(kt, (NUM_BINS, DIST_EMB))
    w = _xavier_uniform(kw, (GG * DIST_EMB, H))        # y = x @ w + b  (transpose of torch Linear)
    bias = jax.random.uniform(kb, (H,), jnp.float32, -0.05, 0.05)
    params = (emb_table, w, bias)

    out = densematemb_forward(point_dist_mat, point_masks, params)
    out = jax.block_until_ready(out)

    ref = reference(point_dist_mat, point_masks, params)
    assert out.shape == (B, GRAPH - 2, H), out.shape
    # bf16 folded-table operands with f32 accumulation: typical error ~1e-3
    assert jnp.allclose(out, ref, rtol=2e-2, atol=2e-2), "mismatch vs JAX reference"

    print("KERNEL_OK")
</pallas_src>

<mosaic_0001>
module attributes {stable_mosaic.version = 11 : i64} {
  func.func @densematemb_kernel(%arg0: i32, %arg1: memref<8x256xf32, #tpu.memory_space<vmem>>, %arg2: memref<8x14xf32, #tpu.memory_space<vmem>>, %arg3: memref<14x256xbf16, #tpu.memory_space<vmem>>, %arg4: memref<51x256x32xbf16, #tpu.memory_space<vmem>>, %arg5: memref<1x32xf32, #tpu.memory_space<vmem>>, %arg6: memref<8x32xf32, #tpu.memory_space<vmem>>) attributes {dimension_semantics = [#tpu.dimension_semantics<parallel>], iteration_bounds = array<i64: 1>, scalar_prefetch = 0 : i64, scratch_operands = 0 : i64, tpu.core_type = #tpu.core_type<tc>, window_params = [{transform_indices = @transform_0, window_bounds = array<i64: 8, 256>}, {transform_indices = @transform_1, window_bounds = array<i64: 8, 14>}, {pipeline_mode = #tpu.pipeline_mode<synchronous>, transform_indices = @transform_2, window_bounds = array<i64: 14, 256>}, {pipeline_mode = #tpu.pipeline_mode<synchronous>, transform_indices = @transform_3, window_bounds = array<i64: 51, 256, 32>}, {pipeline_mode = #tpu.pipeline_mode<synchronous>, transform_indices = @transform_4, window_bounds = array<i64: 1, 32>}, {transform_indices = @transform_5, window_bounds = array<i64: 8, 32>}]} {
    %c0 = arith.constant 0 : index
    %c0_0 = arith.constant 0 : index
    %0 = vector.load %arg1[%c0, %c0_0] : memref<8x256xf32, #tpu.memory_space<vmem>>, vector<8x256xf32>
    %cst = arith.constant 0.000000e+00 : f32
    %1 = vector.broadcast %cst : f32 to vector<8x256xf32>
    %cst_1 = arith.constant 0.000000e+00 : f32
    %2 = vector.broadcast %cst_1 : f32 to vector<8x256xf32>
    %3 = arith.cmpf oge, %0, %2 : vector<8x256xf32>
    %4 = arith.extui %3 : vector<8x256xi1> to vector<8x256xi32>
    %5 = arith.sitofp %4 : vector<8x256xi32> to vector<8x256xf32>
    %6 = arith.addf %1, %5 : vector<8x256xf32>
    %cst_2 = arith.constant 5.000000e+01 : f32
    %7 = vector.broadcast %cst_2 : f32 to vector<8x256xf32>
    %8 = arith.cmpf oge, %0, %7 : vector<8x256xf32>
    %9 = arith.extui %8 : vector<8x256xi1> to vector<8x256xi32>
    %10 = arith.sitofp %9 : vector<8x256xi32> to vector<8x256xf32>
    %11 = arith.addf %6, %10 : vector<8x256xf32>
    %cst_3 = arith.constant 1.000000e+02 : f32
    %12 = vector.broadcast %cst_3 : f32 to vector<8x256xf32>
    %13 = arith.cmpf oge, %0, %12 : vector<8x256xf32>
    %14 = arith.extui %13 : vector<8x256xi1> to vector<8x256xi32>
    %15 = arith.sitofp %14 : vector<8x256xi32> to vector<8x256xf32>
    %16 = arith.addf %11, %15 : vector<8x256xf32>
    %cst_4 = arith.constant 1.500000e+02 : f32
    %17 = vector.broadcast %cst_4 : f32 to vector<8x256xf32>
    %18 = arith.cmpf oge, %0, %17 : vector<8x256xf32>
    %19 = arith.extui %18 : vector<8x256xi1> to vector<8x256xi32>
    %20 = arith.sitofp %19 : vector<8x256xi32> to vector<8x256xf32>
    %21 = arith.addf %16, %20 : vector<8x256xf32>
    %cst_5 = arith.constant 2.000000e+02 : f32
    %22 = vector.broadcast %cst_5 : f32 to vector<8x256xf32>
    %23 = arith.cmpf oge, %0, %22 : vector<8x256xf32>
    %24 = arith.extui %23 : vector<8x256xi1> to vector<8x256xi32>
    %25 = arith.sitofp %24 : vector<8x256xi32> to vector<8x256xf32>
    %26 = arith.addf %21, %25 : vector<8x256xf32>
    %cst_6 = arith.constant 2.500000e+02 : f32
    %27 = vector.broadcast %cst_6 : f32 to vector<8x256xf32>
    %28 = arith.cmpf oge, %0, %27 : vector<8x256xf32>
    %29 = arith.extui %28 : vector<8x256xi1> to vector<8x256xi32>
    %30 = arith.sitofp %29 : vector<8x256xi32> to vector<8x256xf32>
    %31 = arith.addf %26, %30 : vector<8x256xf32>
    %cst_7 = arith.constant 3.000000e+02 : f32
    %32 = vector.broadcast %cst_7 : f32 to vector<8x256xf32>
    %33 = arith.cmpf oge, %0, %32 : vector<8x256xf32>
    %34 = arith.extui %33 : vector<8x256xi1> to vector<8x256xi32>
    %35 = arith.sitofp %34 : vector<8x256xi32> to vector<8x256xf32>
    %36 = arith.addf %31, %35 : vector<8x256xf32>
    %cst_8 = arith.constant 3.500000e+02 : f32
    %37 = vector.broadcast %cst_8 : f32 to vector<8x256xf32>
    %38 = arith.cmpf oge, %0, %37 : vector<8x256xf32>
    %39 = arith.extui %38 : vector<8x256xi1> to vector<8x256xi32>
    %40 = arith.sitofp %39 : vector<8x256xi32> to vector<8x256xf32>
    %41 = arith.addf %36, %40 : vector<8x256xf32>
    %cst_9 = arith.constant 4.000000e+02 : f32
    %42 = vector.broadcast %cst_9 : f32 to vector<8x256xf32>
    %43 = arith.cmpf oge, %0, %42 : vector<8x256xf32>
    %44 = arith.extui %43 : vector<8x256xi1> to vector<8x256xi32>
    %45 = arith.sitofp %44 : vector<8x256xi32> to vector<8x256xf32>
    %46 = arith.addf %41, %45 : vector<8x256xf32>
    %cst_10 = arith.constant 4.500000e+02 : f32
    %47 = vector.broadcast %cst_10 : f32 to vector<8x256xf32>
    %48 = arith.cmpf oge, %0, %47 : vector<8x256xf32>
    %49 = arith.extui %48 : vector<8x256xi1> to vector<8x256xi32>
    %50 = arith.sitofp %49 : vector<8x256xi32> to vector<8x256xf32>
    %51 = arith.addf %46, %50 : vector<8x256xf32>
    %cst_11 = arith.constant 5.000000e+02 : f32
    %52 = vector.broadcast %cst_11 : f32 to vector<8x256xf32>
    %53 = arith.cmpf oge, %0, %52 : vector<8x256xf32>
    %54 = arith.extui %53 : vector<8x256xi1> to vector<8x256xi32>
    %55 = arith.sitofp %54 : vector<8x256xi32> to vector<8x256xf32>
    %56 = arith.addf %51, %55 : vector<8x256xf32>
    %cst_12 = arith.constant 5.500000e+02 : f32
    %57 = vector.broadcast %cst_12 : f32 to vector<8x256xf32>
    %58 = arith.cmpf oge, %0, %57 : vector<8x256xf32>
    %59 = arith.extui %58 : vector<8x256xi1> to vector<8x256xi32>
    %60 = arith.sitofp %59 : vector<8x256xi32> to vector<8x256xf32>
    %61 = arith.addf %56, %60 : vector<8x256xf32>
    %cst_13 = arith.constant 6.000000e+02 : f32
    %62 = vector.broadcast %cst_13 : f32 to vector<8x256xf32>
    %63 = arith.cmpf oge, %0, %62 : vector<8x256xf32>
    %64 = arith.extui %63 : vector<8x256xi1> to vector<8x256xi32>
    %65 = arith.sitofp %64 : vector<8x256xi32> to vector<8x256xf32>
    %66 = arith.addf %61, %65 : vector<8x256xf32>
    %cst_14 = arith.constant 6.500000e+02 : f32
    %67 = vector.broadcast %cst_14 : f32 to vector<8x256xf32>
    %68 = arith.cmpf oge, %0, %67 : vector<8x256xf32>
    %69 = arith.extui %68 : vector<8x256xi1> to vector<8x256xi32>
    %70 = arith.sitofp %69 : vector<8x256xi32> to vector<8x256xf32>
    %71 = arith.addf %66, %70 : vector<8x256xf32>
    %cst_15 = arith.constant 7.000000e+02 : f32
    %72 = vector.broadcast %cst_15 : f32 to vector<8x256xf32>
    %73 = arith.cmpf oge, %0, %72 : vector<8x256xf32>
    %74 = arith.extui %73 : vector<8x256xi1> to vector<8x256xi32>
    %75 = arith.sitofp %74 : vector<8x256xi32> to vector<8x256xf32>
    %76 = arith.addf %71, %75 : vector<8x256xf32>
    %cst_16 = arith.constant 7.500000e+02 : f32
    %77 = vector.broadcast %cst_16 : f32 to vector<8x256xf32>
    %78 = arith.cmpf oge, %0, %77 : vector<8x256xf32>
    %79 = arith.extui %78 : vector<8x256xi1> to vector<8x256xi32>
    %80 = arith.sitofp %79 : vector<8x256xi32> to vector<8x256xf32>
    %81 = arith.addf %76, %80 : vector<8x256xf32>
    %cst_17 = arith.constant 8.000000e+02 : f32
    %82 = vector.broadcast %cst_17 : f32 to vector<8x256xf32>
    %83 = arith.cmpf oge, %0, %82 : vector<8x256xf32>
    %84 = arith.extui %83 : vector<8x256xi1> to vector<8x256xi32>
    %85 = arith.sitofp %84 : vector<8x256xi32> to vector<8x256xf32>
    %86 = arith.addf %81, %85 : vector<8x256xf32>
    %cst_18 = arith.constant 8.500000e+02 : f32
    %87 = vector.broadcast %cst_18 : f32 to vector<8x256xf32>
    %88 = arith.cmpf oge, %0, %87 : vector<8x256xf32>
    %89 = arith.extui %88 : vector<8x256xi1> to vector<8x256xi32>
    %90 = arith.sitofp %89 : vector<8x256xi32> to vector<8x256xf32>
    %91 = arith.addf %86, %90 : vector<8x256xf32>
    %cst_19 = arith.constant 9.000000e+02 : f32
    %92 = vector.broadcast %cst_19 : f32 to vector<8x256xf32>
    %93 = arith.cmpf oge, %0, %92 : vector<8x256xf32>
    %94 = arith.extui %93 : vector<8x256xi1> to vector<8x256xi32>
    %95 = arith.sitofp %94 : vector<8x256xi32> to vector<8x256xf32>
    %96 = arith.addf %91, %95 : vector<8x256xf32>
    %cst_20 = arith.constant 9.500000e+02 : f32
    %97 = vector.broadcast %cst_20 : f32 to vector<8x256xf32>
    %98 = arith.cmpf oge, %0, %97 : vector<8x256xf32>
    %99 = arith.extui %98 : vector<8x256xi1> to vector<8x256xi32>
    %100 = arith.sitofp %99 : vector<8x256xi32> to vector<8x256xf32>
    %101 = arith.addf %96, %100 : vector<8x256xf32>
    %cst_21 = arith.constant 1.000000e+03 : f32
    %102 = vector.broadcast %cst_21 : f32 to vector<8x256xf32>
    %103 = arith.cmpf oge, %0, %102 : vector<8x256xf32>
    %104 = arith.extui %103 : vector<8x256xi1> to vector<8x256xi32>
    %105 = arith.sitofp %104 : vector<8x256xi32> to vector<8x256xf32>
    %106 = arith.addf %101, %105 : vector<8x256xf32>
    %cst_22 = arith.constant 1.050000e+03 : f32
    %107 = vector.broadcast %cst_22 : f32 to vector<8x256xf32>
    %108 = arith.cmpf oge, %0, %107 : vector<8x256xf32>
    %109 = arith.extui %108 : vector<8x256xi1> to vector<8x256xi32>
    %110 = arith.sitofp %109 : vector<8x256xi32> to vector<8x256xf32>
    %111 = arith.addf %106, %110 : vector<8x256xf32>
    %cst_23 = arith.constant 1.100000e+03 : f32
    %112 = vector.broadcast %cst_23 : f32 to vector<8x256xf32>
    %113 = arith.cmpf oge, %0, %112 : vector<8x256xf32>
    %114 = arith.extui %113 : vector<8x256xi1> to vector<8x256xi32>
    %115 = arith.sitofp %114 : vector<8x256xi32> to vector<8x256xf32>
    %116 = arith.addf %111, %115 : vector<8x256xf32>
    %cst_24 = arith.constant 1.150000e+03 : f32
    %117 = vector.broadcast %cst_24 : f32 to vector<8x256xf32>
    %118 = arith.cmpf oge, %0, %117 : vector<8x256xf32>
    %119 = arith.extui %118 : vector<8x256xi1> to vector<8x256xi32>
    %120 = arith.sitofp %119 : vector<8x256xi32> to vector<8x256xf32>
    %121 = arith.addf %116, %120 : vector<8x256xf32>
    %cst_25 = arith.constant 1.200000e+03 : f32
    %122 = vector.broadcast %cst_25 : f32 to vector<8x256xf32>
    %123 = arith.cmpf oge, %0, %122 : vector<8x256xf32>
    %124 = arith.extui %123 : vector<8x256xi1> to vector<8x256xi32>
    %125 = arith.sitofp %124 : vector<8x256xi32> to vector<8x256xf32>
    %126 = arith.addf %121, %125 : vector<8x256xf32>
    %cst_26 = arith.constant 1.250000e+03 : f32
    %127 = vector.broadcast %cst_26 : f32 to vector<8x256xf32>
    %128 = arith.cmpf oge, %0, %127 : vector<8x256xf32>
    %129 = arith.extui %128 : vector<8x256xi1> to vector<8x256xi32>
    %130 = arith.sitofp %129 : vector<8x256xi32> to vector<8x256xf32>
    %131 = arith.addf %126, %130 : vector<8x256xf32>
    %cst_27 = arith.constant 1.300000e+03 : f32
    %132 = vector.broadcast %cst_27 : f32 to vector<8x256xf32>
    %133 = arith.cmpf oge, %0, %132 : vector<8x256xf32>
    %134 = arith.extui %133 : vector<8x256xi1> to vector<8x256xi32>
    %135 = arith.sitofp %134 : vector<8x256xi32> to vector<8x256xf32>
    %136 = arith.addf %131, %135 : vector<8x256xf32>
    %cst_28 = arith.constant 1.350000e+03 : f32
    %137 = vector.broadcast %cst_28 : f32 to vector<8x256xf32>
    %138 = arith.cmpf oge, %0, %137 : vector<8x256xf32>
    %139 = arith.extui %138 : vector<8x256xi1> to vector<8x256xi32>
    %140 = arith.sitofp %139 : vector<8x256xi32> to vector<8x256xf32>
    %141 = arith.addf %136, %140 : vector<8x256xf32>
    %cst_29 = arith.constant 1.400000e+03 : f32
    %142 = vector.broadcast %cst_29 : f32 to vector<8x256xf32>
    %143 = arith.cmpf oge, %0, %142 : vector<8x256xf32>
    %144 = arith.extui %143 : vector<8x256xi1> to vector<8x256xi32>
    %145 = arith.sitofp %144 : vector<8x256xi32> to vector<8x256xf32>
    %146 = arith.addf %141, %145 : vector<8x256xf32>
    %cst_30 = arith.constant 1.450000e+03 : f32
    %147 = vector.broadcast %cst_30 : f32 to vector<8x256xf32>
    %148 = arith.cmpf oge, %0, %147 : vector<8x256xf32>
    %149 = arith.extui %148 : vector<8x256xi1> to vector<8x256xi32>
    %150 = arith.sitofp %149 : vector<8x256xi32> to vector<8x256xf32>
    %151 = arith.addf %146, %150 : vector<8x256xf32>
    %cst_31 = arith.constant 1.500000e+03 : f32
    %152 = vector.broadcast %cst_31 : f32 to vector<8x256xf32>
    %153 = arith.cmpf oge, %0, %152 : vector<8x256xf32>
    %154 = arith.extui %153 : vector<8x256xi1> to vector<8x256xi32>
    %155 = arith.sitofp %154 : vector<8x256xi32> to vector<8x256xf32>
    %156 = arith.addf %151, %155 : vector<8x256xf32>
    %cst_32 = arith.constant 1.550000e+03 : f32
    %157 = vector.broadcast %cst_32 : f32 to vector<8x256xf32>
    %158 = arith.cmpf oge, %0, %157 : vector<8x256xf32>
    %159 = arith.extui %158 : vector<8x256xi1> to vector<8x256xi32>
    %160 = arith.sitofp %159 : vector<8x256xi32> to vector<8x256xf32>
    %161 = arith.addf %156, %160 : vector<8x256xf32>
    %cst_33 = arith.constant 1.600000e+03 : f32
    %162 = vector.broadcast %cst_33 : f32 to vector<8x256xf32>
    %163 = arith.cmpf oge, %0, %162 : vector<8x256xf32>
    %164 = arith.extui %163 : vector<8x256xi1> to vector<8x256xi32>
    %165 = arith.sitofp %164 : vector<8x256xi32> to vector<8x256xf32>
    %166 = arith.addf %161, %165 : vector<8x256xf32>
    %cst_34 = arith.constant 1.650000e+03 : f32
    %167 = vector.broadcast %cst_34 : f32 to vector<8x256xf32>
    %168 = arith.cmpf oge, %0, %167 : vector<8x256xf32>
    %169 = arith.extui %168 : vector<8x256xi1> to vector<8x256xi32>
    %170 = arith.sitofp %169 : vector<8x256xi32> to vector<8x256xf32>
    %171 = arith.addf %166, %170 : vector<8x256xf32>
    %cst_35 = arith.constant 1.700000e+03 : f32
    %172 = vector.broadcast %cst_35 : f32 to vector<8x256xf32>
    %173 = arith.cmpf oge, %0, %172 : vector<8x256xf32>
    %174 = arith.extui %173 : vector<8x256xi1> to vector<8x256xi32>
    %175 = arith.sitofp %174 : vector<8x256xi32> to vector<8x256xf32>
    %176 = arith.addf %171, %175 : vector<8x256xf32>
    %cst_36 = arith.constant 1.750000e+03 : f32
    %177 = vector.broadcast %cst_36 : f32 to vector<8x256xf32>
    %178 = arith.cmpf oge, %0, %177 : vector<8x256xf32>
    %179 = arith.extui %178 : vector<8x256xi1> to vector<8x256xi32>
    %180 = arith.sitofp %179 : vector<8x256xi32> to vector<8x256xf32>
    %181 = arith.addf %176, %180 : vector<8x256xf32>
    %cst_37 = arith.constant 1.800000e+03 : f32
    %182 = vector.broadcast %cst_37 : f32 to vector<8x256xf32>
    %183 = arith.cmpf oge, %0, %182 : vector<8x256xf32>
    %184 = arith.extui %183 : vector<8x256xi1> to vector<8x256xi32>
    %185 = arith.sitofp %184 : vector<8x256xi32> to vector<8x256xf32>
    %186 = arith.addf %181, %185 : vector<8x256xf32>
    %cst_38 = arith.constant 1.850000e+03 : f32
    %187 = vector.broadcast %cst_38 : f32 to vector<8x256xf32>
    %188 = arith.cmpf oge, %0, %187 : vector<8x256xf32>
    %189 = arith.extui %188 : vector<8x256xi1> to vector<8x256xi32>
    %190 = arith.sitofp %189 : vector<8x256xi32> to vector<8x256xf32>
    %191 = arith.addf %186, %190 : vector<8x256xf32>
    %cst_39 = arith.constant 1.900000e+03 : f32
    %192 = vector.broadcast %cst_39 : f32 to vector<8x256xf32>
    %193 = arith.cmpf oge, %0, %192 : vector<8x256xf32>
    %194 = arith.extui %193 : vector<8x256xi1> to vector<8x256xi32>
    %195 = arith.sitofp %194 : vector<8x256xi32> to vector<8x256xf32>
    %196 = arith.addf %191, %195 : vector<8x256xf32>
    %cst_40 = arith.constant 1.950000e+03 : f32
    %197 = vector.broadcast %cst_40 : f32 to vector<8x256xf32>
    %198 = arith.cmpf oge, %0, %197 : vector<8x256xf32>
    %199 = arith.extui %198 : vector<8x256xi1> to vector<8x256xi32>
    %200 = arith.sitofp %199 : vector<8x256xi32> to vector<8x256xf32>
    %201 = arith.addf %196, %200 : vector<8x256xf32>
    %cst_41 = arith.constant 2.000000e+03 : f32
    %202 = vector.broadcast %cst_41 : f32 to vector<8x256xf32>
    %203 = arith.cmpf oge, %0, %202 : vector<8x256xf32>
    %204 = arith.extui %203 : vector<8x256xi1> to vector<8x256xi32>
    %205 = arith.sitofp %204 : vector<8x256xi32> to vector<8x256xf32>
    %206 = arith.addf %201, %205 : vector<8x256xf32>
    %cst_42 = arith.constant 2.050000e+03 : f32
    %207 = vector.broadcast %cst_42 : f32 to vector<8x256xf32>
    %208 = arith.cmpf oge, %0, %207 : vector<8x256xf32>
    %209 = arith.extui %208 : vector<8x256xi1> to vector<8x256xi32>
    %210 = arith.sitofp %209 : vector<8x256xi32> to vector<8x256xf32>
    %211 = arith.addf %206, %210 : vector<8x256xf32>
    %cst_43 = arith.constant 2.100000e+03 : f32
    %212 = vector.broadcast %cst_43 : f32 to vector<8x256xf32>
    %213 = arith.cmpf oge, %0, %212 : vector<8x256xf32>
    %214 = arith.extui %213 : vector<8x256xi1> to vector<8x256xi32>
    %215 = arith.sitofp %214 : vector<8x256xi32> to vector<8x256xf32>
    %216 = arith.addf %211, %215 : vector<8x256xf32>
    %cst_44 = arith.constant 2.150000e+03 : f32
    %217 = vector.broadcast %cst_44 : f32 to vector<8x256xf32>
    %218 = arith.cmpf oge, %0, %217 : vector<8x256xf32>
    %219 = arith.extui %218 : vector<8x256xi1> to vector<8x256xi32>
    %220 = arith.sitofp %219 : vector<8x256xi32> to vector<8x256xf32>
    %221 = arith.addf %216, %220 : vector<8x256xf32>
    %cst_45 = arith.constant 2.200000e+03 : f32
    %222 = vector.broadcast %cst_45 : f32 to vector<8x256xf32>
    %223 = arith.cmpf oge, %0, %222 : vector<8x256xf32>
    %224 = arith.extui %223 : vector<8x256xi1> to vector<8x256xi32>
    %225 = arith.sitofp %224 : vector<8x256xi32> to vector<8x256xf32>
    %226 = arith.addf %221, %225 : vector<8x256xf32>
    %cst_46 = arith.constant 2.250000e+03 : f32
    %227 = vector.broadcast %cst_46 : f32 to vector<8x256xf32>
    %228 = arith.cmpf oge, %0, %227 : vector<8x256xf32>
    %229 = arith.extui %228 : vector<8x256xi1> to vector<8x256xi32>
    %230 = arith.sitofp %229 : vector<8x256xi32> to vector<8x256xf32>
    %231 = arith.addf %226, %230 : vector<8x256xf32>
    %cst_47 = arith.constant 2.300000e+03 : f32
    %232 = vector.broadcast %cst_47 : f32 to vector<8x256xf32>
    %233 = arith.cmpf oge, %0, %232 : vector<8x256xf32>
    %234 = arith.extui %233 : vector<8x256xi1> to vector<8x256xi32>
    %235 = arith.sitofp %234 : vector<8x256xi32> to vector<8x256xf32>
    %236 = arith.addf %231, %235 : vector<8x256xf32>
    %cst_48 = arith.constant 2.350000e+03 : f32
    %237 = vector.broadcast %cst_48 : f32 to vector<8x256xf32>
    %238 = arith.cmpf oge, %0, %237 : vector<8x256xf32>
    %239 = arith.extui %238 : vector<8x256xi1> to vector<8x256xi32>
    %240 = arith.sitofp %239 : vector<8x256xi32> to vector<8x256xf32>
    %241 = arith.addf %236, %240 : vector<8x256xf32>
    %cst_49 = arith.constant 2.400000e+03 : f32
    %242 = vector.broadcast %cst_49 : f32 to vector<8x256xf32>
    %243 = arith.cmpf oge, %0, %242 : vector<8x256xf32>
    %244 = arith.extui %243 : vector<8x256xi1> to vector<8x256xi32>
    %245 = arith.sitofp %244 : vector<8x256xi32> to vector<8x256xf32>
    %246 = arith.addf %241, %245 : vector<8x256xf32>
    %c0_50 = arith.constant 0 : index
    %c0_51 = arith.constant 0 : index
    %247 = vector.load %arg2[%c0_50, %c0_51] : memref<8x14xf32, #tpu.memory_space<vmem>>, vector<8x14xf32>
    %cst_52 = arith.constant 0.000000e+00 : f32
    %248 = vector.broadcast %cst_52 : f32 to vector<8x14xf32>
    %249 = arith.cmpf one, %247, %248 : vector<8x14xf32>
    %250 = arith.extui %249 : vector<8x14xi1> to vector<8x14xi32>
    %251 = arith.sitofp %250 : vector<8x14xi32> to vector<8x14xf32>
    %252 = arith.truncf %251 : vector<8x14xf32> to vector<8x14xbf16>
    %c0_53 = arith.constant 0 : index
    %c0_54 = arith.constant 0 : index
    %253 = vector.load %arg3[%c0_53, %c0_54] : memref<14x256xbf16, #tpu.memory_space<vmem>>, vector<14x256xbf16>
    %cst_55 = arith.constant dense<0.000000e+00> : vector<8x256xf32>
    %254 = tpu.matmul %252, %253, %cst_55 {dimension_numbers = #tpu.dot_dimension_numbers<[1], [0], [0], [1], [0, 0, 1, 1], [], []>} : vector<8x14xbf16>, vector<14x256xbf16>, vector<8x256xf32> -> vector<8x256xf32>
    %cst_56 = arith.constant 0.000000e+00 : f32
    %255 = vector.broadcast %cst_56 : f32 to vector<8x256xf32>
    %256 = arith.cmpf ogt, %254, %255 : vector<8x256xf32>
    %cst_57 = arith.constant 5.000000e+01 : f32
    %257 = vector.broadcast %cst_57 : f32 to vector<8x256xf32>
    %258 = arith.select %256, %257, %246 : vector<8x256xi1>, vector<8x256xf32>
    %cst_58 = arith.constant 0.000000e+00 : f32
    %259 = vector.broadcast %cst_58 : f32 to vector<8x32xf32>
    %cst_59 = arith.constant 0.000000e+00 : f32
    %260 = vector.broadcast %cst_59 : f32 to vector<8x256xf32>
    %261 = arith.cmpf oeq, %258, %260 : vector<8x256xf32>
    %262 = arith.extui %261 : vector<8x256xi1> to vector<8x256xi32>
    %263 = arith.sitofp %262 : vector<8x256xi32> to vector<8x256xf32>
    %264 = arith.truncf %263 : vector<8x256xf32> to vector<8x256xbf16>
    %c0_60 = arith.constant 0 : index
    %c0_61 = arith.constant 0 : index
    %c0_62 = arith.constant 0 : index
    %265 = vector.load %arg4[%c0_60, %c0_61, %c0_62] : memref<51x256x32xbf16, #tpu.memory_space<vmem>>, vector<1x256x32xbf16>
    %266 = vector.shape_cast %265 : vector<1x256x32xbf16> to vector<256x32xbf16>
    %cst_63 = arith.constant dense<0.000000e+00> : vector<8x32xf32>
    %267 = tpu.matmul %264, %266, %cst_63 {dimension_numbers = #tpu.dot_dimension_numbers<[1], [0], [0], [1], [0, 0, 1, 1], [], []>} : vector<8x256xbf16>, vector<256x32xbf16>, vector<8x32xf32> -> vector<8x32xf32>
    %268 = arith.addf %259, %267 : vector<8x32xf32>
    %cst_64 = arith.constant 1.000000e+00 : f32
    %269 = vector.broadcast %cst_64 : f32 to vector<8x256xf32>
    %270 = arith.cmpf oeq, %258, %269 : vector<8x256xf32>
    %271 = arith.extui %270 : vector<8x256xi1> to vector<8x256xi32>
    %272 = arith.sitofp %271 : vector<8x256xi32> to vector<8x256xf32>
    %273 = arith.truncf %272 : vector<8x256xf32> to vector<8x256xbf16>
    %c1 = arith.constant 1 : index
    %c0_65 = arith.constant 0 : index
    %c0_66 = arith.constant 0 : index
    %274 = vector.load %arg4[%c1, %c0_65, %c0_66] : memref<51x256x32xbf16, #tpu.memory_space<vmem>>, vector<1x256x32xbf16>
    %275 = vector.shape_cast %274 : vector<1x256x32xbf16> to vector<256x32xbf16>
    %cst_67 = arith.constant dense<0.000000e+00> : vector<8x32xf32>
    %276 = tpu.matmul %273, %275, %cst_67 {dimension_numbers = #tpu.dot_dimension_numbers<[1], [0], [0], [1], [0, 0, 1, 1], [], []>} : vector<8x256xbf16>, vector<256x32xbf16>, vector<8x32xf32> -> vector<8x32xf32>
    %277 = arith.addf %268, %276 : vector<8x32xf32>
    %cst_68 = arith.constant 2.000000e+00 : f32
    %278 = vector.broadcast %cst_68 : f32 to vector<8x256xf32>
    %279 = arith.cmpf oeq, %258, %278 : vector<8x256xf32>
    %280 = arith.extui %279 : vector<8x256xi1> to vector<8x256xi32>
    %281 = arith.sitofp %280 : vector<8x256xi32> to vector<8x256xf32>
    %282 = arith.truncf %281 : vector<8x256xf32> to vector<8x256xbf16>
    %c2 = arith.constant 2 : index
    %c0_69 = arith.constant 0 : index
    %c0_70 = arith.constant 0 : index
    %283 = vector.load %arg4[%c2, %c0_69, %c0_70] : memref<51x256x32xbf16, #tpu.memory_space<vmem>>, vector<1x256x32xbf16>
    %284 = vector.shape_cast %283 : vector<1x256x32xbf16> to vector<256x32xbf16>
    %cst_71 = arith.constant dense<0.000000e+00> : vector<8x32xf32>
    %285 = tpu.matmul %282, %284, %cst_71 {dimension_numbers = #tpu.dot_dimension_numbers<[1], [0], [0], [1], [0, 0, 1, 1], [], []>} : vector<8x256xbf16>, vector<256x32xbf16>, vector<8x32xf32> -> vector<8x32xf32>
    %286 = arith.addf %277, %285 : vector<8x32xf32>
    %cst_72 = arith.constant 3.000000e+00 : f32
    %287 = vector.broadcast %cst_72 : f32 to vector<8x256xf32>
    %288 = arith.cmpf oeq, %258, %287 : vector<8x256xf32>
    %289 = arith.extui %288 : vector<8x256xi1> to vector<8x256xi32>
    %290 = arith.sitofp %289 : vector<8x256xi32> to vector<8x256xf32>
    %291 = arith.truncf %290 : vector<8x256xf32> to vector<8x256xbf16>
    %c3 = arith.constant 3 : index
    %c0_73 = arith.constant 0 : index
    %c0_74 = arith.constant 0 : index
    %292 = vector.load %arg4[%c3, %c0_73, %c0_74] : memref<51x256x32xbf16, #tpu.memory_space<vmem>>, vector<1x256x32xbf16>
    %293 = vector.shape_cast %292 : vector<1x256x32xbf16> to vector<256x32xbf16>
    %cst_75 = arith.constant dense<0.000000e+00> : vector<8x32xf32>
    %294 = tpu.matmul %291, %293, %cst_75 {dimension_numbers = #tpu.dot_dimension_numbers<[1], [0], [0], [1], [0, 0, 1, 1], [], []>} : vector<8x256xbf16>, vector<256x32xbf16>, vector<8x32xf32> -> vector<8x32xf32>
    %295 = arith.addf %286, %294 : vector<8x32xf32>
    %cst_76 = arith.constant 4.000000e+00 : f32
    %296 = vector.broadcast %cst_76 : f32 to vector<8x256xf32>
    %297 = arith.cmpf oeq, %258, %296 : vector<8x256xf32>
    %298 = arith.extui %297 : vector<8x256xi1> to vector<8x256xi32>
    %299 = arith.sitofp %298 : vector<8x256xi32> to vector<8x256xf32>
    %300 = arith.truncf %299 : vector<8x256xf32> to vector<8x256xbf16>
    %c4 = arith.constant 4 : index
    %c0_77 = arith.constant 0 : index
    %c0_78 = arith.constant 0 : index
    %301 = vector.load %arg4[%c4, %c0_77, %c0_78] : memref<51x256x32xbf16, #tpu.memory_space<vmem>>, vector<1x256x32xbf16>
    %302 = vector.shape_cast %301 : vector<1x256x32xbf16> to vector<256x32xbf16>
    %cst_79 = arith.constant dense<0.000000e+00> : vector<8x32xf32>
    %303 = tpu.matmul %300, %302, %cst_79 {dimension_numbers = #tpu.dot_dimension_numbers<[1], [0], [0], [1], [0, 0, 1, 1], [], []>} : vector<8x256xbf16>, vector<256x32xbf16>, vector<8x32xf32> -> vector<8x32xf32>
    %304 = arith.addf %295, %303 : vector<8x32xf32>
    %cst_80 = arith.constant 5.000000e+00 : f32
    %305 = vector.broadcast %cst_80 : f32 to vector<8x256xf32>
    %306 = arith.cmpf oeq, %258, %305 : vector<8x256xf32>
    %307 = arith.extui %306 : vector<8x256xi1> to vector<8x256xi32>
    %308 = arith.sitofp %307 : vector<8x256xi32> to vector<8x256xf32>
    %309 = arith.truncf %308 : vector<8x256xf32> to vector<8x256xbf16>
    %c5 = arith.constant 5 : index
    %c0_81 = arith.constant 0 : index
    %c0_82 = arith.constant 0 : index
    %310 = vector.load %arg4[%c5, %c0_81, %c0_82] : memref<51x256x32xbf16, #tpu.memory_space<vmem>>, vector<1x256x32xbf16>
    %311 = vector.shape_cast %310 : vector<1x256x32xbf16> to vector<256x32xbf16>
    %cst_83 = arith.constant dense<0.000000e+00> : vector<8x32xf32>
    %312 = tpu.matmul %309, %311, %cst_83 {dimension_numbers = #tpu.dot_dimension_numbers<[1], [0], [0], [1], [0, 0, 1, 1], [], []>} : vector<8x256xbf16>, vector<256x32xbf16>, vector<8x32xf32> -> vector<8x32xf32>
    %313 = arith.addf %304, %312 : vector<8x32xf32>
    %cst_84 = arith.constant 6.000000e+00 : f32
    %314 = vector.broadcast %cst_84 : f32 to vector<8x256xf32>
    %315 = arith.cmpf oeq, %258, %314 : vector<8x256xf32>
    %316 = arith.extui %315 : vector<8x256xi1> to vector<8x256xi32>
    %317 = arith.sitofp %316 : vector<8x256xi32> to vector<8x256xf32>
    %318 = arith.truncf %317 : vector<8x256xf32> to vector<8x256xbf16>
    %c6 = arith.constant 6 : index
    %c0_85 = arith.constant 0 : index
    %c0_86 = arith.constant 0 : index
    %319 = vector.load %arg4[%c6, %c0_85, %c0_86] : memref<51x256x32xbf16, #tpu.memory_space<vmem>>, vector<1x256x32xbf16>
    %320 = vector.shape_cast %319 : vector<1x256x32xbf16> to vector<256x32xbf16>
    %cst_87 = arith.constant dense<0.000000e+00> : vector<8x32xf32>
    %321 = tpu.matmul %318, %320, %cst_87 {dimension_numbers = #tpu.dot_dimension_numbers<[1], [0], [0], [1], [0, 0, 1, 1], [], []>} : vector<8x256xbf16>, vector<256x32xbf16>, vector<8x32xf32> -> vector<8x32xf32>
    %322 = arith.addf %313, %321 : vector<8x32xf32>
    %cst_88 = arith.constant 7.000000e+00 : f32
    %323 = vector.broadcast %cst_88 : f32 to vector<8x256xf32>
    %324 = arith.cmpf oeq, %258, %323 : vector<8x256xf32>
    %325 = arith.extui %324 : vector<8x256xi1> to vector<8x256xi32>
    %326 = arith.sitofp %325 : vector<8x256xi32> to vector<8x256xf32>
    %327 = arith.truncf %326 : vector<8x256xf32> to vector<8x256xbf16>
    %c7 = arith.constant 7 : index
    %c0_89 = arith.constant 0 : index
    %c0_90 = arith.constant 0 : index
    %328 = vector.load %arg4[%c7, %c0_89, %c0_90] : memref<51x256x32xbf16, #tpu.memory_space<vmem>>, vector<1x256x32xbf16>
    %329 = vector.shape_cast %328 : vector<1x256x32xbf16> to vector<256x32xbf16>
    %cst_91 = arith.constant dense<0.000000e+00> : vector<8x32xf32>
    %330 = tpu.matmul %327, %329, %cst_91 {dimension_numbers = #tpu.dot_dimension_numbers<[1], [0], [0], [1], [0, 0, 1, 1], [], []>} : vector<8x256xbf16>, vector<256x32xbf16>, vector<8x32xf32> -> vector<8x32xf32>
    %331 = arith.addf %322, %330 : vector<8x32xf32>
    %cst_92 = arith.constant 8.000000e+00 : f32
    %332 = vector.broadcast %cst_92 : f32 to vector<8x256xf32>
    %333 = arith.cmpf oeq, %258, %332 : vector<8x256xf32>
    %334 = arith.extui %333 : vector<8x256xi1> to vector<8x256xi32>
    %335 = arith.sitofp %334 : vector<8x256xi32> to vector<8x256xf32>
    %336 = arith.truncf %335 : vector<8x256xf32> to vector<8x256xbf16>
    %c8 = arith.constant 8 : index
    %c0_93 = arith.constant 0 : index
    %c0_94 = arith.constant 0 : index
    %337 = vector.load %arg4[%c8, %c0_93, %c0_94] : memref<51x256x32xbf16, #tpu.memory_space<vmem>>, vector<1x256x32xbf16>
    %338 = vector.shape_cast %337 : vector<1x256x32xbf16> to vector<256x32xbf16>
    %cst_95 = arith.constant dense<0.000000e+00> : vector<8x32xf32>
    %339 = tpu.matmul %336, %338, %cst_95 {dimension_numbers = #tpu.dot_dimension_numbers<[1], [0], [0], [1], [0, 0, 1, 1], [], []>} : vector<8x256xbf16>, vector<256x32xbf16>, vector<8x32xf32> -> vector<8x32xf32>
    %340 = arith.addf %331, %339 : vector<8x32xf32>
    %cst_96 = arith.constant 9.000000e+00 : f32
    %341 = vector.broadcast %cst_96 : f32 to vector<8x256xf32>
    %342 = arith.cmpf oeq, %258, %341 : vector<8x256xf32>
    %343 = arith.extui %342 : vector<8x256xi1> to vector<8x256xi32>
    %344 = arith.sitofp %343 : vector<8x256xi32> to vector<8x256xf32>
    %345 = arith.truncf %344 : vector<8x256xf32> to vector<8x256xbf16>
    %c9 = arith.constant 9 : index
    %c0_97 = arith.constant 0 : index
    %c0_98 = arith.constant 0 : index
    %346 = vector.load %arg4[%c9, %c0_97, %c0_98] : memref<51x256x32xbf16, #tpu.memory_space<vmem>>, vector<1x256x32xbf16>
    %347 = vector.shape_cast %346 : vector<1x256x32xbf16> to vector<256x32xbf16>
    %cst_99 = arith.constant dense<0.000000e+00> : vector<8x32xf32>
    %348 = tpu.matmul %345, %347, %cst_99 {dimension_numbers = #tpu.dot_dimension_numbers<[1], [0], [0], [1], [0, 0, 1, 1], [], []>} : vector<8x256xbf16>, vector<256x32xbf16>, vector<8x32xf32> -> vector<8x32xf32>
    %349 = arith.addf %340, %348 : vector<8x32xf32>
    %cst_100 = arith.constant 1.000000e+01 : f32
    %350 = vector.broadcast %cst_100 : f32 to vector<8x256xf32>
    %351 = arith.cmpf oeq, %258, %350 : vector<8x256xf32>
    %352 = arith.extui %351 : vector<8x256xi1> to vector<8x256xi32>
    %353 = arith.sitofp %352 : vector<8x256xi32> to vector<8x256xf32>
    %354 = arith.truncf %353 : vector<8x256xf32> to vector<8x256xbf16>
    %c10 = arith.constant 10 : index
    %c0_101 = arith.constant 0 : index
    %c0_102 = arith.constant 0 : index
    %355 = vector.load %arg4[%c10, %c0_101, %c0_102] : memref<51x256x32xbf16, #tpu.memory_space<vmem>>, vector<1x256x32xbf16>
    %356 = vector.shape_cast %355 : vector<1x256x32xbf16> to vector<256x32xbf16>
    %cst_103 = arith.constant dense<0.000000e+00> : vector<8x32xf32>
    %357 = tpu.matmul %354, %356, %cst_103 {dimension_numbers = #tpu.dot_dimension_numbers<[1], [0], [0], [1], [0, 0, 1, 1], [], []>} : vector<8x256xbf16>, vector<256x32xbf16>, vector<8x32xf32> -> vector<8x32xf32>
    %358 = arith.addf %349, %357 : vector<8x32xf32>
    %cst_104 = arith.constant 1.100000e+01 : f32
    %359 = vector.broadcast %cst_104 : f32 to vector<8x256xf32>
    %360 = arith.cmpf oeq, %258, %359 : vector<8x256xf32>
    %361 = arith.extui %360 : vector<8x256xi1> to vector<8x256xi32>
    %362 = arith.sitofp %361 : vector<8x256xi32> to vector<8x256xf32>
    %363 = arith.truncf %362 : vector<8x256xf32> to vector<8x256xbf16>
    %c11 = arith.constant 11 : index
    %c0_105 = arith.constant 0 : index
    %c0_106 = arith.constant 0 : index
    %364 = vector.load %arg4[%c11, %c0_105, %c0_106] : memref<51x256x32xbf16, #tpu.memory_space<vmem>>, vector<1x256x32xbf16>
    %365 = vector.shape_cast %364 : vector<1x256x32xbf16> to vector<256x32xbf16>
    %cst_107 = arith.constant dense<0.000000e+00> : vector<8x32xf32>
    %366 = tpu.matmul %363, %365, %cst_107 {dimension_numbers = #tpu.dot_dimension_numbers<[1], [0], [0], [1], [0, 0, 1, 1], [], []>} : vector<8x256xbf16>, vector<256x32xbf16>, vector<8x32xf32> -> vector<8x32xf32>
    %367 = arith.addf %358, %366 : vector<8x32xf32>
    %cst_108 = arith.constant 1.200000e+01 : f32
    %368 = vector.broadcast %cst_108 : f32 to vector<8x256xf32>
    %369 = arith.cmpf oeq, %258, %368 : vector<8x256xf32>
    %370 = arith.extui %369 : vector<8x256xi1> to vector<8x256xi32>
    %371 = arith.sitofp %370 : vector<8x256xi32> to vector<8x256xf32>
    %372 = arith.truncf %371 : vector<8x256xf32> to vector<8x256xbf16>
    %c12 = arith.constant 12 : index
    %c0_109 = arith.constant 0 : index
    %c0_110 = arith.constant 0 : index
    %373 = vector.load %arg4[%c12, %c0_109, %c0_110] : memref<51x256x32xbf16, #tpu.memory_space<vmem>>, vector<1x256x32xbf16>
    %374 = vector.shape_cast %373 : vector<1x256x32xbf16> to vector<256x32xbf16>
    %cst_111 = arith.constant dense<0.000000e+00> : vector<8x32xf32>
    %375 = tpu.matmul %372, %374, %cst_111 {dimension_numbers = #tpu.dot_dimension_numbers<[1], [0], [0], [1], [0, 0, 1, 1], [], []>} : vector<8x256xbf16>, vector<256x32xbf16>, vector<8x32xf32> -> vector<8x32xf32>
    %376 = arith.addf %367, %375 : vector<8x32xf32>
    %cst_112 = arith.constant 1.300000e+01 : f32
    %377 = vector.broadcast %cst_112 : f32 to vector<8x256xf32>
    %378 = arith.cmpf oeq, %258, %377 : vector<8x256xf32>
    %379 = arith.extui %378 : vector<8x256xi1> to vector<8x256xi32>
    %380 = arith.sitofp %379 : vector<8x256xi32> to vector<8x256xf32>
    %381 = arith.truncf %380 : vector<8x256xf32> to vector<8x256xbf16>
    %c13 = arith.constant 13 : index
    %c0_113 = arith.constant 0 : index
    %c0_114 = arith.constant 0 : index
    %382 = vector.load %arg4[%c13, %c0_113, %c0_114] : memref<51x256x32xbf16, #tpu.memory_space<vmem>>, vector<1x256x32xbf16>
    %383 = vector.shape_cast %382 : vector<1x256x32xbf16> to vector<256x32xbf16>
    %cst_115 = arith.constant dense<0.000000e+00> : vector<8x32xf32>
    %384 = tpu.matmul %381, %383, %cst_115 {dimension_numbers = #tpu.dot_dimension_numbers<[1], [0], [0], [1], [0, 0, 1, 1], [], []>} : vector<8x256xbf16>, vector<256x32xbf16>, vector<8x32xf32> -> vector<8x32xf32>
    %385 = arith.addf %376, %384 : vector<8x32xf32>
    %cst_116 = arith.constant 1.400000e+01 : f32
    %386 = vector.broadcast %cst_116 : f32 to vector<8x256xf32>
    %387 = arith.cmpf oeq, %258, %386 : vector<8x256xf32>
    %388 = arith.extui %387 : vector<8x256xi1> to vector<8x256xi32>
    %389 = arith.sitofp %388 : vector<8x256xi32> to vector<8x256xf32>
    %390 = arith.truncf %389 : vector<8x256xf32> to vector<8x256xbf16>
    %c14 = arith.constant 14 : index
    %c0_117 = arith.constant 0 : index
    %c0_118 = arith.constant 0 : index
    %391 = vector.load %arg4[%c14, %c0_117, %c0_118] : memref<51x256x32xbf16, #tpu.memory_space<vmem>>, vector<1x256x32xbf16>
    %392 = vector.shape_cast %391 : vector<1x256x32xbf16> to vector<256x32xbf16>
    %cst_119 = arith.constant dense<0.000000e+00> : vector<8x32xf32>
    %393 = tpu.matmul %390, %392, %cst_119 {dimension_numbers = #tpu.dot_dimension_numbers<[1], [0], [0], [1], [0, 0, 1, 1], [], []>} : vector<8x256xbf16>, vector<256x32xbf16>, vector<8x32xf32> -> vector<8x32xf32>
    %394 = arith.addf %385, %393 : vector<8x32xf32>
    %cst_120 = arith.constant 1.500000e+01 : f32
    %395 = vector.broadcast %cst_120 : f32 to vector<8x256xf32>
    %396 = arith.cmpf oeq, %258, %395 : vector<8x256xf32>
    %397 = arith.extui %396 : vector<8x256xi1> to vector<8x256xi32>
    %398 = arith.sitofp %397 : vector<8x256xi32> to vector<8x256xf32>
    %399 = arith.truncf %398 : vector<8x256xf32> to vector<8x256xbf16>
    %c15 = arith.constant 15 : index
    %c0_121 = arith.constant 0 : index
    %c0_122 = arith.constant 0 : index
    %400 = vector.load %arg4[%c15, %c0_121, %c0_122] : memref<51x256x32xbf16, #tpu.memory_space<vmem>>, vector<1x256x32xbf16>
    %401 = vector.shape_cast %400 : vector<1x256x32xbf16> to vector<256x32xbf16>
    %cst_123 = arith.constant dense<0.000000e+00> : vector<8x32xf32>
    %402 = tpu.matmul %399, %401, %cst_123 {dimension_numbers = #tpu.dot_dimension_numbers<[1], [0], [0], [1], [0, 0, 1, 1], [], []>} : vector<8x256xbf16>, vector<256x32xbf16>, vector<8x32xf32> -> vector<8x32xf32>
    %403 = arith.addf %394, %402 : vector<8x32xf32>
    %cst_124 = arith.constant 1.600000e+01 : f32
    %404 = vector.broadcast %cst_124 : f32 to vector<8x256xf32>
    %405 = arith.cmpf oeq, %258, %404 : vector<8x256xf32>
    %406 = arith.extui %405 : vector<8x256xi1> to vector<8x256xi32>
    %407 = arith.sitofp %406 : vector<8x256xi32> to vector<8x256xf32>
    %408 = arith.truncf %407 : vector<8x256xf32> to vector<8x256xbf16>
    %c16 = arith.constant 16 : index
    %c0_125 = arith.constant 0 : index
    %c0_126 = arith.constant 0 : index
    %409 = vector.load %arg4[%c16, %c0_125, %c0_126] : memref<51x256x32xbf16, #tpu.memory_space<vmem>>, vector<1x256x32xbf16>
    %410 = vector.shape_cast %409 : vector<1x256x32xbf16> to vector<256x32xbf16>
    %cst_127 = arith.constant dense<0.000000e+00> : vector<8x32xf32>
    %411 = tpu.matmul %408, %410, %cst_127 {dimension_numbers = #tpu.dot_dimension_numbers<[1], [0], [0], [1], [0, 0, 1, 1], [], []>} : vector<8x256xbf16>, vector<256x32xbf16>, vector<8x32xf32> -> vector<8x32xf32>
    %412 = arith.addf %403, %411 : vector<8x32xf32>
    %cst_128 = arith.constant 1.700000e+01 : f32
    %413 = vector.broadcast %cst_128 : f32 to vector<8x256xf32>
    %414 = arith.cmpf oeq, %258, %413 : vector<8x256xf32>
    %415 = arith.extui %414 : vector<8x256xi1> to vector<8x256xi32>
    %416 = arith.sitofp %415 : vector<8x256xi32> to vector<8x256xf32>
    %417 = arith.truncf %416 : vector<8x256xf32> to vector<8x256xbf16>
    %c17 = arith.constant 17 : index
    %c0_129 = arith.constant 0 : index
    %c0_130 = arith.constant 0 : index
    %418 = vector.load %arg4[%c17, %c0_129, %c0_130] : memref<51x256x32xbf16, #tpu.memory_space<vmem>>, vector<1x256x32xbf16>
    %419 = vector.shape_cast %418 : vector<1x256x32xbf16> to vector<256x32xbf16>
    %cst_131 = arith.constant dense<0.000000e+00> : vector<8x32xf32>
    %420 = tpu.matmul %417, %419, %cst_131 {dimension_numbers = #tpu.dot_dimension_numbers<[1], [0], [0], [1], [0, 0, 1, 1], [], []>} : vector<8x256xbf16>, vector<256x32xbf16>, vector<8x32xf32> -> vector<8x32xf32>
    %421 = arith.addf %412, %420 : vector<8x32xf32>
    %cst_132 = arith.constant 1.800000e+01 : f32
    %422 = vector.broadcast %cst_132 : f32 to vector<8x256xf32>
    %423 = arith.cmpf oeq, %258, %422 : vector<8x256xf32>
    %424 = arith.extui %423 : vector<8x256xi1> to vector<8x256xi32>
    %425 = arith.sitofp %424 : vector<8x256xi32> to vector<8x256xf32>
    %426 = arith.truncf %425 : vector<8x256xf32> to vector<8x256xbf16>
    %c18 = arith.constant 18 : index
    %c0_133 = arith.constant 0 : index
    %c0_134 = arith.constant 0 : index
    %427 = vector.load %arg4[%c18, %c0_133, %c0_134] : memref<51x256x32xbf16, #tpu.memory_space<vmem>>, vector<1x256x32xbf16>
    %428 = vector.shape_cast %427 : vector<1x256x32xbf16> to vector<256x32xbf16>
    %cst_135 = arith.constant dense<0.000000e+00> : vector<8x32xf32>
    %429 = tpu.matmul %426, %428, %cst_135 {dimension_numbers = #tpu.dot_dimension_numbers<[1], [0], [0], [1], [0, 0, 1, 1], [], []>} : vector<8x256xbf16>, vector<256x32xbf16>, vector<8x32xf32> -> vector<8x32xf32>
    %430 = arith.addf %421, %429 : vector<8x32xf32>
    %cst_136 = arith.constant 1.900000e+01 : f32
    %431 = vector.broadcast %cst_136 : f32 to vector<8x256xf32>
    %432 = arith.cmpf oeq, %258, %431 : vector<8x256xf32>
    %433 = arith.extui %432 : vector<8x256xi1> to vector<8x256xi32>
    %434 = arith.sitofp %433 : vector<8x256xi32> to vector<8x256xf32>
    %435 = arith.truncf %434 : vector<8x256xf32> to vector<8x256xbf16>
    %c19 = arith.constant 19 : index
    %c0_137 = arith.constant 0 : index
    %c0_138 = arith.constant 0 : index
    %436 = vector.load %arg4[%c19, %c0_137, %c0_138] : memref<51x256x32xbf16, #tpu.memory_space<vmem>>, vector<1x256x32xbf16>
    %437 = vector.shape_cast %436 : vector<1x256x32xbf16> to vector<256x32xbf16>
    %cst_139 = arith.constant dense<0.000000e+00> : vector<8x32xf32>
    %438 = tpu.matmul %435, %437, %cst_139 {dimension_numbers = #tpu.dot_dimension_numbers<[1], [0], [0], [1], [0, 0, 1, 1], [], []>} : vector<8x256xbf16>, vector<256x32xbf16>, vector<8x32xf32> -> vector<8x32xf32>
    %439 = arith.addf %430, %438 : vector<8x32xf32>
    %cst_140 = arith.constant 2.000000e+01 : f32
    %440 = vector.broadcast %cst_140 : f32 to vector<8x256xf32>
    %441 = arith.cmpf oeq, %258, %440 : vector<8x256xf32>
    %442 = arith.extui %441 : vector<8x256xi1> to vector<8x256xi32>
    %443 = arith.sitofp %442 : vector<8x256xi32> to vector<8x256xf32>
    %444 = arith.truncf %443 : vector<8x256xf32> to vector<8x256xbf16>
    %c20 = arith.constant 20 : index
    %c0_141 = arith.constant 0 : index
    %c0_142 = arith.constant 0 : index
    %445 = vector.load %arg4[%c20, %c0_141, %c0_142] : memref<51x256x32xbf16, #tpu.memory_space<vmem>>, vector<1x256x32xbf16>
    %446 = vector.shape_cast %445 : vector<1x256x32xbf16> to vector<256x32xbf16>
    %cst_143 = arith.constant dense<0.000000e+00> : vector<8x32xf32>
    %447 = tpu.matmul %444, %446, %cst_143 {dimension_numbers = #tpu.dot_dimension_numbers<[1], [0], [0], [1], [0, 0, 1, 1], [], []>} : vector<8x256xbf16>, vector<256x32xbf16>, vector<8x32xf32> -> vector<8x32xf32>
    %448 = arith.addf %439, %447 : vector<8x32xf32>
    %cst_144 = arith.constant 2.100000e+01 : f32
    %449 = vector.broadcast %cst_144 : f32 to vector<8x256xf32>
    %450 = arith.cmpf oeq, %258, %449 : vector<8x256xf32>
    %451 = arith.extui %450 : vector<8x256xi1> to vector<8x256xi32>
    %452 = arith.sitofp %451 : vector<8x256xi32> to vector<8x256xf32>
    %453 = arith.truncf %452 : vector<8x256xf32> to vector<8x256xbf16>
    %c21 = arith.constant 21 : index
    %c0_145 = arith.constant 0 : index
    %c0_146 = arith.constant 0 : index
    %454 = vector.load %arg4[%c21, %c0_145, %c0_146] : memref<51x256x32xbf16, #tpu.memory_space<vmem>>, vector<1x256x32xbf16>
    %455 = vector.shape_cast %454 : vector<1x256x32xbf16> to vector<256x32xbf16>
    %cst_147 = arith.constant dense<0.000000e+00> : vector<8x32xf32>
    %456 = tpu.matmul %453, %455, %cst_147 {dimension_numbers = #tpu.dot_dimension_numbers<[1], [0], [0], [1], [0, 0, 1, 1], [], []>} : vector<8x256xbf16>, vector<256x32xbf16>, vector<8x32xf32> -> vector<8x32xf32>
    %457 = arith.addf %448, %456 : vector<8x32xf32>
    %cst_148 = arith.constant 2.200000e+01 : f32
    %458 = vector.broadcast %cst_148 : f32 to vector<8x256xf32>
    %459 = arith.cmpf oeq, %258, %458 : vector<8x256xf32>
    %460 = arith.extui %459 : vector<8x256xi1> to vector<8x256xi32>
    %461 = arith.sitofp %460 : vector<8x256xi32> to vector<8x256xf32>
    %462 = arith.truncf %461 : vector<8x256xf32> to vector<8x256xbf16>
    %c22 = arith.constant 22 : index
    %c0_149 = arith.constant 0 : index
    %c0_150 = arith.constant 0 : index
    %463 = vector.load %arg4[%c22, %c0_149, %c0_150] : memref<51x256x32xbf16, #tpu.memory_space<vmem>>, vector<1x256x32xbf16>
    %464 = vector.shape_cast %463 : vector<1x256x32xbf16> to vector<256x32xbf16>
    %cst_151 = arith.constant dense<0.000000e+00> : vector<8x32xf32>
    %465 = tpu.matmul %462, %464, %cst_151 {dimension_numbers = #tpu.dot_dimension_numbers<[1], [0], [0], [1], [0, 0, 1, 1], [], []>} : vector<8x256xbf16>, vector<256x32xbf16>, vector<8x32xf32> -> vector<8x32xf32>
    %466 = arith.addf %457, %465 : vector<8x32xf32>
    %cst_152 = arith.constant 2.300000e+01 : f32
    %467 = vector.broadcast %cst_152 : f32 to vector<8x256xf32>
    %468 = arith.cmpf oeq, %258, %467 : vector<8x256xf32>
    %469 = arith.extui %468 : vector<8x256xi1> to vector<8x256xi32>
    %470 = arith.sitofp %469 : vector<8x256xi32> to vector<8x256xf32>
    %471 = arith.truncf %470 : vector<8x256xf32> to vector<8x256xbf16>
    %c23 = arith.constant 23 : index
    %c0_153 = arith.constant 0 : index
    %c0_154 = arith.constant 0 : index
    %472 = vector.load %arg4[%c23, %c0_153, %c0_154] : memref<51x256x32xbf16, #tpu.memory_space<vmem>>, vector<1x256x32xbf16>
    %473 = vector.shape_cast %472 : vector<1x256x32xbf16> to vector<256x32xbf16>
    %cst_155 = arith.constant dense<0.000000e+00> : vector<8x32xf32>
    %474 = tpu.matmul %471, %473, %cst_155 {dimension_numbers = #tpu.dot_dimension_numbers<[1], [0], [0], [1], [0, 0, 1, 1], [], []>} : vector<8x256xbf16>, vector<256x32xbf16>, vector<8x32xf32> -> vector<8x32xf32>
    %475 = arith.addf %466, %474 : vector<8x32xf32>
    %cst_156 = arith.constant 2.400000e+01 : f32
    %476 = vector.broadcast %cst_156 : f32 to vector<8x256xf32>
    %477 = arith.cmpf oeq, %258, %476 : vector<8x256xf32>
    %478 = arith.extui %477 : vector<8x256xi1> to vector<8x256xi32>
    %479 = arith.sitofp %478 : vector<8x256xi32> to vector<8x256xf32>
    %480 = arith.truncf %479 : vector<8x256xf32> to vector<8x256xbf16>
    %c24 = arith.constant 24 : index
    %c0_157 = arith.constant 0 : index
    %c0_158 = arith.constant 0 : index
    %481 = vector.load %arg4[%c24, %c0_157, %c0_158] : memref<51x256x32xbf16, #tpu.memory_space<vmem>>, vector<1x256x32xbf16>
    %482 = vector.shape_cast %481 : vector<1x256x32xbf16> to vector<256x32xbf16>
    %cst_159 = arith.constant dense<0.000000e+00> : vector<8x32xf32>
    %483 = tpu.matmul %480, %482, %cst_159 {dimension_numbers = #tpu.dot_dimension_numbers<[1], [0], [0], [1], [0, 0, 1, 1], [], []>} : vector<8x256xbf16>, vector<256x32xbf16>, vector<8x32xf32> -> vector<8x32xf32>
    %484 = arith.addf %475, %483 : vector<8x32xf32>
    %cst_160 = arith.constant 2.500000e+01 : f32
    %485 = vector.broadcast %cst_160 : f32 to vector<8x256xf32>
    %486 = arith.cmpf oeq, %258, %485 : vector<8x256xf32>
    %487 = arith.extui %486 : vector<8x256xi1> to vector<8x256xi32>
    %488 = arith.sitofp %487 : vector<8x256xi32> to vector<8x256xf32>
    %489 = arith.truncf %488 : vector<8x256xf32> to vector<8x256xbf16>
    %c25 = arith.constant 25 : index
    %c0_161 = arith.constant 0 : index
    %c0_162 = arith.constant 0 : index
    %490 = vector.load %arg4[%c25, %c0_161, %c0_162] : memref<51x256x32xbf16, #tpu.memory_space<vmem>>, vector<1x256x32xbf16>
    %491 = vector.shape_cast %490 : vector<1x256x32xbf16> to vector<256x32xbf16>
    %cst_163 = arith.constant dense<0.000000e+00> : vector<8x32xf32>
    %492 = tpu.matmul %489, %491, %cst_163 {dimension_numbers = #tpu.dot_dimension_numbers<[1], [0], [0], [1], [0, 0, 1, 1], [], []>} : vector<8x256xbf16>, vector<256x32xbf16>, vector<8x32xf32> -> vector<8x32xf32>
    %493 = arith.addf %484, %492 : vector<8x32xf32>
    %cst_164 = arith.constant 2.600000e+01 : f32
    %494 = vector.broadcast %cst_164 : f32 to vector<8x256xf32>
    %495 = arith.cmpf oeq, %258, %494 : vector<8x256xf32>
    %496 = arith.extui %495 : vector<8x256xi1> to vector<8x256xi32>
    %497 = arith.sitofp %496 : vector<8x256xi32> to vector<8x256xf32>
    %498 = arith.truncf %497 : vector<8x256xf32> to vector<8x256xbf16>
    %c26 = arith.constant 26 : index
    %c0_165 = arith.constant 0 : index
    %c0_166 = arith.constant 0 : index
    %499 = vector.load %arg4[%c26, %c0_165, %c0_166] : memref<51x256x32xbf16, #tpu.memory_space<vmem>>, vector<1x256x32xbf16>
    %500 = vector.shape_cast %499 : vector<1x256x32xbf16> to vector<256x32xbf16>
    %cst_167 = arith.constant dense<0.000000e+00> : vector<8x32xf32>
    %501 = tpu.matmul %498, %500, %cst_167 {dimension_numbers = #tpu.dot_dimension_numbers<[1], [0], [0], [1], [0, 0, 1, 1], [], []>} : vector<8x256xbf16>, vector<256x32xbf16>, vector<8x32xf32> -> vector<8x32xf32>
    %502 = arith.addf %493, %501 : vector<8x32xf32>
    %cst_168 = arith.constant 2.700000e+01 : f32
    %503 = vector.broadcast %cst_168 : f32 to vector<8x256xf32>
    %504 = arith.cmpf oeq, %258, %503 : vector<8x256xf32>
    %505 = arith.extui %504 : vector<8x256xi1> to vector<8x256xi32>
    %506 = arith.sitofp %505 : vector<8x256xi32> to vector<8x256xf32>
    %507 = arith.truncf %506 : vector<8x256xf32> to vector<8x256xbf16>
    %c27 = arith.constant 27 : index
    %c0_169 = arith.constant 0 : index
    %c0_170 = arith.constant 0 : index
    %508 = vector.load %arg4[%c27, %c0_169, %c0_170] : memref<51x256x32xbf16, #tpu.memory_space<vmem>>, vector<1x256x32xbf16>
    %509 = vector.shape_cast %508 : vector<1x256x32xbf16> to vector<256x32xbf16>
    %cst_171 = arith.constant dense<0.000000e+00> : vector<8x32xf32>
    %510 = tpu.matmul %507, %509, %cst_171 {dimension_numbers = #tpu.dot_dimension_numbers<[1], [0], [0], [1], [0, 0, 1, 1], [], []>} : vector<8x256xbf16>, vector<256x32xbf16>, vector<8x32xf32> -> vector<8x32xf32>
    %511 = arith.addf %502, %510 : vector<8x32xf32>
    %cst_172 = arith.constant 2.800000e+01 : f32
    %512 = vector.broadcast %cst_172 : f32 to vector<8x256xf32>
    %513 = arith.cmpf oeq, %258, %512 : vector<8x256xf32>
    %514 = arith.extui %513 : vector<8x256xi1> to vector<8x256xi32>
    %515 = arith.sitofp %514 : vector<8x256xi32> to vector<8x256xf32>
    %516 = arith.truncf %515 : vector<8x256xf32> to vector<8x256xbf16>
    %c28 = arith.constant 28 : index
    %c0_173 = arith.constant 0 : index
    %c0_174 = arith.constant 0 : index
    %517 = vector.load %arg4[%c28, %c0_173, %c0_174] : memref<51x256x32xbf16, #tpu.memory_space<vmem>>, vector<1x256x32xbf16>
    %518 = vector.shape_cast %517 : vector<1x256x32xbf16> to vector<256x32xbf16>
    %cst_175 = arith.constant dense<0.000000e+00> : vector<8x32xf32>
    %519 = tpu.matmul %516, %518, %cst_175 {dimension_numbers = #tpu.dot_dimension_numbers<[1], [0], [0], [1], [0, 0, 1, 1], [], []>} : vector<8x256xbf16>, vector<256x32xbf16>, vector<8x32xf32> -> vector<8x32xf32>
    %520 = arith.addf %511, %519 : vector<8x32xf32>
    %cst_176 = arith.constant 2.900000e+01 : f32
    %521 = vector.broadcast %cst_176 : f32 to vector<8x256xf32>
    %522 = arith.cmpf oeq, %258, %521 : vector<8x256xf32>
    %523 = arith.extui %522 : vector<8x256xi1> to vector<8x256xi32>
    %524 = arith.sitofp %523 : vector<8x256xi32> to vector<8x256xf32>
    %525 = arith.truncf %524 : vector<8x256xf32> to vector<8x256xbf16>
    %c29 = arith.constant 29 : index
    %c0_177 = arith.constant 0 : index
    %c0_178 = arith.constant 0 : index
    %526 = vector.load %arg4[%c29, %c0_177, %c0_178] : memref<51x256x32xbf16, #tpu.memory_space<vmem>>, vector<1x256x32xbf16>
    %527 = vector.shape_cast %526 : vector<1x256x32xbf16> to vector<256x32xbf16>
    %cst_179 = arith.constant dense<0.000000e+00> : vector<8x32xf32>
    %528 = tpu.matmul %525, %527, %cst_179 {dimension_numbers = #tpu.dot_dimension_numbers<[1], [0], [0], [1], [0, 0, 1, 1], [], []>} : vector<8x256xbf16>, vector<256x32xbf16>, vector<8x32xf32> -> vector<8x32xf32>
    %529 = arith.addf %520, %528 : vector<8x32xf32>
    %cst_180 = arith.constant 3.000000e+01 : f32
    %530 = vector.broadcast %cst_180 : f32 to vector<8x256xf32>
    %531 = arith.cmpf oeq, %258, %530 : vector<8x256xf32>
    %532 = arith.extui %531 : vector<8x256xi1> to vector<8x256xi32>
    %533 = arith.sitofp %532 : vector<8x256xi32> to vector<8x256xf32>
    %534 = arith.truncf %533 : vector<8x256xf32> to vector<8x256xbf16>
    %c30 = arith.constant 30 : index
    %c0_181 = arith.constant 0 : index
    %c0_182 = arith.constant 0 : index
    %535 = vector.load %arg4[%c30, %c0_181, %c0_182] : memref<51x256x32xbf16, #tpu.memory_space<vmem>>, vector<1x256x32xbf16>
    %536 = vector.shape_cast %535 : vector<1x256x32xbf16> to vector<256x32xbf16>
    %cst_183 = arith.constant dense<0.000000e+00> : vector<8x32xf32>
    %537 = tpu.matmul %534, %536, %cst_183 {dimension_numbers = #tpu.dot_dimension_numbers<[1], [0], [0], [1], [0, 0, 1, 1], [], []>} : vector<8x256xbf16>, vector<256x32xbf16>, vector<8x32xf32> -> vector<8x32xf32>
    %538 = arith.addf %529, %537 : vector<8x32xf32>
    %cst_184 = arith.constant 3.100000e+01 : f32
    %539 = vector.broadcast %cst_184 : f32 to vector<8x256xf32>
    %540 = arith.cmpf oeq, %258, %539 : vector<8x256xf32>
    %541 = arith.extui %540 : vector<8x256xi1> to vector<8x256xi32>
    %542 = arith.sitofp %541 : vector<8x256xi32> to vector<8x256xf32>
    %543 = arith.truncf %542 : vector<8x256xf32> to vector<8x256xbf16>
    %c31 = arith.constant 31 : index
    %c0_185 = arith.constant 0 : index
    %c0_186 = arith.constant 0 : index
    %544 = vector.load %arg4[%c31, %c0_185, %c0_186] : memref<51x256x32xbf16, #tpu.memory_space<vmem>>, vector<1x256x32xbf16>
    %545 = vector.shape_cast %544 : vector<1x256x32xbf16> to vector<256x32xbf16>
    %cst_187 = arith.constant dense<0.000000e+00> : vector<8x32xf32>
    %546 = tpu.matmul %543, %545, %cst_187 {dimension_numbers = #tpu.dot_dimension_numbers<[1], [0], [0], [1], [0, 0, 1, 1], [], []>} : vector<8x256xbf16>, vector<256x32xbf16>, vector<8x32xf32> -> vector<8x32xf32>
    %547 = arith.addf %538, %546 : vector<8x32xf32>
    %cst_188 = arith.constant 3.200000e+01 : f32
    %548 = vector.broadcast %cst_188 : f32 to vector<8x256xf32>
    %549 = arith.cmpf oeq, %258, %548 : vector<8x256xf32>
    %550 = arith.extui %549 : vector<8x256xi1> to vector<8x256xi32>
    %551 = arith.sitofp %550 : vector<8x256xi32> to vector<8x256xf32>
    %552 = arith.truncf %551 : vector<8x256xf32> to vector<8x256xbf16>
    %c32 = arith.constant 32 : index
    %c0_189 = arith.constant 0 : index
    %c0_190 = arith.constant 0 : index
    %553 = vector.load %arg4[%c32, %c0_189, %c0_190] : memref<51x256x32xbf16, #tpu.memory_space<vmem>>, vector<1x256x32xbf16>
    %554 = vector.shape_cast %553 : vector<1x256x32xbf16> to vector<256x32xbf16>
    %cst_191 = arith.constant dense<0.000000e+00> : vector<8x32xf32>
    %555 = tpu.matmul %552, %554, %cst_191 {dimension_numbers = #tpu.dot_dimension_numbers<[1], [0], [0], [1], [0, 0, 1, 1], [], []>} : vector<8x256xbf16>, vector<256x32xbf16>, vector<8x32xf32> -> vector<8x32xf32>
    %556 = arith.addf %547, %555 : vector<8x32xf32>
    %cst_192 = arith.constant 3.300000e+01 : f32
    %557 = vector.broadcast %cst_192 : f32 to vector<8x256xf32>
    %558 = arith.cmpf oeq, %258, %557 : vector<8x256xf32>
    %559 = arith.extui %558 : vector<8x256xi1> to vector<8x256xi32>
    %560 = arith.sitofp %559 : vector<8x256xi32> to vector<8x256xf32>
    %561 = arith.truncf %560 : vector<8x256xf32> to vector<8x256xbf16>
    %c33 = arith.constant 33 : index
    %c0_193 = arith.constant 0 : index
    %c0_194 = arith.constant 0 : index
    %562 = vector.load %arg4[%c33, %c0_193, %c0_194] : memref<51x256x32xbf16, #tpu.memory_space<vmem>>, vector<1x256x32xbf16>
    %563 = vector.shape_cast %562 : vector<1x256x32xbf16> to vector<256x32xbf16>
    %cst_195 = arith.constant dense<0.000000e+00> : vector<8x32xf32>
    %564 = tpu.matmul %561, %563, %cst_195 {dimension_numbers = #tpu.dot_dimension_numbers<[1], [0], [0], [1], [0, 0, 1, 1], [], []>} : vector<8x256xbf16>, vector<256x32xbf16>, vector<8x32xf32> -> vector<8x32xf32>
    %565 = arith.addf %556, %564 : vector<8x32xf32>
    %cst_196 = arith.constant 3.400000e+01 : f32
    %566 = vector.broadcast %cst_196 : f32 to vector<8x256xf32>
    %567 = arith.cmpf oeq, %258, %566 : vector<8x256xf32>
    %568 = arith.extui %567 : vector<8x256xi1> to vector<8x256xi32>
    %569 = arith.sitofp %568 : vector<8x256xi32> to vector<8x256xf32>
    %570 = arith.truncf %569 : vector<8x256xf32> to vector<8x256xbf16>
    %c34 = arith.constant 34 : index
    %c0_197 = arith.constant 0 : index
    %c0_198 = arith.constant 0 : index
    %571 = vector.load %arg4[%c34, %c0_197, %c0_198] : memref<51x256x32xbf16, #tpu.memory_space<vmem>>, vector<1x256x32xbf16>
    %572 = vector.shape_cast %571 : vector<1x256x32xbf16> to vector<256x32xbf16>
    %cst_199 = arith.constant dense<0.000000e+00> : vector<8x32xf32>
    %573 = tpu.matmul %570, %572, %cst_199 {dimension_numbers = #tpu.dot_dimension_numbers<[1], [0], [0], [1], [0, 0, 1, 1], [], []>} : vector<8x256xbf16>, vector<256x32xbf16>, vector<8x32xf32> -> vector<8x32xf32>
    %574 = arith.addf %565, %573 : vector<8x32xf32>
    %cst_200 = arith.constant 3.500000e+01 : f32
    %575 = vector.broadcast %cst_200 : f32 to vector<8x256xf32>
    %576 = arith.cmpf oeq, %258, %575 : vector<8x256xf32>
    %577 = arith.extui %576 : vector<8x256xi1> to vector<8x256xi32>
    %578 = arith.sitofp %577 : vector<8x256xi32> to vector<8x256xf32>
    %579 = arith.truncf %578 : vector<8x256xf32> to vector<8x256xbf16>
    %c35 = arith.constant 35 : index
    %c0_201 = arith.constant 0 : index
    %c0_202 = arith.constant 0 : index
    %580 = vector.load %arg4[%c35, %c0_201, %c0_202] : memref<51x256x32xbf16, #tpu.memory_space<vmem>>, vector<1x256x32xbf16>
    %581 = vector.shape_cast %580 : vector<1x256x32xbf16> to vector<256x32xbf16>
    %cst_203 = arith.constant dense<0.000000e+00> : vector<8x32xf32>
    %582 = tpu.matmul %579, %581, %cst_203 {dimension_numbers = #tpu.dot_dimension_numbers<[1], [0], [0], [1], [0, 0, 1, 1], [], []>} : vector<8x256xbf16>, vector<256x32xbf16>, vector<8x32xf32> -> vector<8x32xf32>
    %583 = arith.addf %574, %582 : vector<8x32xf32>
    %cst_204 = arith.constant 3.600000e+01 : f32
    %584 = vector.broadcast %cst_204 : f32 to vector<8x256xf32>
    %585 = arith.cmpf oeq, %258, %584 : vector<8x256xf32>
    %586 = arith.extui %585 : vector<8x256xi1> to vector<8x256xi32>
    %587 = arith.sitofp %586 : vector<8x256xi32> to vector<8x256xf32>
    %588 = arith.truncf %587 : vector<8x256xf32> to vector<8x256xbf16>
    %c36 = arith.constant 36 : index
    %c0_205 = arith.constant 0 : index
    %c0_206 = arith.constant 0 : index
    %589 = vector.load %arg4[%c36, %c0_205, %c0_206] : memref<51x256x32xbf16, #tpu.memory_space<vmem>>, vector<1x256x32xbf16>
    %590 = vector.shape_cast %589 : vector<1x256x32xbf16> to vector<256x32xbf16>
    %cst_207 = arith.constant dense<0.000000e+00> : vector<8x32xf32>
    %591 = tpu.matmul %588, %590, %cst_207 {dimension_numbers = #tpu.dot_dimension_numbers<[1], [0], [0], [1], [0, 0, 1, 1], [], []>} : vector<8x256xbf16>, vector<256x32xbf16>, vector<8x32xf32> -> vector<8x32xf32>
    %592 = arith.addf %583, %591 : vector<8x32xf32>
    %cst_208 = arith.constant 3.700000e+01 : f32
    %593 = vector.broadcast %cst_208 : f32 to vector<8x256xf32>
    %594 = arith.cmpf oeq, %258, %593 : vector<8x256xf32>
    %595 = arith.extui %594 : vector<8x256xi1> to vector<8x256xi32>
    %596 = arith.sitofp %595 : vector<8x256xi32> to vector<8x256xf32>
    %597 = arith.truncf %596 : vector<8x256xf32> to vector<8x256xbf16>
    %c37 = arith.constant 37 : index
    %c0_209 = arith.constant 0 : index
    %c0_210 = arith.constant 0 : index
    %598 = vector.load %arg4[%c37, %c0_209, %c0_210] : memref<51x256x32xbf16, #tpu.memory_space<vmem>>, vector<1x256x32xbf16>
    %599 = vector.shape_cast %598 : vector<1x256x32xbf16> to vector<256x32xbf16>
    %cst_211 = arith.constant dense<0.000000e+00> : vector<8x32xf32>
    %600 = tpu.matmul %597, %599, %cst_211 {dimension_numbers = #tpu.dot_dimension_numbers<[1], [0], [0], [1], [0, 0, 1, 1], [], []>} : vector<8x256xbf16>, vector<256x32xbf16>, vector<8x32xf32> -> vector<8x32xf32>
    %601 = arith.addf %592, %600 : vector<8x32xf32>
    %cst_212 = arith.constant 3.800000e+01 : f32
    %602 = vector.broadcast %cst_212 : f32 to vector<8x256xf32>
    %603 = arith.cmpf oeq, %258, %602 : vector<8x256xf32>
    %604 = arith.extui %603 : vector<8x256xi1> to vector<8x256xi32>
    %605 = arith.sitofp %604 : vector<8x256xi32> to vector<8x256xf32>
    %606 = arith.truncf %605 : vector<8x256xf32> to vector<8x256xbf16>
    %c38 = arith.constant 38 : index
    %c0_213 = arith.constant 0 : index
    %c0_214 = arith.constant 0 : index
    %607 = vector.load %arg4[%c38, %c0_213, %c0_214] : memref<51x256x32xbf16, #tpu.memory_space<vmem>>, vector<1x256x32xbf16>
    %608 = vector.shape_cast %607 : vector<1x256x32xbf16> to vector<256x32xbf16>
    %cst_215 = arith.constant dense<0.000000e+00> : vector<8x32xf32>
    %609 = tpu.matmul %606, %608, %cst_215 {dimension_numbers = #tpu.dot_dimension_numbers<[1], [0], [0], [1], [0, 0, 1, 1], [], []>} : vector<8x256xbf16>, vector<256x32xbf16>, vector<8x32xf32> -> vector<8x32xf32>
    %610 = arith.addf %601, %609 : vector<8x32xf32>
    %cst_216 = arith.constant 3.900000e+01 : f32
    %611 = vector.broadcast %cst_216 : f32 to vector<8x256xf32>
    %612 = arith.cmpf oeq, %258, %611 : vector<8x256xf32>
    %613 = arith.extui %612 : vector<8x256xi1> to vector<8x256xi32>
    %614 = arith.sitofp %613 : vector<8x256xi32> to vector<8x256xf32>
    %615 = arith.truncf %614 : vector<8x256xf32> to vector<8x256xbf16>
    %c39 = arith.constant 39 : index
    %c0_217 = arith.constant 0 : index
    %c0_218 = arith.constant 0 : index
    %616 = vector.load %arg4[%c39, %c0_217, %c0_218] : memref<51x256x32xbf16, #tpu.memory_space<vmem>>, vector<1x256x32xbf16>
    %617 = vector.shape_cast %616 : vector<1x256x32xbf16> to vector<256x32xbf16>
    %cst_219 = arith.constant dense<0.000000e+00> : vector<8x32xf32>
    %618 = tpu.matmul %615, %617, %cst_219 {dimension_numbers = #tpu.dot_dimension_numbers<[1], [0], [0], [1], [0, 0, 1, 1], [], []>} : vector<8x256xbf16>, vector<256x32xbf16>, vector<8x32xf32> -> vector<8x32xf32>
    %619 = arith.addf %610, %618 : vector<8x32xf32>
    %cst_220 = arith.constant 4.000000e+01 : f32
    %620 = vector.broadcast %cst_220 : f32 to vector<8x256xf32>
    %621 = arith.cmpf oeq, %258, %620 : vector<8x256xf32>
    %622 = arith.extui %621 : vector<8x256xi1> to vector<8x256xi32>
    %623 = arith.sitofp %622 : vector<8x256xi32> to vector<8x256xf32>
    %624 = arith.truncf %623 : vector<8x256xf32> to vector<8x256xbf16>
    %c40 = arith.constant 40 : index
    %c0_221 = arith.constant 0 : index
    %c0_222 = arith.constant 0 : index
    %625 = vector.load %arg4[%c40, %c0_221, %c0_222] : memref<51x256x32xbf16, #tpu.memory_space<vmem>>, vector<1x256x32xbf16>
    %626 = vector.shape_cast %625 : vector<1x256x32xbf16> to vector<256x32xbf16>
    %cst_223 = arith.constant dense<0.000000e+00> : vector<8x32xf32>
    %627 = tpu.matmul %624, %626, %cst_223 {dimension_numbers = #tpu.dot_dimension_numbers<[1], [0], [0], [1], [0, 0, 1, 1], [], []>} : vector<8x256xbf16>, vector<256x32xbf16>, vector<8x32xf32> -> vector<8x32xf32>
    %628 = arith.addf %619, %627 : vector<8x32xf32>
    %cst_224 = arith.constant 4.100000e+01 : f32
    %629 = vector.broadcast %cst_224 : f32 to vector<8x256xf32>
    %630 = arith.cmpf oeq, %258, %629 : vector<8x256xf32>
    %631 = arith.extui %630 : vector<8x256xi1> to vector<8x256xi32>
    %632 = arith.sitofp %631 : vector<8x256xi32> to vector<8x256xf32>
    %633 = arith.truncf %632 : vector<8x256xf32> to vector<8x256xbf16>
    %c41 = arith.constant 41 : index
    %c0_225 = arith.constant 0 : index
    %c0_226 = arith.constant 0 : index
    %634 = vector.load %arg4[%c41, %c0_225, %c0_226] : memref<51x256x32xbf16, #tpu.memory_space<vmem>>, vector<1x256x32xbf16>
    %635 = vector.shape_cast %634 : vector<1x256x32xbf16> to vector<256x32xbf16>
    %cst_227 = arith.constant dense<0.000000e+00> : vector<8x32xf32>
    %636 = tpu.matmul %633, %635, %cst_227 {dimension_numbers = #tpu.dot_dimension_numbers<[1], [0], [0], [1], [0, 0, 1, 1], [], []>} : vector<8x256xbf16>, vector<256x32xbf16>, vector<8x32xf32> -> vector<8x32xf32>
    %637 = arith.addf %628, %636 : vector<8x32xf32>
    %cst_228 = arith.constant 4.200000e+01 : f32
    %638 = vector.broadcast %cst_228 : f32 to vector<8x256xf32>
    %639 = arith.cmpf oeq, %258, %638 : vector<8x256xf32>
    %640 = arith.extui %639 : vector<8x256xi1> to vector<8x256xi32>
    %641 = arith.sitofp %640 : vector<8x256xi32> to vector<8x256xf32>
    %642 = arith.truncf %641 : vector<8x256xf32> to vector<8x256xbf16>
    %c42 = arith.constant 42 : index
    %c0_229 = arith.constant 0 : index
    %c0_230 = arith.constant 0 : index
    %643 = vector.load %arg4[%c42, %c0_229, %c0_230] : memref<51x256x32xbf16, #tpu.memory_space<vmem>>, vector<1x256x32xbf16>
    %644 = vector.shape_cast %643 : vector<1x256x32xbf16> to vector<256x32xbf16>
    %cst_231 = arith.constant dense<0.000000e+00> : vector<8x32xf32>
    %645 = tpu.matmul %642, %644, %cst_231 {dimension_numbers = #tpu.dot_dimension_numbers<[1], [0], [0], [1], [0, 0, 1, 1], [], []>} : vector<8x256xbf16>, vector<256x32xbf16>, vector<8x32xf32> -> vector<8x32xf32>
    %646 = arith.addf %637, %645 : vector<8x32xf32>
    %cst_232 = arith.constant 4.300000e+01 : f32
    %647 = vector.broadcast %cst_232 : f32 to vector<8x256xf32>
    %648 = arith.cmpf oeq, %258, %647 : vector<8x256xf32>
    %649 = arith.extui %648 : vector<8x256xi1> to vector<8x256xi32>
    %650 = arith.sitofp %649 : vector<8x256xi32> to vector<8x256xf32>
    %651 = arith.truncf %650 : vector<8x256xf32> to vector<8x256xbf16>
    %c43 = arith.constant 43 : index
    %c0_233 = arith.constant 0 : index
    %c0_234 = arith.constant 0 : index
    %652 = vector.load %arg4[%c43, %c0_233, %c0_234] : memref<51x256x32xbf16, #tpu.memory_space<vmem>>, vector<1x256x32xbf16>
    %653 = vector.shape_cast %652 : vector<1x256x32xbf16> to vector<256x32xbf16>
    %cst_235 = arith.constant dense<0.000000e+00> : vector<8x32xf32>
    %654 = tpu.matmul %651, %653, %cst_235 {dimension_numbers = #tpu.dot_dimension_numbers<[1], [0], [0], [1], [0, 0, 1, 1], [], []>} : vector<8x256xbf16>, vector<256x32xbf16>, vector<8x32xf32> -> vector<8x32xf32>
    %655 = arith.addf %646, %654 : vector<8x32xf32>
    %cst_236 = arith.constant 4.400000e+01 : f32
    %656 = vector.broadcast %cst_236 : f32 to vector<8x256xf32>
    %657 = arith.cmpf oeq, %258, %656 : vector<8x256xf32>
    %658 = arith.extui %657 : vector<8x256xi1> to vector<8x256xi32>
    %659 = arith.sitofp %658 : vector<8x256xi32> to vector<8x256xf32>
    %660 = arith.truncf %659 : vector<8x256xf32> to vector<8x256xbf16>
    %c44 = arith.constant 44 : index
    %c0_237 = arith.constant 0 : index
    %c0_238 = arith.constant 0 : index
    %661 = vector.load %arg4[%c44, %c0_237, %c0_238] : memref<51x256x32xbf16, #tpu.memory_space<vmem>>, vector<1x256x32xbf16>
    %662 = vector.shape_cast %661 : vector<1x256x32xbf16> to vector<256x32xbf16>
    %cst_239 = arith.constant dense<0.000000e+00> : vector<8x32xf32>
    %663 = tpu.matmul %660, %662, %cst_239 {dimension_numbers = #tpu.dot_dimension_numbers<[1], [0], [0], [1], [0, 0, 1, 1], [], []>} : vector<8x256xbf16>, vector<256x32xbf16>, vector<8x32xf32> -> vector<8x32xf32>
    %664 = arith.addf %655, %663 : vector<8x32xf32>
    %cst_240 = arith.constant 4.500000e+01 : f32
    %665 = vector.broadcast %cst_240 : f32 to vector<8x256xf32>
    %666 = arith.cmpf oeq, %258, %665 : vector<8x256xf32>
    %667 = arith.extui %666 : vector<8x256xi1> to vector<8x256xi32>
    %668 = arith.sitofp %667 : vector<8x256xi32> to vector<8x256xf32>
    %669 = arith.truncf %668 : vector<8x256xf32> to vector<8x256xbf16>
    %c45 = arith.constant 45 : index
    %c0_241 = arith.constant 0 : index
    %c0_242 = arith.constant 0 : index
    %670 = vector.load %arg4[%c45, %c0_241, %c0_242] : memref<51x256x32xbf16, #tpu.memory_space<vmem>>, vector<1x256x32xbf16>
    %671 = vector.shape_cast %670 : vector<1x256x32xbf16> to vector<256x32xbf16>
    %cst_243 = arith.constant dense<0.000000e+00> : vector<8x32xf32>
    %672 = tpu.matmul %669, %671, %cst_243 {dimension_numbers = #tpu.dot_dimension_numbers<[1], [0], [0], [1], [0, 0, 1, 1], [], []>} : vector<8x256xbf16>, vector<256x32xbf16>, vector<8x32xf32> -> vector<8x32xf32>
    %673 = arith.addf %664, %672 : vector<8x32xf32>
    %cst_244 = arith.constant 4.600000e+01 : f32
    %674 = vector.broadcast %cst_244 : f32 to vector<8x256xf32>
    %675 = arith.cmpf oeq, %258, %674 : vector<8x256xf32>
    %676 = arith.extui %675 : vector<8x256xi1> to vector<8x256xi32>
    %677 = arith.sitofp %676 : vector<8x256xi32> to vector<8x256xf32>
    %678 = arith.truncf %677 : vector<8x256xf32> to vector<8x256xbf16>
    %c46 = arith.constant 46 : index
    %c0_245 = arith.constant 0 : index
    %c0_246 = arith.constant 0 : index
    %679 = vector.load %arg4[%c46, %c0_245, %c0_246] : memref<51x256x32xbf16, #tpu.memory_space<vmem>>, vector<1x256x32xbf16>
    %680 = vector.shape_cast %679 : vector<1x256x32xbf16> to vector<256x32xbf16>
    %cst_247 = arith.constant dense<0.000000e+00> : vector<8x32xf32>
    %681 = tpu.matmul %678, %680, %cst_247 {dimension_numbers = #tpu.dot_dimension_numbers<[1], [0], [0], [1], [0, 0, 1, 1], [], []>} : vector<8x256xbf16>, vector<256x32xbf16>, vector<8x32xf32> -> vector<8x32xf32>
    %682 = arith.addf %673, %681 : vector<8x32xf32>
    %cst_248 = arith.constant 4.700000e+01 : f32
    %683 = vector.broadcast %cst_248 : f32 to vector<8x256xf32>
    %684 = arith.cmpf oeq, %258, %683 : vector<8x256xf32>
    %685 = arith.extui %684 : vector<8x256xi1> to vector<8x256xi32>
    %686 = arith.sitofp %685 : vector<8x256xi32> to vector<8x256xf32>
    %687 = arith.truncf %686 : vector<8x256xf32> to vector<8x256xbf16>
    %c47 = arith.constant 47 : index
    %c0_249 = arith.constant 0 : index
    %c0_250 = arith.constant 0 : index
    %688 = vector.load %arg4[%c47, %c0_249, %c0_250] : memref<51x256x32xbf16, #tpu.memory_space<vmem>>, vector<1x256x32xbf16>
    %689 = vector.shape_cast %688 : vector<1x256x32xbf16> to vector<256x32xbf16>
    %cst_251 = arith.constant dense<0.000000e+00> : vector<8x32xf32>
    %690 = tpu.matmul %687, %689, %cst_251 {dimension_numbers = #tpu.dot_dimension_numbers<[1], [0], [0], [1], [0, 0, 1, 1], [], []>} : vector<8x256xbf16>, vector<256x32xbf16>, vector<8x32xf32> -> vector<8x32xf32>
    %691 = arith.addf %682, %690 : vector<8x32xf32>
    %cst_252 = arith.constant 4.800000e+01 : f32
    %692 = vector.broadcast %cst_252 : f32 to vector<8x256xf32>
    %693 = arith.cmpf oeq, %258, %692 : vector<8x256xf32>
    %694 = arith.extui %693 : vector<8x256xi1> to vector<8x256xi32>
    %695 = arith.sitofp %694 : vector<8x256xi32> to vector<8x256xf32>
    %696 = arith.truncf %695 : vector<8x256xf32> to vector<8x256xbf16>
    %c48 = arith.constant 48 : index
    %c0_253 = arith.constant 0 : index
    %c0_254 = arith.constant 0 : index
    %697 = vector.load %arg4[%c48, %c0_253, %c0_254] : memref<51x256x32xbf16, #tpu.memory_space<vmem>>, vector<1x256x32xbf16>
    %698 = vector.shape_cast %697 : vector<1x256x32xbf16> to vector<256x32xbf16>
    %cst_255 = arith.constant dense<0.000000e+00> : vector<8x32xf32>
    %699 = tpu.matmul %696, %698, %cst_255 {dimension_numbers = #tpu.dot_dimension_numbers<[1], [0], [0], [1], [0, 0, 1, 1], [], []>} : vector<8x256xbf16>, vector<256x32xbf16>, vector<8x32xf32> -> vector<8x32xf32>
    %700 = arith.addf %691, %699 : vector<8x32xf32>
    %cst_256 = arith.constant 4.900000e+01 : f32
    %701 = vector.broadcast %cst_256 : f32 to vector<8x256xf32>
    %702 = arith.cmpf oeq, %258, %701 : vector<8x256xf32>
    %703 = arith.extui %702 : vector<8x256xi1> to vector<8x256xi32>
    %704 = arith.sitofp %703 : vector<8x256xi32> to vector<8x256xf32>
    %705 = arith.truncf %704 : vector<8x256xf32> to vector<8x256xbf16>
    %c49 = arith.constant 49 : index
    %c0_257 = arith.constant 0 : index
    %c0_258 = arith.constant 0 : index
    %706 = vector.load %arg4[%c49, %c0_257, %c0_258] : memref<51x256x32xbf16, #tpu.memory_space<vmem>>, vector<1x256x32xbf16>
    %707 = vector.shape_cast %706 : vector<1x256x32xbf16> to vector<256x32xbf16>
    %cst_259 = arith.constant dense<0.000000e+00> : vector<8x32xf32>
    %708 = tpu.matmul %705, %707, %cst_259 {dimension_numbers = #tpu.dot_dimension_numbers<[1], [0], [0], [1], [0, 0, 1, 1], [], []>} : vector<8x256xbf16>, vector<256x32xbf16>, vector<8x32xf32> -> vector<8x32xf32>
    %709 = arith.addf %700, %708 : vector<8x32xf32>
    %cst_260 = arith.constant 5.000000e+01 : f32
    %710 = vector.broadcast %cst_260 : f32 to vector<8x256xf32>
    %711 = arith.cmpf oeq, %258, %710 : vector<8x256xf32>
    %712 = arith.extui %711 : vector<8x256xi1> to vector<8x256xi32>
    %713 = arith.sitofp %712 : vector<8x256xi32> to vector<8x256xf32>
    %714 = arith.truncf %713 : vector<8x256xf32> to vector<8x256xbf16>
    %c50 = arith.constant 50 : index
    %c0_261 = arith.constant 0 : index
    %c0_262 = arith.constant 0 : index
    %715 = vector.load %arg4[%c50, %c0_261, %c0_262] : memref<51x256x32xbf16, #tpu.memory_space<vmem>>, vector<1x256x32xbf16>
    %716 = vector.shape_cast %715 : vector<1x256x32xbf16> to vector<256x32xbf16>
    %cst_263 = arith.constant dense<0.000000e+00> : vector<8x32xf32>
    %717 = tpu.matmul %714, %716, %cst_263 {dimension_numbers = #tpu.dot_dimension_numbers<[1], [0], [0], [1], [0, 0, 1, 1], [], []>} : vector<8x256xbf16>, vector<256x32xbf16>, vector<8x32xf32> -> vector<8x32xf32>
    %718 = arith.addf %709, %717 : vector<8x32xf32>
    %c0_264 = arith.constant 0 : index
    %c0_265 = arith.constant 0 : index
    %719 = vector.load %arg5[%c0_264, %c0_265] : memref<1x32xf32, #tpu.memory_space<vmem>>, vector<1x32xf32>
    %720 = vector.broadcast %719 : vector<1x32xf32> to vector<8x32xf32>
    %721 = arith.addf %718, %720 : vector<8x32xf32>
    %cst_266 = arith.constant 0.000000e+00 : f32
    %722 = vector.broadcast %cst_266 : f32 to vector<8x32xf32>
    %723 = arith.maximumf %721, %722 : vector<8x32xf32>
    %c0_267 = arith.constant 0 : index
    %c0_268 = arith.constant 0 : index
    %724 = vector.load %arg6[%c0_267, %c0_268] : memref<8x32xf32, #tpu.memory_space<vmem>>, vector<8x32xf32>
    tpu.vector_store %arg6[%c0_267, %c0_268], %723 {strides = array<i32>} : memref<8x32xf32, #tpu.memory_space<vmem>>, vector<8x32xf32>,
    return
  }
  func.func @transform_0(%arg0: i32) -> (i32, i32) {
    %c0_i32 = arith.constant 0 : i32
    %c0_i32_0 = arith.constant 0 : i32
    return %arg0, %c0_i32 : i32, i32
  }
  func.func @transform_1(%arg0: i32) -> (i32, i32) {
    %c0_i32 = arith.constant 0 : i32
    %c0_i32_0 = arith.constant 0 : i32
    return %arg0, %c0_i32 : i32, i32
  }
  func.func @transform_2(%arg0: i32) -> (i32, i32) {
    %c0_i32 = arith.constant 0 : i32
    %c0_i32_0 = arith.constant 0 : i32
    %c0_i32_1 = arith.constant 0 : i32
    return %c0_i32, %c0_i32_0 : i32, i32
  }
  func.func @transform_3(%arg0: i32) -> (i32, i32, i32) {
    %c0_i32 = arith.constant 0 : i32
    %c0_i32_0 = arith.constant 0 : i32
    %c0_i32_1 = arith.constant 0 : i32
    %c0_i32_2 = arith.constant 0 : i32
    return %c0_i32, %c0_i32_0, %c0_i32_1 : i32, i32, i32
  }
  func.func @transform_4(%arg0: i32) -> (i32, i32) {
    %c0_i32 = arith.constant 0 : i32
    %c0_i32_0 = arith.constant 0 : i32
    %c0_i32_1 = arith.constant 0 : i32
    return %c0_i32, %c0_i32_0 : i32, i32
  }
  func.func @transform_5(%arg0: i32) -> (i32, i32) {
    %c0_i32 = arith.constant 0 : i32
    %c0_i32_0 = arith.constant 0 : i32
    return %arg0, %c0_i32 : i32, i32
  }
}

</mosaic_0001>

<bundles_post_ra>
// kernel: tpu_custom_call.1
= control target key start
LH: loop header
LB: loop body
LE: loop exit
PB: predicated region body
PF: predicated region fallthrough
CT: control target
= control target key end

     0   :  { %vm435_vm0 = vcmask 1046528   ;;  %v14384_v2 = vmov 0   ;;  %vm431_vm1 = vcmask 113664   ;;  %v14385_v7 = vmov 0.0   ;;  %s17786_s0 = inlined_call_operand.vmem [shape: f32[8,256], index: 0, kind: input, shape index: {}]   ;;  %s17787_s1 = inlined_call_operand.vmem [shape: f32[8,14], index: 1, kind: input, shape index: {}]   ;;  %s17788_s2 = inlined_call_operand.vmem [shape: bf16[14,256], index: 2, kind: input, shape index: {}]   ;;  %s17789_s3 = inlined_call_operand.vmem [shape: bf16[51,256,32], index: 3, kind: input, shape index: {}]   ;;  %s17790_s4 = inlined_call_operand.vmem [shape: f32[1,32], index: 4, kind: input, shape index: {}]   ;;  %s17791_s5 = inlined_call_operand.hbm [shape: f32[8,32], index: 5, kind: output, shape index: {}]  }
   0x1   :  { %v13539_v0 = vld [vmem:[%s17788_s2 + $0x4] ss:$8 sps:$4 sm:$0x7f]   ;;  %v13541_v1 = vld [vmem:[%s17788_s2] ss:$8 sps:$4 sm:$0x7f]   ;;  %474 = vmatprep.mubr.bf16.mxu0 %v14384_v2 }
   0x2   :  { %9688 = vmatprep.subr.msk.bf16.mxu0 %vm435_vm0, %v13539_v0  ;;  %v416_v3 = vld [vmem:[%s17787_s1] sm:$0xff]  ;;  %v437_v4 = vsel %vm435_vm0, %v13541_v1, 0  ;;  %v13546_v12 = vld [vmem:[%s17789_s3 + $0xc8] sm:$0xff]   ;;  %v13550_v16 = vld [vmem:[%s17789_s3 + $0xd0] sm:$0xff]  }
   0x3   :  { %vm417_vm2 = vcmp.ne.f32.partialorder %v416_v3, 0.0  ;;  %v13542_v5 = vld [vmem:[%s17789_s3 + $0xc0] sm:$0xff]   ;;  %443 = vmatpush1.bf16.msra.mxu0 %v437_v4  ;;  %v13547_v13 = vld [vmem:[%s17789_s3 + $0x48] sm:$0xff]   ;;  %v13551_v17 = vld [vmem:[%s17789_s3 + $0x50] sm:$0xff]  }
   0x4   :  { %v13543_v6 = vld [vmem:[%s17789_s3 + $0x40] sm:$0xff]   ;;  %v9685_v8 = vsel %vm417_vm2, 1.0, %v14385_v7  ;;  %12413 = vmatprep.subr.bf16.mxu1 %v13542_v5  ;;  %v13548_v14 = vld [vmem:[%s17789_s3 + $0x88] sm:$0xff]   ;;  %v13552_v18 = vld [vmem:[%s17789_s3 + $0x90] sm:$0xff]  }
   0x5   :  { %v13544_v9 = vld [vmem:[%s17789_s3 + $0x80] sm:$0xff]   ;;  %v420_v10 = vpack.c.bf16 %v9685_v8, %v9685_v8  ;;  %12435 = vmatprep.subr.bf16.mxu0 %v13543_v6  ;;  %v13549_v15 = vld [vmem:[%s17789_s3 + $0x8] sm:$0xff]   ;;  %v13553_v19 = vld [vmem:[%s17789_s3 + $0x10] sm:$0xff]  }
   0x6   :  { %12414 = vmatpush3.bf16.msra.mxu1 %v13544_v9  ;;  %v13545_v11 = vld [vmem:[%s17789_s3] sm:$0xff]   ;;  %v13554_v20 = vld [vmem:[%s17789_s3 + $0xd8] sm:$0xff]   ;;  %v13562_v28 = vld [vmem:[%s17789_s3 + $0xe8] sm:$0xff]  }
   0x7   :  { %9689 = vmatmul.mubr.msk.bf16.vlgmr.msra.gmra.mrb[0].mxu0 %vm431_vm1, %v420_v10  ;;  %12415 = vmatprep.subr.bf16.mxu1 %v13546_v12  ;;  %v13555_v21 = vld [vmem:[%s17789_s3 + $0x58] sm:$0xff]   ;;  %v13558_v24 = vld [vmem:[%s17789_s3 + $0xe0] sm:$0xff]   ;;  %v13563_v29 = vld [vmem:[%s17789_s3 + $0x68] sm:$0xff]  }
   0x8   :  { %12436 = vmatpush3.bf16.msra.mxu0 %v13545_v11  ;;  %v13556_v22 = vld [vmem:[%s17789_s3 + $0x98] sm:$0xff]   ;;  %v13559_v25 = vld [vmem:[%s17789_s3 + $0x60] sm:$0xff]   ;;  %v13564_v30 = vld [vmem:[%s17789_s3 + $0xa8] sm:$0xff]  }
   0x9   :  { %12437 = vmatprep.subr.bf16.mxu0 %v13547_v13  ;;  %v13557_v23 = vld [vmem:[%s17789_s3 + $0x18] sm:$0xff]   ;;  %v13560_v26 = vld [vmem:[%s17789_s3 + $0xa0] sm:$0xff]   ;;  %v13565_v31 = vld [vmem:[%s17789_s3 + $0x28] sm:$0xff]  }
   0xa   :  { %12416 = vmatpush3.bf16.msra.mxu1 %v13548_v14  ;;  %v13561_v27 = vld [vmem:[%s17789_s3 + $0x20] sm:$0xff]   ;;  %v13566_v32 = vld [vmem:[%s17789_s3 + $0xf0] sm:$0xff]   ;;  %v14539_v54 = vld [vmem:[%s17786_s0 + $0x8] sm:$0xff] }
   0xb   :  { %12417 = vmatprep.subr.bf16.mxu1 %v13550_v16  ;;  %v13567_v33 = vld [vmem:[%s17789_s3 + $0x70] sm:$0xff]   ;;  %v14515_v36 = vld [vmem:[%s17786_s0] sm:$0xff]  ;;  %vm25_vm14 = vcmp.ge.f32.partialorder %v14539_v54, 0.0  ;;  %vm33_vm15 = vcmp.ge.f32.partialorder %v14539_v54, 50.0  ;;  %vm41_vm0 = vcmp.ge.f32.partialorder %v14539_v54, 100.0  ;;  %vm49_vm1 = vcmp.ge.f32.partialorder %v14539_v54, 150.0 }
   0xc   :  { %12438 = vmatpush3.bf16.msra.mxu0 %v13549_v15  ;;  %v13568_v34 = vld [vmem:[%s17789_s3 + $0xb0] sm:$0xff]   ;;  %vm24_vm3 = vcmp.ge.f32.partialorder %v14515_v36, 0.0  ;;  %vm32_vm4 = vcmp.ge.f32.partialorder %v14515_v36, 50.0  ;;  %vm40_vm5 = vcmp.ge.f32.partialorder %v14515_v36, 100.0  ;;  %vm48_vm6 = vcmp.ge.f32.partialorder %v14515_v36, 150.0 }
   0xd   :  { %12439 = vmatprep.subr.bf16.mxu0 %v13551_v17  ;;  %v13569_v35 = vld [vmem:[%s17789_s3 + $0x30] sm:$0xff]   ;;  %v9587_v37 = vsel %vm24_vm3, 1.0, %v14385_v7  ;;  %v9589_v38 = vsel %vm32_vm4, 1.0, %v14385_v7  ;;  %v9591_v39 = vsel %vm40_vm5, 1.0, %v14385_v7  ;;  %vm56_vm7 = vcmp.ge.f32.partialorder %v14515_v36, 200.0 }
   0xe   :  { %12418 = vmatpush3.bf16.msra.mxu1 %v13552_v18  ;;  %v38_v40 = vadd.f32 %v9589_v38, %v9587_v37  ;;  %v9593_v41 = vsel %vm48_vm6, 1.0, %v14385_v7  ;;  %v9595_v43 = vsel %vm56_vm7, 1.0, %v14385_v7  ;;  %vm64_vm8 = vcmp.ge.f32.partialorder %v14515_v36, 250.0 }
   0xf   :  { %12419 = vmatprep.subr.bf16.mxu1 %v13554_v20  ;;  %v9597_v46 = vsel %vm64_vm8, 1.0, %v14385_v7  ;;  %vm72_vm9 = vcmp.ge.f32.partialorder %v14515_v36, 300.0  ;;  %vm80_vm10 = vcmp.ge.f32.partialorder %v14515_v36, 350.0  ;;  %vm88_vm11 = vcmp.ge.f32.partialorder %v14515_v36, 400.0 }
  0x10   :  { %12440 = vmatpush3.bf16.msra.mxu0 %v13553_v19  ;;  %v46_v42 = vadd.f32 %v9591_v39, %v38_v40  ;;  %v9599_v48 = vsel %vm72_vm9, 1.0, %v14385_v7  ;;  %v9601_v50 = vsel %vm80_vm10, 1.0, %v14385_v7  ;;  %v9603_v52 = vsel %vm88_vm11, 1.0, %v14385_v7 }
  0x11   :  { %12441 = vmatprep.subr.bf16.mxu0 %v13555_v21  ;;  %vm96_vm12 = vcmp.ge.f32.partialorder %v14515_v36, 450.0  ;;  %vm104_vm13 = vcmp.ge.f32.partialorder %v14515_v36, 500.0  ;;  %v9588_v57 = vsel %vm25_vm14, 1.0, %v14385_v7  ;;  %v9590_v58 = vsel %vm33_vm15, 1.0, %v14385_v7 }
  0x12   :  { %12420 = vmatpush3.bf16.msra.mxu1 %v13556_v22  ;;  %v54_v44 = vadd.f32 %v9593_v41, %v46_v42  ;;  %v9605_v55 = vsel %vm96_vm12, 1.0, %v14385_v7  ;;  %v39_v59 = vadd.f32 %v9590_v58, %v9588_v57  ;;  %vm57_vm2 = vcmp.ge.f32.partialorder %v14539_v54, 200.0 }
  0x13   :  { %12421 = vmatprep.subr.bf16.mxu1 %v13558_v24  ;;  %v9607_v60 = vsel %vm104_vm13, 1.0, %v14385_v7  ;;  %v9592_v61 = vsel %vm41_vm0, 1.0, %v14385_v7  ;;  %v9594_v62 = vsel %vm49_vm1, 1.0, %v14385_v7  ;;  %vm112_vm3 = vcmp.ge.f32.partialorder %v14515_v36, 550.0 }
  0x14   :  { %12442 = vmatpush3.bf16.msra.mxu0 %v13557_v23  ;;  %v62_v45 = vadd.f32 %v9595_v43, %v54_v44  ;;  %v47_v63 = vadd.f32 %v9592_v61, %v39_v59  ;;  %vm65_vm4 = vcmp.ge.f32.partialorder %v14539_v54, 250.0  ;;  %v9596_v0 = vsel %vm57_vm2, 1.0, %v14385_v7  ;;  %v13570_v44 = vld [vmem:[%s17789_s3 + $0xf8] sm:$0xff]  }
  0x15   :  { %12443 = vmatprep.subr.bf16.mxu0 %v13559_v25  ;;  %vm73_vm5 = vcmp.ge.f32.partialorder %v14539_v54, 300.0  ;;  %v9609_v3 = vsel %vm112_vm3, 1.0, %v14385_v7  ;;  %v9598_v4 = vsel %vm65_vm4, 1.0, %v14385_v7  ;;  %vm120_vm6 = vcmp.ge.f32.partialorder %v14515_v36, 600.0 }
  0x16   :  { %12422 = vmatpush3.bf16.msra.mxu1 %v13560_v26  ;;  %v70_v47 = vadd.f32 %v9597_v46, %v62_v45  ;;  %v55_v2 = vadd.f32 %v9594_v62, %v47_v63  ;;  %vm81_vm7 = vcmp.ge.f32.partialorder %v14539_v54, 350.0  ;;  %v9600_v6 = vsel %vm73_vm5, 1.0, %v14385_v7  ;;  %v13571_v45 = vld [vmem:[%s17789_s3 + $0x78] sm:$0xff]  }
  0x17   :  { %12423 = vmatprep.subr.bf16.mxu1 %v13562_v28  ;;  %vm89_vm8 = vcmp.ge.f32.partialorder %v14539_v54, 400.0  ;;  %v9611_v10 = vsel %vm120_vm6, 1.0, %v14385_v7  ;;  %v9602_v11 = vsel %vm81_vm7, 1.0, %v14385_v7  ;;  %vm128_vm9 = vcmp.ge.f32.partialorder %v14515_v36, 650.0 }
  0x18   :  { %12444 = vmatpush3.bf16.msra.mxu0 %v13561_v27  ;;  %v78_v49 = vadd.f32 %v9599_v48, %v70_v47  ;;  %v63_v5 = vadd.f32 %v9596_v0, %v55_v2  ;;  %vm97_vm10 = vcmp.ge.f32.partialorder %v14539_v54, 450.0  ;;  %v9604_v13 = vsel %vm89_vm8, 1.0, %v14385_v7  ;;  %v13572_v48 = vld [vmem:[%s17789_s3 + $0xb8] sm:$0xff]  }
  0x19   :  { %12445 = vmatprep.subr.bf16.mxu0 %v13563_v29  ;;  %vm105_vm11 = vcmp.ge.f32.partialorder %v14539_v54, 500.0  ;;  %v9613_v16 = vsel %vm128_vm9, 1.0, %v14385_v7  ;;  %v9606_v17 = vsel %vm97_vm10, 1.0, %v14385_v7  ;;  %vm136_vm12 = vcmp.ge.f32.partialorder %v14515_v36, 700.0 }
  0x1a   :  { %12424 = vmatpush3.bf16.msra.mxu1 %v13564_v30  ;;  %v86_v51 = vadd.f32 %v9601_v50, %v78_v49  ;;  %v71_v9 = vadd.f32 %v9598_v4, %v63_v5  ;;  %vm113_vm13 = vcmp.ge.f32.partialorder %v14539_v54, 550.0  ;;  %v9608_v19 = vsel %vm105_vm11, 1.0, %v14385_v7  ;;  %v13573_v49 = vld [vmem:[%s17789_s3 + $0x38] sm:$0xff]  }
  0x1b   :  { %12425 = vmatprep.subr.bf16.mxu1 %v13566_v32  ;;  %vm121_vm14 = vcmp.ge.f32.partialorder %v14539_v54, 600.0  ;;  %v9615_v22 = vsel %vm136_vm12, 1.0, %v14385_v7  ;;  %v9610_v23 = vsel %vm113_vm13, 1.0, %v14385_v7  ;;  %vm144_vm15 = vcmp.ge.f32.partialorder %v14515_v36, 750.0 }
  0x1c   :  { %12446 = vmatpush3.bf16.msra.mxu0 %v13565_v31  ;;  %v94_v53 = vadd.f32 %v9603_v52, %v86_v51  ;;  %v79_v12 = vadd.f32 %v9600_v6, %v71_v9  ;;  %vm129_vm0 = vcmp.ge.f32.partialorder %v14539_v54, 650.0  ;;  %v9612_v25 = vsel %vm121_vm14, 1.0, %v14385_v7 }
  0x1d   :  { %12447 = vmatprep.subr.bf16.mxu0 %v13567_v33  ;;  %vm137_vm1 = vcmp.ge.f32.partialorder %v14539_v54, 700.0  ;;  %v9617_v28 = vsel %vm144_vm15, 1.0, %v14385_v7  ;;  %v9614_v29 = vsel %vm129_vm0, 1.0, %v14385_v7  ;;  %vm152_vm2 = vcmp.ge.f32.partialorder %v14515_v36, 800.0 }
  0x1e   :  { %12426 = vmatpush3.bf16.msra.mxu1 %v13568_v34  ;;  %v102_v56 = vadd.f32 %v9605_v55, %v94_v53  ;;  %v87_v15 = vadd.f32 %v9602_v11, %v79_v12  ;;  %vm145_vm3 = vcmp.ge.f32.partialorder %v14539_v54, 750.0  ;;  %v9616_v31 = vsel %vm137_vm1, 1.0, %v14385_v7  ;;  %v13574_v53 = vld [vmem:[%s17789_s3 + $0x140] sm:$0xff]  }
  0x1f   :  { %vm153_vm4 = vcmp.ge.f32.partialorder %v14539_v54, 800.0  ;;  %v9619_v34 = vsel %vm152_vm2, 1.0, %v14385_v7  ;;  %vm160_vm5 = vcmp.ge.f32.partialorder %v14515_v36, 850.0  ;;  %vm161_vm6 = vcmp.ge.f32.partialorder %v14539_v54, 850.0  ;;  %12427 = vmatprep.subr.bf16.mxu1 %v13570_v44  ;;  %v13575_v55 = vld [vmem:[%s17789_s3 + $0x1c0] sm:$0xff]  }
  0x20   :  { %12448 = vmatpush3.bf16.msra.mxu0 %v13569_v35  ;;  %v110_v1 = vadd.f32 %v9607_v60, %v102_v56  ;;  %v95_v18 = vadd.f32 %v9604_v13, %v87_v15  ;;  %v9618_v35 = vsel %vm145_vm3, 1.0, %v14385_v7  ;;  %v9620_v38 = vsel %vm153_vm4, 1.0, %v14385_v7 }
  0x21   :  { %vm168_vm7 = vcmp.ge.f32.partialorder %v14515_v36, 900.0  ;;  %vm169_vm8 = vcmp.ge.f32.partialorder %v14539_v54, 900.0  ;;  %v9621_v41 = vsel %vm160_vm5, 1.0, %v14385_v7  ;;  %vm176_vm9 = vcmp.ge.f32.partialorder %v14515_v36, 950.0  ;;  %12449 = vmatprep.subr.bf16.mxu0 %v13571_v45 }
  0x22   :  { %v118_v8 = vadd.f32 %v9609_v3, %v110_v1  ;;  %v103_v21 = vadd.f32 %v9606_v17, %v95_v18  ;;  %v9622_v43 = vsel %vm161_vm6, 1.0, %v14385_v7  ;;  %v9623_v46 = vsel %vm168_vm7, 1.0, %v14385_v7  ;;  %12428 = vmatpush3.bf16.msra.mxu1 %v13572_v48 }
  0x23   :  { %v9624_v47 = vsel %vm169_vm8, 1.0, %v14385_v7  ;;  %v9625_v52 = vsel %vm176_vm9, 1.0, %v14385_v7  ;;  %vm177_vm10 = vcmp.ge.f32.partialorder %v14539_v54, 950.0  ;;  %12457 = vmatprep.subr.bf16.mxu1 %v13574_v53  ;;  %vm184_vm11 = vcmp.ge.f32.partialorder %v14515_v36, 1000.0 }
  0x24   :  { %v126_v14 = vadd.f32 %v9611_v10, %v118_v8  ;;  %v111_v24 = vadd.f32 %v9608_v19, %v103_v21  ;;  %12450 = vmatpush3.bf16.msra.mxu0 %v13573_v49  ;;  %v9626_v58 = vsel %vm177_vm10, 1.0, %v14385_v7  ;;  %vm185_vm12 = vcmp.ge.f32.partialorder %v14539_v54, 1000.0 }
  0x25   :  { %12479 = vmatprep.subr.bf16.mxu0 %v13575_v55  ;;  %v9627_v60 = vsel %vm184_vm11, 1.0, %v14385_v7  ;;  %vm192_vm13 = vcmp.ge.f32.partialorder %v14515_v36, 1050.0  ;;  %v9628_v62 = vsel %vm185_vm12, 1.0, %v14385_v7  ;;  %vm193_vm14 = vcmp.ge.f32.partialorder %v14539_v54, 1050.0 }
  0x26   :  { %v134_v20 = vadd.f32 %v9613_v16, %v126_v14  ;;  %v119_v27 = vadd.f32 %v9610_v23, %v111_v24  ;;  %v9629_v0 = vsel %vm192_vm13, 1.0, %v14385_v7  ;;  %vm200_vm15 = vcmp.ge.f32.partialorder %v14515_v36, 1100.0 }
  0x27   :  { %v9630_v2 = vsel %vm193_vm14, 1.0, %v14385_v7  ;;  %vm201_vm0 = vcmp.ge.f32.partialorder %v14539_v54, 1100.0  ;;  %v9631_v4 = vsel %vm200_vm15, 1.0, %v14385_v7  ;;  %vm208_vm1 = vcmp.ge.f32.partialorder %v14515_v36, 1150.0 }
  0x28   :  { %v142_v26 = vadd.f32 %v9615_v22, %v134_v20  ;;  %v127_v30 = vadd.f32 %v9612_v25, %v119_v27  ;;  %v9632_v6 = vsel %vm201_vm0, 1.0, %v14385_v7  ;;  %vm209_vm2 = vcmp.ge.f32.partialorder %v14539_v54, 1150.0 }
  0x29   :  { %v9633_v9 = vsel %vm208_vm1, 1.0, %v14385_v7  ;;  %vm216_vm3 = vcmp.ge.f32.partialorder %v14515_v36, 1200.0  ;;  %v9634_v11 = vsel %vm209_vm2, 1.0, %v14385_v7  ;;  %vm217_vm4 = vcmp.ge.f32.partialorder %v14539_v54, 1200.0 }
  0x2a   :  { %v150_v32 = vadd.f32 %v9617_v28, %v142_v26  ;;  %v135_v33 = vadd.f32 %v9614_v29, %v127_v30  ;;  %v9635_v13 = vsel %vm216_vm3, 1.0, %v14385_v7  ;;  %vm224_vm5 = vcmp.ge.f32.partialorder %v14515_v36, 1250.0 }
  0x2b   :  { %v9636_v15 = vsel %vm217_vm4, 1.0, %v14385_v7  ;;  %vm232_vm6 = vcmp.ge.f32.partialorder %v14515_v36, 1300.0  ;;  %vm225_vm7 = vcmp.ge.f32.partialorder %v14539_v54, 1250.0  ;;  %v9637_v17 = vsel %vm224_vm5, 1.0, %v14385_v7 }
  0x2c   :  { %v143_v37 = vadd.f32 %v9616_v31, %v135_v33  ;;  %v158_v39 = vadd.f32 %v9619_v34, %v150_v32  ;;  %vm240_vm8 = vcmp.ge.f32.partialorder %v14515_v36, 1350.0  ;;  %v9638_v19 = vsel %vm225_vm7, 1.0, %v14385_v7 }
  0x2d   :  { %vm233_vm9 = vcmp.ge.f32.partialorder %v14539_v54, 1300.0  ;;  %v9639_v21 = vsel %vm232_vm6, 1.0, %v14385_v7  ;;  %v9641_v22 = vsel %vm240_vm8, 1.0, %v14385_v7  ;;  %vm241_vm10 = vcmp.ge.f32.partialorder %v14539_v54, 1350.0 }
  0x2e   :  { %v151_v40 = vadd.f32 %v9618_v35, %v143_v37  ;;  %v166_v50 = vadd.f32 %v9621_v41, %v158_v39  ;;  %v9640_v24 = vsel %vm233_vm9, 1.0, %v14385_v7  ;;  %vm248_vm11 = vcmp.ge.f32.partialorder %v14515_v36, 1400.0 }
  0x2f   :  { %v9642_v27 = vsel %vm241_vm10, 1.0, %v14385_v7  ;;  %vm249_vm12 = vcmp.ge.f32.partialorder %v14539_v54, 1400.0  ;;  %v9643_v29 = vsel %vm248_vm11, 1.0, %v14385_v7  ;;  %vm256_vm13 = vcmp.ge.f32.partialorder %v14515_v36, 1450.0 }
  0x30   :  { %v159_v42 = vadd.f32 %v9620_v38, %v151_v40  ;;  %v174_v56 = vadd.f32 %v9623_v46, %v166_v50  ;;  %v9644_v31 = vsel %vm249_vm12, 1.0, %v14385_v7  ;;  %vm257_vm14 = vcmp.ge.f32.partialorder %v14539_v54, 1450.0 }
  0x31   :  { %v9645_v33 = vsel %vm256_vm13, 1.0, %v14385_v7  ;;  %vm264_vm15 = vcmp.ge.f32.partialorder %v14515_v36, 1500.0  ;;  %v9646_v35 = vsel %vm257_vm14, 1.0, %v14385_v7  ;;  %vm265_vm0 = vcmp.ge.f32.partialorder %v14539_v54, 1500.0 }
  0x32   :  { %v167_v51 = vadd.f32 %v9622_v43, %v159_v42  ;;  %v182_v59 = vadd.f32 %v9625_v52, %v174_v56  ;;  %v9647_v38 = vsel %vm264_vm15, 1.0, %v14385_v7  ;;  %vm272_vm1 = vcmp.ge.f32.partialorder %v14515_v36, 1550.0 }
  0x33   :  { %v9648_v40 = vsel %vm265_vm0, 1.0, %v14385_v7  ;;  %vm273_vm2 = vcmp.ge.f32.partialorder %v14539_v54, 1550.0  ;;  %v9649_v42 = vsel %vm272_vm1, 1.0, %v14385_v7  ;;  %vm280_vm3 = vcmp.ge.f32.partialorder %v14515_v36, 1600.0 }
  0x34   :  { %v175_v57 = vadd.f32 %v9624_v47, %v167_v51  ;;  %v190_v63 = vadd.f32 %v9627_v60, %v182_v59  ;;  %v9650_v44 = vsel %vm273_vm2, 1.0, %v14385_v7  ;;  %vm281_vm4 = vcmp.ge.f32.partialorder %v14539_v54, 1600.0 }
  0x35   :  { %v9651_v46 = vsel %vm280_vm3, 1.0, %v14385_v7  ;;  %vm288_vm5 = vcmp.ge.f32.partialorder %v14515_v36, 1650.0  ;;  %v9652_v48 = vsel %vm281_vm4, 1.0, %v14385_v7  ;;  %vm289_vm6 = vcmp.ge.f32.partialorder %v14539_v54, 1650.0 }
  0x36   :  { %v183_v61 = vadd.f32 %v9626_v58, %v175_v57  ;;  %v198_v3 = vadd.f32 %v9629_v0, %v190_v63  ;;  %v9653_v49 = vsel %vm288_vm5, 1.0, %v14385_v7  ;;  %vm296_vm7 = vcmp.ge.f32.partialorder %v14515_v36, 1700.0 }
  0x37   :  { %vm304_vm8 = vcmp.ge.f32.partialorder %v14515_v36, 1750.0  ;;  %v9654_v52 = vsel %vm289_vm6, 1.0, %v14385_v7  ;;  %vm297_vm9 = vcmp.ge.f32.partialorder %v14539_v54, 1700.0  ;;  %v9655_v55 = vsel %vm296_vm7, 1.0, %v14385_v7 }
  0x38   :  { %v191_v1 = vadd.f32 %v9628_v62, %v183_v61  ;;  %v206_v8 = vadd.f32 %v9631_v4, %v198_v3  ;;  %v9657_v56 = vsel %vm304_vm8, 1.0, %v14385_v7  ;;  %v9656_v58 = vsel %vm297_vm9, 1.0, %v14385_v7 }
  0x39   :  { %vm305_vm10 = vcmp.ge.f32.partialorder %v14539_v54, 1750.0  ;;  %vm312_vm11 = vcmp.ge.f32.partialorder %v14515_v36, 1800.0  ;;  %vm313_vm12 = vcmp.ge.f32.partialorder %v14539_v54, 1800.0  ;;  %vm320_vm13 = vcmp.ge.f32.partialorder %v14515_v36, 1850.0 }
  0x3a   :  { %v199_v5 = vadd.f32 %v9630_v2, %v191_v1  ;;  %v214_v12 = vadd.f32 %v9633_v9, %v206_v8  ;;  %v9658_v61 = vsel %vm305_vm10, 1.0, %v14385_v7  ;;  %v9659_v63 = vsel %vm312_vm11, 1.0, %v14385_v7 }
  0x3b   :  { %v9660_v1 = vsel %vm313_vm12, 1.0, %v14385_v7  ;;  %vm321_vm14 = vcmp.ge.f32.partialorder %v14539_v54, 1850.0  ;;  %v9661_v3 = vsel %vm320_vm13, 1.0, %v14385_v7  ;;  %vm328_vm15 = vcmp.ge.f32.partialorder %v14515_v36, 1900.0 }
  0x3c   :  { %v207_v10 = vadd.f32 %v9632_v6, %v199_v5  ;;  %v222_v16 = vadd.f32 %v9635_v13, %v214_v12  ;;  %v9662_v5 = vsel %vm321_vm14, 1.0, %v14385_v7  ;;  %vm329_vm0 = vcmp.ge.f32.partialorder %v14539_v54, 1900.0 }
  0x3d   :  { %v9663_v8 = vsel %vm328_vm15, 1.0, %v14385_v7  ;;  %vm336_vm1 = vcmp.ge.f32.partialorder %v14515_v36, 1950.0  ;;  %vm337_vm2 = vcmp.ge.f32.partialorder %v14539_v54, 1950.0  ;;  %vm344_vm3 = vcmp.ge.f32.partialorder %v14515_v36, 2000.0 }
  0x3e   :  { %v215_v14 = vadd.f32 %v9634_v11, %v207_v10  ;;  %v230_v20 = vadd.f32 %v9637_v17, %v222_v16  ;;  %v9664_v10 = vsel %vm329_vm0, 1.0, %v14385_v7  ;;  %v9665_v12 = vsel %vm336_vm1, 1.0, %v14385_v7 }
  0x3f   :  { %vm345_vm4 = vcmp.ge.f32.partialorder %v14539_v54, 2000.0  ;;  %v9667_v16 = vsel %vm344_vm3, 1.0, %v14385_v7  ;;  %vm352_vm5 = vcmp.ge.f32.partialorder %v14515_v36, 2050.0  ;;  %vm360_vm6 = vcmp.ge.f32.partialorder %v14515_v36, 2100.0 }
  0x40   :  { %v223_v18 = vadd.f32 %v9636_v15, %v215_v14  ;;  %v238_v25 = vadd.f32 %v9639_v21, %v230_v20  ;;  %v9666_v14 = vsel %vm337_vm2, 1.0, %v14385_v7  ;;  %vm353_vm7 = vcmp.ge.f32.partialorder %v14539_v54, 2050.0 }
  0x41   :  { %v9669_v20 = vsel %vm352_vm5, 1.0, %v14385_v7  ;;  %vm368_vm8 = vcmp.ge.f32.partialorder %v14515_v36, 2150.0  ;;  %vm361_vm9 = vcmp.ge.f32.partialorder %v14539_v54, 2100.0  ;;  %vm369_vm10 = vcmp.ge.f32.partialorder %v14539_v54, 2150.0  ;;  %v14358_v36 = vld [vmem:[%s17786_s0] sm:$0xff] }
  0x42   :  { %v231_v23 = vadd.f32 %v9638_v19, %v223_v18  ;;  %v246_v28 = vadd.f32 %v9641_v22, %v238_v25  ;;  %v9668_v18 = vsel %vm345_vm4, 1.0, %v14385_v7  ;;  %v9670_v22 = vsel %vm353_vm7, 1.0, %v14385_v7 }
  0x43   :  { %v9673_v25 = vsel %vm368_vm8, 1.0, %v14385_v7  ;;  %vm376_vm11 = vcmp.ge.f32.partialorder %v14358_v36, 2200.0  ;;  %vm377_vm12 = vcmp.ge.f32.partialorder %v14539_v54, 2200.0  ;;  %vm384_vm13 = vcmp.ge.f32.partialorder %v14358_v36, 2250.0 }
  0x44   :  { %v239_v26 = vadd.f32 %v9640_v24, %v231_v23  ;;  %v254_v32 = vadd.f32 %v9643_v29, %v246_v28  ;;  %v9671_v24 = vsel %vm360_vm6, 1.0, %v14385_v7  ;;  %vm385_vm14 = vcmp.ge.f32.partialorder %v14539_v54, 2250.0 }
  0x45   :  { %vm392_vm15 = vcmp.ge.f32.partialorder %v14358_v36, 2300.0  ;;  %vm400_vm1 = vcmp.ge.f32.partialorder %v14358_v36, 2350.0  ;;  %vm408_vm3 = vcmp.ge.f32.partialorder %v14358_v36, 2400.0  ;;  %v13608_v36 = vld [vmem:[%s17789_s3 + $0x200] sm:$0xff]  }
  0x46   :  { %v247_v30 = vadd.f32 %v9642_v27, %v239_v26  ;;  %v262_v37 = vadd.f32 %v9645_v33, %v254_v32  ;;  %v9672_v27 = vsel %vm361_vm9, 1.0, %v14385_v7  ;;  %v9675_v32 = vsel %vm376_vm11, 1.0, %v14385_v7 }
  0x48   :  { %v255_v34 = vadd.f32 %v9644_v31, %v247_v30  ;;  %v270_v41 = vadd.f32 %v9647_v38, %v262_v37  ;;  %v9674_v30 = vsel %vm369_vm10, 1.0, %v14385_v7  ;;  %v9677_v37 = vsel %vm384_vm13, 1.0, %v14385_v7 }
  0x4a   :  { %v263_v39 = vadd.f32 %v9646_v35, %v255_v34  ;;  %v278_v45 = vadd.f32 %v9649_v42, %v270_v41  ;;  %v9676_v34 = vsel %vm377_vm12, 1.0, %v14385_v7  ;;  %v9679_v42 = vsel %vm392_vm15, 1.0, %v14385_v7 }
  0x4c   :  { %v271_v43 = vadd.f32 %v9648_v40, %v263_v39  ;;  %v286_v50 = vadd.f32 %v9651_v46, %v278_v45  ;;  %v9678_v39 = vsel %vm385_vm14, 1.0, %v14385_v7  ;;  %v14359_v40 = vld [vmem:[%s17786_s0 + $0x8] sm:$0xff]  ;;  %v9681_v45 = vsel %vm400_vm1, 1.0, %v14385_v7 }
  0x4d   :  { %vm393_vm0 = vcmp.ge.f32.partialorder %v14359_v40, 2300.0  ;;  %vm401_vm2 = vcmp.ge.f32.partialorder %v14359_v40, 2350.0  ;;  %vm409_vm4 = vcmp.ge.f32.partialorder %v14359_v40, 2400.0  ;;  %v13618_v40 = vld [vmem:[%s17789_s3 + $0x258] sm:$0xff]  }
  0x4e   :  { %v279_v47 = vadd.f32 %v9650_v44, %v271_v43  ;;  %v294_v53 = vadd.f32 %v9653_v49, %v286_v50  ;;  %v9680_v44 = vsel %vm393_vm0, 1.0, %v14385_v7  ;;  %v9683_v49 = vsel %vm408_vm3, 1.0, %v14385_v7 }
  0x50   :  { %v287_v51 = vadd.f32 %v9652_v48, %v279_v47  ;;  %v302_v59 = vadd.f32 %v9655_v55, %v294_v53  ;;  %v9682_v47 = vsel %vm401_vm2, 1.0, %v14385_v7 }
  0x52   :  { %v295_v57 = vadd.f32 %v9654_v52, %v287_v51  ;;  %v310_v62 = vadd.f32 %v9657_v56, %v302_v59  ;;  %v9684_v51 = vsel %vm409_vm4, 1.0, %v14385_v7  ;;  %v13576_v7 = vld [vmem:[%s17789_s3 + $0x100] sm:$0xff]  }
  0x54   :  { %v303_v60 = vadd.f32 %v9656_v58, %v295_v57  ;;  %v318_v2 = vadd.f32 %v9659_v63, %v310_v62  ;;  %v14386_v62 = vmov 1.0|1.0   ;;  %v13578_v63 = vld [vmem:[%s17789_s3 + $0x148] sm:$0xff]  }
  0x56   :  { %v311_v0 = vadd.f32 %v9658_v61, %v303_v60  ;;  %v326_v6 = vadd.f32 %v9661_v3, %v318_v2  ;;  %v13577_v61 = vld [vmem:[%s17789_s3 + $0x180] sm:$0xff]   ;;  %v13581_v2 = vld [vmem:[%s17789_s3 + $0x188] sm:$0xff]   ;;  %v13582_v3 = vld [vmem:[%s17789_s3 + $0x150] sm:$0xff]  }
  0x58   :  { %v319_v4 = vadd.f32 %v9660_v1, %v311_v0  ;;  %v334_v11 = vadd.f32 %v9663_v8, %v326_v6  ;;  %v13579_v0 = vld [vmem:[%s17789_s3 + $0x1c8] sm:$0xff]   ;;  %v13585_v6 = vld [vmem:[%s17789_s3 + $0x190] sm:$0xff]   ;;  %v13586_v8 = vld [vmem:[%s17789_s3 + $0x158] sm:$0xff]  }
  0x59   :  { %v13580_v1 = vld [vmem:[%s17789_s3 + $0x108] sm:$0xff]  }
  0x5a   :  { %v327_v9 = vadd.f32 %v9662_v5, %v319_v4  ;;  %v342_v15 = vadd.f32 %v9665_v12, %v334_v11  ;;  %v13583_v4 = vld [vmem:[%s17789_s3 + $0x1d0] sm:$0xff]   ;;  %v13589_v11 = vld [vmem:[%s17789_s3 + $0x198] sm:$0xff]   ;;  %v13590_v12 = vld [vmem:[%s17789_s3 + $0x160] sm:$0xff]  }
  0x5b   :  { %v13584_v5 = vld [vmem:[%s17789_s3 + $0x110] sm:$0xff]  }
  0x5c   :  { %v335_v13 = vadd.f32 %v9664_v10, %v327_v9  ;;  %v350_v19 = vadd.f32 %v9667_v16, %v342_v15  ;;  %v13587_v9 = vld [vmem:[%s17789_s3 + $0x1d8] sm:$0xff]   ;;  %v13593_v15 = vld [vmem:[%s17789_s3 + $0x1a0] sm:$0xff]   ;;  %v13594_v16 = vld [vmem:[%s17789_s3 + $0x168] sm:$0xff]  }
  0x5d   :  { %v13588_v10 = vld [vmem:[%s17789_s3 + $0x118] sm:$0xff]  }
  0x5e   :  { %v343_v17 = vadd.f32 %v9666_v14, %v335_v13  ;;  %v358_v23 = vadd.f32 %v9669_v20, %v350_v19  ;;  %v13591_v13 = vld [vmem:[%s17789_s3 + $0x1e0] sm:$0xff]   ;;  %v13597_v19 = vld [vmem:[%s17789_s3 + $0x1a8] sm:$0xff]   ;;  %v13598_v20 = vld [vmem:[%s17789_s3 + $0x170] sm:$0xff]  }
  0x5f   :  { %v13592_v14 = vld [vmem:[%s17789_s3 + $0x120] sm:$0xff]  }
  0x60   :  { %v351_v21 = vadd.f32 %v9668_v18, %v343_v17  ;;  %v366_v28 = vadd.f32 %v9671_v24, %v358_v23  ;;  %v13595_v17 = vld [vmem:[%s17789_s3 + $0x1e8] sm:$0xff]   ;;  %v13601_v23 = vld [vmem:[%s17789_s3 + $0x1b0] sm:$0xff]   ;;  %v13602_v24 = vld [vmem:[%s17789_s3 + $0x178] sm:$0xff]  }
  0x61   :  { %v13596_v18 = vld [vmem:[%s17789_s3 + $0x128] sm:$0xff]  }
  0x62   :  { %v359_v26 = vadd.f32 %v9670_v22, %v351_v21  ;;  %v374_v31 = vadd.f32 %v9673_v25, %v366_v28  ;;  %v13599_v21 = vld [vmem:[%s17789_s3 + $0x1f0] sm:$0xff]   ;;  %v13603_v25 = vld [vmem:[%s17789_s3 + $0x1f8] sm:$0xff]   ;;  %v13606_v28 = vld [vmem:[%s17789_s3 + $0x240] sm:$0xff]  }
  0x63   :  { %v13600_v22 = vld [vmem:[%s17789_s3 + $0x130] sm:$0xff]  }
  0x64   :  { %v367_v29 = vadd.f32 %v9672_v27, %v359_v26  ;;  %v382_v35 = vadd.f32 %v9675_v32, %v374_v31  ;;  %v13604_v26 = vld [vmem:[%s17789_s3 + $0x138] sm:$0xff]   ;;  %v13610_v31 = vld [vmem:[%s17789_s3 + $0x248] sm:$0xff]  }
  0x65   :  { %v13605_v27 = vld [vmem:[%s17789_s3 + $0x1b8] sm:$0xff]   ;;  %v13611_v32 = vld [vmem:[%s17789_s3 + $0x2c8] sm:$0xff]  }
  0x66   :  { %v375_v33 = vadd.f32 %v9674_v30, %v367_v29  ;;  %v390_v41 = vadd.f32 %v9677_v37, %v382_v35  ;;  %v13607_v29 = vld [vmem:[%s17789_s3 + $0x2c0] sm:$0xff]   ;;  %v13614_v35 = vld [vmem:[%s17789_s3 + $0x250] sm:$0xff]  }
  0x67   :  { %v13609_v30 = vld [vmem:[%s17789_s3 + $0x280] sm:$0xff]   ;;  %v13615_v37 = vld [vmem:[%s17789_s3 + $0x2d0] sm:$0xff]  }
  0x68   :  { %v383_v38 = vadd.f32 %v9676_v34, %v375_v33  ;;  %v398_v54 = vadd.f32 %v9679_v42, %v390_v41  ;;  %v13612_v33 = vld [vmem:[%s17789_s3 + $0x208] sm:$0xff]   ;;  %v13619_v41 = vld [vmem:[%s17789_s3 + $0x2d8] sm:$0xff]  }
  0x69   :  { %v13613_v34 = vld [vmem:[%s17789_s3 + $0x288] sm:$0xff]   ;;  %v13620_v42 = vld [vmem:[%s17789_s3 + $0x218] sm:$0xff]  }
  0x6a   :  { %v391_v43 = vadd.f32 %v9678_v39, %v383_v38  ;;  %v406_v48 = vadd.f32 %v9681_v45, %v398_v54  ;;  %v13616_v38 = vld [vmem:[%s17789_s3 + $0x210] sm:$0xff]   ;;  %v13623_v54 = vld [vmem:[%s17789_s3 + $0x2e0] sm:$0xff]  }
  0x6b   :  { %v13617_v39 = vld [vmem:[%s17789_s3 + $0x290] sm:$0xff]   ;;  %v13624_v45 = vld [vmem:[%s17789_s3 + $0x220] sm:$0xff]  }
  0x6c   :  { %v399_v46 = vadd.f32 %v9680_v44, %v391_v43  ;;  %v414_v52 = vadd.f32 %v9683_v49, %v406_v48  ;;  %v13621_v43 = vld [vmem:[%s17789_s3 + $0x298] sm:$0xff]   ;;  %v13622_v44 = vld [vmem:[%s17789_s3 + $0x260] sm:$0xff]   ;;  %v13627_v48 = vld [vmem:[%s17789_s3 + $0x2e8] sm:$0xff]  }
  0x6d   :  { %v13628_v49 = vld [vmem:[%s17789_s3 + $0x228] sm:$0xff]  }
  0x6e   :  { %v407_v50 = vadd.f32 %v9682_v47, %v399_v46  ;;  %v13625_v46 = vld [vmem:[%s17789_s3 + $0x2a0] sm:$0xff]   ;;  %v13626_v47 = vld [vmem:[%s17789_s3 + $0x268] sm:$0xff]  }
  0x70   :  { %v415_v53 = vadd.f32 %v9684_v51, %v407_v50  ;;  %v13629_v50 = vld [vmem:[%s17789_s3 + $0x2a8] sm:$0xff]   ;;  %v13630_v51 = vld [vmem:[%s17789_s3 + $0x270] sm:$0xff]  }
  0xda   :  { %v476_v55 = vpop.f32.mrb[0].mxu0 }
  0xdb   :  { %vm483_vm5 = vcmp.gt.f32.partialorder %v476_v55, 0.0  ;;  %v478_v56 = vpop.f32.mrb[1].mxu0  ;;  %v13633_v55 = vld [vmem:[%s17789_s3 + $0x2b0] sm:$0xff]  }
  0xdc   :  { %v14734_v57 = vsel %vm483_vm5, 50.0, %v414_v52  ;;  %vm484_vm6 = vcmp.gt.f32.partialorder %v478_v56, 0.0  ;;  %v480_v58 = vpop.f32.mrb[2].mxu0  ;;  %v13631_v52 = vld [vmem:[%s17789_s3 + $0x2f0] sm:$0xff]   ;;  %v13634_v56 = vld [vmem:[%s17789_s3 + $0x278] sm:$0xff]  }
  0xdd   :  { %v14736_v59 = vsel %vm484_vm6, 50.0, %v415_v53  ;;  %v481_v60 = vpop.f32.mrb[3].mxu0  ;;  %vm527_vm7 = vcmp.eq.f32.partialorder %v14734_v57, 1.0  ;;  %vm487_vm11 = vcmp.eq.f32.partialorder %v14734_v57, 0.0  ;;  %vm840_vm3 = vcmp.eq.f32.partialorder %v14734_v57, 2.0  ;;  %v13632_v53 = vld [vmem:[%s17789_s3 + $0x230] sm:$0xff]  }
  0xde   :  { %vm528_vm8 = vcmp.eq.f32.partialorder %v14736_v59, 1.0  ;;  %vm488_vm9 = vcmp.eq.f32.partialorder %v14736_v59, 0.0  ;;  %vm9744_vm10 = vmpackc.low %vm527_vm7, %vm527_vm7  ;;  %vm841_vm13 = vcmp.eq.f32.partialorder %v14736_v59, 2.0  ;;  %vm1019_vm15 = vcmp.eq.f32.partialorder %v14736_v59, 3.0  ;;  %v13635_v58 = vld [vmem:[%s17789_s3 + $0x2f8] sm:$0xff]  }
  0xdf   :  { %vm9742_vm12 = vmpackc.low %vm528_vm8, %vm528_vm8  ;;  %vm1018_vm4 = vcmp.eq.f32.partialorder %v14734_v57, 3.0  ;;  %vm1197_vm7 = vcmp.eq.f32.partialorder %v14736_v59, 4.0  ;;  %vm1375_vm8 = vcmp.eq.f32.partialorder %v14736_v59, 5.0  ;;  %v13636_v60 = vld [vmem:[%s17789_s3 + $0x238] sm:$0xff]  }
  0xe0   :  { %9743 = vmatprep.mubr.msk.bf16.mxu1 %vm9742_vm12, %v14386_v62  ;;  %vm9762_vm14 = vmpackc.low %vm488_vm9, %vm488_vm9  ;;  %vm1374_vm12 = vcmp.eq.f32.partialorder %v14734_v57, 5.0 }
  0xe1   :  { %9763 = vmatprep.mubr.msk.bf16.mxu0 %vm9762_vm14, %v14386_v62  ;;  %9745 = vmatmul.mubr.msk.bf16.vlgmr.msra.gmra.mrb[0].mxu1 %vm9744_vm10, %v14386_v62  ;;  %vm9764_vm0 = vmpackc.low %vm487_vm11, %vm487_vm11  ;;  %vm1196_vm11 = vcmp.eq.f32.partialorder %v14734_v57, 4.0 }
  0xe2   :  { %9765 = vmatmul.mubr.msk.bf16.vlgmr.msra.gmra.mrb[4].mxu0 %vm9764_vm0, %v14386_v62  ;;  %12458 = vmatpush3.bf16.msra.mxu1 %v13576_v7  ;;  %vm9816_vm1 = vmpackc.low %vm841_vm13, %vm841_vm13  ;;  %v13637_v7 = vld [vmem:[%s17789_s3 + $0x2b8] sm:$0xff]   ;;  %vm1731_vm0 = vcmp.eq.f32.partialorder %v14736_v59, 7.0 }
  0xe3   :  { %12480 = vmatpush3.bf16.msra.mxu0 %v13577_v61  ;;  %9817 = vmatprep.mubr.msk.bf16.mxu1 %vm9816_vm1, %v14386_v62  ;;  %vm9870_vm2 = vmpackc.low %vm1019_vm15, %vm1019_vm15  ;;  %v13638_v61 = vld [vmem:[%s17789_s3 + $0x340] sm:$0xff]   ;;  %vm1553_vm15 = vcmp.eq.f32.partialorder %v14736_v59, 6.0 }
  0xe4   :  { %9871 = vmatprep.mubr.msk.bf16.mxu0 %vm9870_vm2, %v14386_v62  ;;  %12459 = vmatprep.subr.bf16.mxu1 %v13578_v63  ;;  %vm9818_vm5 = vmpackc.low %vm840_vm3, %vm840_vm3  ;;  %v13639_v63 = vld [vmem:[%s17789_s3 + $0x3c0] sm:$0xff]   ;;  %vm1552_vm3 = vcmp.eq.f32.partialorder %v14734_v57, 6.0 }
  0xe5   :  { %12481 = vmatprep.subr.bf16.mxu0 %v13579_v0  ;;  %vm9872_vm6 = vmpackc.low %vm1018_vm4, %vm1018_vm4  ;;  %v13640_v0 = vld [vmem:[%s17789_s3 + $0x300] sm:$0xff]   ;;  %vm1730_vm4 = vcmp.eq.f32.partialorder %v14734_v57, 7.0 }
  0xe6   :  { %12460 = vmatpush3.bf16.msra.mxu1 %v13580_v1  ;;  %vm9924_vm9 = vmpackc.low %vm1197_vm7, %vm1197_vm7  ;;  %v13641_v1 = vld [vmem:[%s17789_s3 + $0x380] sm:$0xff]   ;;  %vm1909_vm7 = vcmp.eq.f32.partialorder %v14736_v59, 8.0 }
  0xe7   :  { %12482 = vmatpush3.bf16.msra.mxu0 %v13581_v2  ;;  %12461 = vmatprep.subr.bf16.mxu1 %v13582_v3  ;;  %vm9978_vm10 = vmpackc.low %vm1375_vm8, %vm1375_vm8  ;;  %v13642_v2 = vld [vmem:[%s17789_s3 + $0x348] sm:$0xff]   ;;  %vm2087_vm8 = vcmp.eq.f32.partialorder %v14736_v59, 9.0 }
  0xe8   :  { %12483 = vmatprep.subr.bf16.mxu0 %v13583_v4  ;;  %vm9926_vm13 = vmpackc.low %vm1196_vm11, %vm1196_vm11  ;;  %v13643_v3 = vld [vmem:[%s17789_s3 + $0x3c8] sm:$0xff]   ;;  %vm1908_vm11 = vcmp.eq.f32.partialorder %v14734_v57, 8.0 }
  0xe9   :  { %vm9980_vm14 = vmpackc.low %vm1374_vm12, %vm1374_vm12  ;;  %v13644_v4 = vld [vmem:[%s17789_s3 + $0x308] sm:$0xff]   ;;  %vm2086_vm12 = vcmp.eq.f32.partialorder %v14734_v57, 9.0 }
  0xea   :  { %12462 = vmatpush3.bf16.msra.mxu1 %v13584_v5  ;;  %vm10032_vm1 = vmpackc.low %vm1553_vm15, %vm1553_vm15  ;;  %v13645_v5 = vld [vmem:[%s17789_s3 + $0x388] sm:$0xff]   ;;  %vm2265_vm15 = vcmp.eq.f32.partialorder %v14736_v59, 10.0 }
  0xeb   :  { %12484 = vmatpush3.bf16.msra.mxu0 %v13585_v6  ;;  %12463 = vmatprep.subr.bf16.mxu1 %v13586_v8  ;;  %v13646_v6 = vld [vmem:[%s17789_s3 + $0x350] sm:$0xff]   ;;  %vm10086_vm2 = vmpackc.low %vm1731_vm0, %vm1731_vm0  ;;  %vm2443_vm0 = vcmp.eq.f32.partialorder %v14736_v59, 11.0 }
  0xec   :  { %12485 = vmatprep.subr.bf16.mxu0 %v13587_v9  ;;  %v13647_v8 = vld [vmem:[%s17789_s3 + $0x3d0] sm:$0xff]  }
  0xed   :  { %v13648_v9 = vld [vmem:[%s17789_s3 + $0x310] sm:$0xff]  }
  0xee   :  { %12464 = vmatpush3.bf16.msra.mxu1 %v13588_v10  ;;  %v13649_v10 = vld [vmem:[%s17789_s3 + $0x390] sm:$0xff]  }
  0xef   :  { %12486 = vmatpush3.bf16.msra.mxu0 %v13589_v11  ;;  %12465 = vmatprep.subr.bf16.mxu1 %v13590_v12  ;;  %v13650_v11 = vld [vmem:[%s17789_s3 + $0x358] sm:$0xff]  }
  0xf0   :  { %12487 = vmatprep.subr.bf16.mxu0 %v13591_v13  ;;  %v13651_v12 = vld [vmem:[%s17789_s3 + $0x3d8] sm:$0xff]  }
  0xf1   :  { %v13652_v13 = vld [vmem:[%s17789_s3 + $0x318] sm:$0xff]  }
  0xf2   :  { %12466 = vmatpush3.bf16.msra.mxu1 %v13592_v14  ;;  %v13653_v14 = vld [vmem:[%s17789_s3 + $0x398] sm:$0xff]  }
  0xf3   :  { %12488 = vmatpush3.bf16.msra.mxu0 %v13593_v15  ;;  %12467 = vmatprep.subr.bf16.mxu1 %v13594_v16  ;;  %v13654_v15 = vld [vmem:[%s17789_s3 + $0x360] sm:$0xff]  }
  0xf4   :  { %12489 = vmatprep.subr.bf16.mxu0 %v13595_v17  ;;  %v13655_v16 = vld [vmem:[%s17789_s3 + $0x3e0] sm:$0xff]  }
  0xf5   :  { %v13656_v17 = vld [vmem:[%s17789_s3 + $0x320] sm:$0xff]  }
  0xf6   :  { %12468 = vmatpush3.bf16.msra.mxu1 %v13596_v18  ;;  %v13657_v18 = vld [vmem:[%s17789_s3 + $0x3a0] sm:$0xff]  }
  0xf7   :  { %12490 = vmatpush3.bf16.msra.mxu0 %v13597_v19  ;;  %12469 = vmatprep.subr.bf16.mxu1 %v13598_v20  ;;  %v13658_v19 = vld [vmem:[%s17789_s3 + $0x368] sm:$0xff]  }
  0xf8   :  { %12491 = vmatprep.subr.bf16.mxu0 %v13599_v21  ;;  %v13659_v20 = vld [vmem:[%s17789_s3 + $0x3e8] sm:$0xff]  }
  0xf9   :  { %v13660_v21 = vld [vmem:[%s17789_s3 + $0x328] sm:$0xff]  }
  0xfa   :  { %12470 = vmatpush3.bf16.msra.mxu1 %v13600_v22  ;;  %v13661_v22 = vld [vmem:[%s17789_s3 + $0x3a8] sm:$0xff]  }
  0xfb   :  { %12492 = vmatpush3.bf16.msra.mxu0 %v13601_v23  ;;  %12471 = vmatprep.subr.bf16.mxu1 %v13602_v24  ;;  %v13662_v23 = vld [vmem:[%s17789_s3 + $0x370] sm:$0xff]  }
  0xfc   :  { %12493 = vmatprep.subr.bf16.mxu0 %v13603_v25  ;;  %v13663_v24 = vld [vmem:[%s17789_s3 + $0x3f0] sm:$0xff]  }
  0xfd   :  { %v13664_v25 = vld [vmem:[%s17789_s3 + $0x330] sm:$0xff]  }
  0xfe   :  { %12472 = vmatpush3.bf16.msra.mxu1 %v13604_v26  ;;  %v13665_v26 = vld [vmem:[%s17789_s3 + $0x3b0] sm:$0xff]  }
  0xff   :  { %12494 = vmatpush3.bf16.msra.mxu0 %v13605_v27  ;;  %12501 = vmatprep.subr.bf16.mxu1 %v13606_v28  ;;  %v13666_v27 = vld [vmem:[%s17789_s3 + $0x378] sm:$0xff]  }
 0x100   :  { %12523 = vmatprep.subr.bf16.mxu0 %v13607_v29  ;;  %v13667_v28 = vld [vmem:[%s17789_s3 + $0x3f8] sm:$0xff]  }
 0x101   :  { %9819 = vmatmul.mubr.msk.bf16.vlgmr.msra.gmra.mrb[4].mxu1 %vm9818_vm5, %v14386_v62  ;;  %v13668_v29 = vld [vmem:[%s17789_s3 + $0x338] sm:$0xff]   ;;  %vm10034_vm5 = vmpackc.low %vm1552_vm3, %vm1552_vm3  ;;  %vm2264_vm3 = vcmp.eq.f32.partialorder %v14734_v57, 10.0 }
 0x102   :  { %9873 = vmatmul.mubr.msk.bf16.vlgmr.msra.gmra.mrb[8].mxu0 %vm9872_vm6, %v14386_v62  ;;  %12502 = vmatpush3.bf16.msra.mxu1 %v13608_v36  ;;  %v13669_v36 = vld [vmem:[%s17789_s3 + $0x3b8] sm:$0xff]   ;;  %vm10088_vm6 = vmpackc.low %vm1730_vm4, %vm1730_vm4  ;;  %vm2442_vm4 = vcmp.eq.f32.partialorder %v14734_v57, 11.0 }
 0x103   :  { %9925 = vmatprep.mubr.msk.bf16.mxu1 %vm9924_vm9, %v14386_v62  ;;  %12524 = vmatpush3.bf16.msra.mxu0 %v13609_v30  ;;  %v13670_v30 = vld [vmem:[%s17789_s3 + $0x440] sm:$0xff]   ;;  %vm10140_vm9 = vmpackc.low %vm1909_vm7, %vm1909_vm7 }
 0x104   :  { %9979 = vmatprep.mubr.msk.bf16.mxu0 %vm9978_vm10, %v14386_v62  ;;  %12503 = vmatprep.subr.bf16.mxu1 %v13610_v31  ;;  %v13671_v31 = vld [vmem:[%s17789_s3 + $0x4c0] sm:$0xff]   ;;  %vm10194_vm10 = vmpackc.low %vm2087_vm8, %vm2087_vm8 }
 0x105   :  { %12525 = vmatprep.subr.bf16.mxu0 %v13611_v32  ;;  %v13672_v32 = vld [vmem:[%s17789_s3 + $0x400] sm:$0xff]   ;;  %vm10304_vm7 = vmpackc.low %vm2442_vm4, %vm2442_vm4  ;;  %vm3154_vm4 = vcmp.eq.f32.partialorder %v14734_v57, 15.0 }
 0x106   :  { %12504 = vmatpush3.bf16.msra.mxu1 %v13612_v33  ;;  %v13673_v33 = vld [vmem:[%s17789_s3 + $0x480] sm:$0xff]  }
 0x107   :  { %12526 = vmatpush3.bf16.msra.mxu0 %v13613_v34  ;;  %12505 = vmatprep.subr.bf16.mxu1 %v13614_v35  ;;  %v13674_v34 = vld [vmem:[%s17789_s3 + $0x448] sm:$0xff]  }
 0x108   :  { %12527 = vmatprep.subr.bf16.mxu0 %v13615_v37  ;;  %v13675_v35 = vld [vmem:[%s17789_s3 + $0x4c8] sm:$0xff]  }
 0x109   :  { %v13676_v37 = vld [vmem:[%s17789_s3 + $0x408] sm:$0xff]  }
 0x10a   :  { %12506 = vmatpush3.bf16.msra.mxu1 %v13616_v38  ;;  %v13677_v38 = vld [vmem:[%s17789_s3 + $0x488] sm:$0xff]  }
 0x10b   :  { %12528 = vmatpush3.bf16.msra.mxu0 %v13617_v39  ;;  %12507 = vmatprep.subr.bf16.mxu1 %v13618_v40  ;;  %v13678_v39 = vld [vmem:[%s17789_s3 + $0x450] sm:$0xff]  }
 0x10c   :  { %12529 = vmatprep.subr.bf16.mxu0 %v13619_v41  ;;  %v13679_v40 = vld [vmem:[%s17789_s3 + $0x4d0] sm:$0xff]  }
 0x10d   :  { %v13680_v41 = vld [vmem:[%s17789_s3 + $0x410] sm:$0xff]  }
 0x10e   :  { %12508 = vmatpush3.bf16.msra.mxu1 %v13620_v42  ;;  %v13681_v42 = vld [vmem:[%s17789_s3 + $0x490] sm:$0xff]  }
 0x10f   :  { %12530 = vmatpush3.bf16.msra.mxu0 %v13621_v43  ;;  %12509 = vmatprep.subr.bf16.mxu1 %v13622_v44  ;;  %v13682_v43 = vld [vmem:[%s17789_s3 + $0x458] sm:$0xff]  }
 0x110   :  { %12531 = vmatprep.subr.bf16.mxu0 %v13623_v54  ;;  %v13683_v44 = vld [vmem:[%s17789_s3 + $0x4d8] sm:$0xff]  }
 0x111   :  { %v13684_v54 = vld [vmem:[%s17789_s3 + $0x418] sm:$0xff]  }
 0x112   :  { %12510 = vmatpush3.bf16.msra.mxu1 %v13624_v45  ;;  %v13685_v45 = vld [vmem:[%s17789_s3 + $0x498] sm:$0xff]  }
 0x113   :  { %12532 = vmatpush3.bf16.msra.mxu0 %v13625_v46  ;;  %12511 = vmatprep.subr.bf16.mxu1 %v13626_v47  ;;  %v13686_v46 = vld [vmem:[%s17789_s3 + $0x460] sm:$0xff]  }
 0x114   :  { %12533 = vmatprep.subr.bf16.mxu0 %v13627_v48  ;;  %v13687_v47 = vld [vmem:[%s17789_s3 + $0x4e0] sm:$0xff]  }
 0x115   :  { %v13688_v48 = vld [vmem:[%s17789_s3 + $0x420] sm:$0xff]  }
 0x116   :  { %12512 = vmatpush3.bf16.msra.mxu1 %v13628_v49  ;;  %v13689_v49 = vld [vmem:[%s17789_s3 + $0x4a0] sm:$0xff]  }
 0x117   :  { %12534 = vmatpush3.bf16.msra.mxu0 %v13629_v50  ;;  %12513 = vmatprep.subr.bf16.mxu1 %v13630_v51  ;;  %v13690_v50 = vld [vmem:[%s17789_s3 + $0x468] sm:$0xff]  }
 0x118   :  { %12535 = vmatprep.subr.bf16.mxu0 %v13631_v52  ;;  %v13691_v51 = vld [vmem:[%s17789_s3 + $0x4e8] sm:$0xff]  }
 0x119   :  { %v13692_v52 = vld [vmem:[%s17789_s3 + $0x428] sm:$0xff]  }
 0x11a   :  { %12514 = vmatpush3.bf16.msra.mxu1 %v13632_v53  ;;  %v13693_v53 = vld [vmem:[%s17789_s3 + $0x4a8] sm:$0xff]  }
 0x11b   :  { %12536 = vmatpush3.bf16.msra.mxu0 %v13633_v55  ;;  %12515 = vmatprep.subr.bf16.mxu1 %v13634_v56  ;;  %v13694_v55 = vld [vmem:[%s17789_s3 + $0x470] sm:$0xff]  }
 0x11c   :  { %12537 = vmatprep.subr.bf16.mxu0 %v13635_v58  ;;  %v13695_v56 = vld [vmem:[%s17789_s3 + $0x4f0] sm:$0xff]  }
 0x11d   :  { %v13696_v58 = vld [vmem:[%s17789_s3 + $0x430] sm:$0xff]  }
 0x11e   :  { %12516 = vmatpush3.bf16.msra.mxu1 %v13636_v60  ;;  %v13697_v60 = vld [vmem:[%s17789_s3 + $0x4b0] sm:$0xff]  }
 0x11f   :  { %12538 = vmatpush3.bf16.msra.mxu0 %v13637_v7  ;;  %12545 = vmatprep.subr.bf16.mxu1 %v13638_v61  ;;  %v13698_v7 = vld [vmem:[%s17789_s3 + $0x478] sm:$0xff]  }
 0x120   :  { %12567 = vmatprep.subr.bf16.mxu0 %v13639_v63  ;;  %v13699_v61 = vld [vmem:[%s17789_s3 + $0x4f8] sm:$0xff]  }
 0x121   :  { %9927 = vmatmul.mubr.msk.bf16.vlgmr.msra.gmra.mrb[8].mxu1 %vm9926_vm13, %v14386_v62  ;;  %v13700_v63 = vld [vmem:[%s17789_s3 + $0x438] sm:$0xff]   ;;  %vm10142_vm13 = vmpackc.low %vm1908_vm11, %vm1908_vm11  ;;  %vm2620_vm11 = vcmp.eq.f32.partialorder %v14734_v57, 12.0 }
 0x122   :  { %9981 = vmatmul.mubr.msk.bf16.vlgmr.msra.gmra.mrb[12].mxu0 %vm9980_vm14, %v14386_v62  ;;  %12546 = vmatpush3.bf16.msra.mxu1 %v13640_v0  ;;  %v13701_v0 = vld [vmem:[%s17789_s3 + $0x4b8] sm:$0xff]   ;;  %vm10196_vm14 = vmpackc.low %vm2086_vm12, %vm2086_vm12  ;;  %vm2798_vm12 = vcmp.eq.f32.partialorder %v14734_v57, 13.0 }
 0x123   :  { %10033 = vmatprep.mubr.msk.bf16.mxu1 %vm10032_vm1, %v14386_v62  ;;  %12568 = vmatpush3.bf16.msra.mxu0 %v13641_v1  ;;  %v13702_v1 = vld [vmem:[%s17789_s3 + $0x540] sm:$0xff]   ;;  %vm10248_vm1 = vmpackc.low %vm2265_vm15, %vm2265_vm15 }
 0x124   :  { %10087 = vmatprep.mubr.msk.bf16.mxu0 %vm10086_vm2, %v14386_v62  ;;  %12547 = vmatprep.subr.bf16.mxu1 %v13642_v2  ;;  %v13703_v2 = vld [vmem:[%s17789_s3 + $0x5c0] sm:$0xff]   ;;  %vm10302_vm2 = vmpackc.low %vm2443_vm0, %vm2443_vm0 }
 0x125   :  { %12569 = vmatprep.subr.bf16.mxu0 %v13643_v3  ;;  %v13704_v3 = vld [vmem:[%s17789_s3 + $0x500] sm:$0xff]   ;;  %vm10412_vm15 = vmpackc.low %vm2798_vm12, %vm2798_vm12  ;;  %vm3510_vm12 = vcmp.eq.f32.partialorder %v14734_v57, 17.0 }
 0x126   :  { %12548 = vmatpush3.bf16.msra.mxu1 %v13644_v4  ;;  %v13705_v4 = vld [vmem:[%s17789_s3 + $0x580] sm:$0xff]  }
 0x127   :  { %12570 = vmatpush3.bf16.msra.mxu0 %v13645_v5  ;;  %12549 = vmatprep.subr.bf16.mxu1 %v13646_v6  ;;  %v13706_v5 = vld [vmem:[%s17789_s3 + $0x548] sm:$0xff]  }
 0x128   :  { %12571 = vmatprep.subr.bf16.mxu0 %v13647_v8  ;;  %v13707_v6 = vld [vmem:[%s17789_s3 + $0x5c8] sm:$0xff]  }
 0x129   :  { %v13708_v8 = vld [vmem:[%s17789_s3 + $0x508] sm:$0xff]  }
 0x12a   :  { %12550 = vmatpush3.bf16.msra.mxu1 %v13648_v9  ;;  %v13709_v9 = vld [vmem:[%s17789_s3 + $0x588] sm:$0xff]  }
 0x12b   :  { %12572 = vmatpush3.bf16.msra.mxu0 %v13649_v10  ;;  %12551 = vmatprep.subr.bf16.mxu1 %v13650_v11  ;;  %v13710_v10 = vld [vmem:[%s17789_s3 + $0x550] sm:$0xff]  }
 0x12c   :  { %12573 = vmatprep.subr.bf16.mxu0 %v13651_v12  ;;  %v13711_v11 = vld [vmem:[%s17789_s3 + $0x5d0] sm:$0xff]  }
 0x12d   :  { %v13712_v12 = vld [vmem:[%s17789_s3 + $0x510] sm:$0xff]  }
 0x12e   :  { %12552 = vmatpush3.bf16.msra.mxu1 %v13652_v13  ;;  %v13713_v13 = vld [vmem:[%s17789_s3 + $0x590] sm:$0xff]  }
 0x12f   :  { %12574 = vmatpush3.bf16.msra.mxu0 %v13653_v14  ;;  %12553 = vmatprep.subr.bf16.mxu1 %v13654_v15  ;;  %v13714_v14 = vld [vmem:[%s17789_s3 + $0x558] sm:$0xff]  }
 0x130   :  { %12575 = vmatprep.subr.bf16.mxu0 %v13655_v16  ;;  %v13715_v15 = vld [vmem:[%s17789_s3 + $0x5d8] sm:$0xff]  }
 0x131   :  { %v13716_v16 = vld [vmem:[%s17789_s3 + $0x518] sm:$0xff]  }
 0x132   :  { %12554 = vmatpush3.bf16.msra.mxu1 %v13656_v17  ;;  %v13717_v17 = vld [vmem:[%s17789_s3 + $0x598] sm:$0xff]  }
 0x133   :  { %12576 = vmatpush3.bf16.msra.mxu0 %v13657_v18  ;;  %12555 = vmatprep.subr.bf16.mxu1 %v13658_v19  ;;  %v13718_v18 = vld [vmem:[%s17789_s3 + $0x560] sm:$0xff]  }
 0x134   :  { %12577 = vmatprep.subr.bf16.mxu0 %v13659_v20  ;;  %v13719_v19 = vld [vmem:[%s17789_s3 + $0x5e0] sm:$0xff]  }
 0x135   :  { %v13720_v20 = vld [vmem:[%s17789_s3 + $0x520] sm:$0xff]  }
 0x136   :  { %12556 = vmatpush3.bf16.msra.mxu1 %v13660_v21  ;;  %v13721_v21 = vld [vmem:[%s17789_s3 + $0x5a0] sm:$0xff]  }
 0x137   :  { %12578 = vmatpush3.bf16.msra.mxu0 %v13661_v22  ;;  %12557 = vmatprep.subr.bf16.mxu1 %v13662_v23  ;;  %v13722_v22 = vld [vmem:[%s17789_s3 + $0x568] sm:$0xff]  }
 0x138   :  { %12579 = vmatprep.subr.bf16.mxu0 %v13663_v24  ;;  %v13723_v23 = vld [vmem:[%s17789_s3 + $0x5e8] sm:$0xff]  }
 0x139   :  { %v13724_v24 = vld [vmem:[%s17789_s3 + $0x528] sm:$0xff]  }
 0x13a   :  { %12558 = vmatpush3.bf16.msra.mxu1 %v13664_v25  ;;  %v13725_v25 = vld [vmem:[%s17789_s3 + $0x5a8] sm:$0xff]  }
 0x13b   :  { %12580 = vmatpush3.bf16.msra.mxu0 %v13665_v26  ;;  %12559 = vmatprep.subr.bf16.mxu1 %v13666_v27  ;;  %v13726_v26 = vld [vmem:[%s17789_s3 + $0x570] sm:$0xff]  }
 0x13c   :  { %12581 = vmatprep.subr.bf16.mxu0 %v13667_v28  ;;  %v13727_v27 = vld [vmem:[%s17789_s3 + $0x5f0] sm:$0xff]  }
 0x13d   :  { %v13728_v28 = vld [vmem:[%s17789_s3 + $0x530] sm:$0xff]  }
 0x13e   :  { %12560 = vmatpush3.bf16.msra.mxu1 %v13668_v29  ;;  %v13729_v29 = vld [vmem:[%s17789_s3 + $0x5b0] sm:$0xff]  }
 0x13f   :  { %12582 = vmatpush3.bf16.msra.mxu0 %v13669_v36  ;;  %12589 = vmatprep.subr.bf16.mxu1 %v13670_v30  ;;  %v13730_v36 = vld [vmem:[%s17789_s3 + $0x578] sm:$0xff]  }
 0x140   :  { %12611 = vmatprep.subr.bf16.mxu0 %v13671_v31  ;;  %v13731_v30 = vld [vmem:[%s17789_s3 + $0x5f8] sm:$0xff]  }
 0x141   :  { %10035 = vmatmul.mubr.msk.bf16.vlgmr.msra.gmra.mrb[12].mxu1 %vm10034_vm5, %v14386_v62  ;;  %vm2621_vm5 = vcmp.eq.f32.partialorder %v14736_v59, 12.0  ;;  %v13732_v31 = vld [vmem:[%s17789_s3 + $0x538] sm:$0xff]  }
 0x142   :  { %10089 = vmatmul.mubr.msk.bf16.vlgmr.msra.gmra.mrb[16].mxu0 %vm10088_vm6, %v14386_v62  ;;  %12590 = vmatpush3.bf16.msra.mxu1 %v13672_v32  ;;  %vm15256_vm6 = vmpackc.low %vm2264_vm3, %vm2264_vm3  ;;  %vm2976_vm3 = vcmp.eq.f32.partialorder %v14734_v57, 14.0 }
 0x143   :  { %10141 = vmatprep.mubr.msk.bf16.mxu1 %vm10140_vm9, %v14386_v62  ;;  %12612 = vmatpush3.bf16.msra.mxu0 %v13673_v33  ;;  %v13733_v33 = vld [vmem:[%s17789_s3 + $0x5b8] sm:$0xff]   ;;  %vm15269_vm8 = vmpackc.low %vm2621_vm5, %vm2621_vm5  ;;  %vm2799_vm9 = vcmp.eq.f32.partialorder %v14736_v59, 13.0  ;;  %vm3333_vm5 = vcmp.eq.f32.partialorder %v14736_v59, 16.0 }
 0x144   :  { %10195 = vmatprep.mubr.msk.bf16.mxu0 %vm10194_vm10, %v14386_v62  ;;  %12591 = vmatprep.subr.bf16.mxu1 %v13674_v34  ;;  %v13734_v34 = vld [vmem:[%s17789_s3 + $0x640] sm:$0xff]   ;;  %vm10410_vm10 = vmpackc.low %vm2799_vm9, %vm2799_vm9  ;;  %vm3511_vm9 = vcmp.eq.f32.partialorder %v14736_v59, 17.0 }
 0x145   :  { %12613 = vmatprep.subr.bf16.mxu0 %v13675_v35  ;;  %v13735_v35 = vld [vmem:[%s17789_s3 + $0x6c0] sm:$0xff]  }
 0x146   :  { %12592 = vmatpush3.bf16.msra.mxu1 %v13676_v37  ;;  %v13793_v37 = vld [vmem:[%s17789_s3 + $0x7b0] sm:$0xff]  }
 0x147   :  { %12614 = vmatpush3.bf16.msra.mxu0 %v13677_v38  ;;  %12593 = vmatprep.subr.bf16.mxu1 %v13678_v39  ;;  %v13736_v38 = vld [vmem:[%s17789_s3 + $0x600] sm:$0xff]  }
 0x148   :  { %12615 = vmatprep.subr.bf16.mxu0 %v13679_v40  ;;  %v13737_v39 = vld [vmem:[%s17789_s3 + $0x680] sm:$0xff]   ;;  %v13738_v40 = vld [vmem:[%s17789_s3 + $0x648] sm:$0xff]  }
 0x14a   :  { %12594 = vmatpush3.bf16.msra.mxu1 %v13680_v41  ;;  %v13739_v41 = vld [vmem:[%s17789_s3 + $0x6c8] sm:$0xff]  }
 0x14b   :  { %12616 = vmatpush3.bf16.msra.mxu0 %v13681_v42  ;;  %12595 = vmatprep.subr.bf16.mxu1 %v13682_v43  ;;  %v13740_v42 = vld [vmem:[%s17789_s3 + $0x608] sm:$0xff]  }
 0x14c   :  { %12617 = vmatprep.subr.bf16.mxu0 %v13683_v44  ;;  %v13741_v43 = vld [vmem:[%s17789_s3 + $0x688] sm:$0xff]   ;;  %v13742_v44 = vld [vmem:[%s17789_s3 + $0x650] sm:$0xff]  }
 0x14e   :  { %12596 = vmatpush3.bf16.msra.mxu1 %v13684_v54  ;;  %v13743_v54 = vld [vmem:[%s17789_s3 + $0x6d0] sm:$0xff]  }
 0x14f   :  { %12618 = vmatpush3.bf16.msra.mxu0 %v13685_v45  ;;  %12597 = vmatprep.subr.bf16.mxu1 %v13686_v46  ;;  %v13744_v45 = vld [vmem:[%s17789_s3 + $0x610] sm:$0xff]  }
 0x150   :  { %12619 = vmatprep.subr.bf16.mxu0 %v13687_v47  ;;  %v13745_v46 = vld [vmem:[%s17789_s3 + $0x690] sm:$0xff]   ;;  %v13746_v47 = vld [vmem:[%s17789_s3 + $0x658] sm:$0xff]  }
 0x152   :  { %12598 = vmatpush3.bf16.msra.mxu1 %v13688_v48  ;;  %v13747_v48 = vld [vmem:[%s17789_s3 + $0x6d8] sm:$0xff]  }
 0x153   :  { %12620 = vmatpush3.bf16.msra.mxu0 %v13689_v49  ;;  %12599 = vmatprep.subr.bf16.mxu1 %v13690_v50  ;;  %v13748_v49 = vld [vmem:[%s17789_s3 + $0x618] sm:$0xff]  }
 0x154   :  { %12621 = vmatprep.subr.bf16.mxu0 %v13691_v51  ;;  %v13749_v50 = vld [vmem:[%s17789_s3 + $0x698] sm:$0xff]   ;;  %v13750_v51 = vld [vmem:[%s17789_s3 + $0x660] sm:$0xff]  }
 0x156   :  { %12600 = vmatpush3.bf16.msra.mxu1 %v13692_v52  ;;  %v13751_v52 = vld [vmem:[%s17789_s3 + $0x6e0] sm:$0xff]  }
 0x157   :  { %12622 = vmatpush3.bf16.msra.mxu0 %v13693_v53  ;;  %12601 = vmatprep.subr.bf16.mxu1 %v13694_v55  ;;  %v13752_v53 = vld [vmem:[%s17789_s3 + $0x620] sm:$0xff]  }
 0x158   :  { %12623 = vmatprep.subr.bf16.mxu0 %v13695_v56  ;;  %v13753_v55 = vld [vmem:[%s17789_s3 + $0x6a0] sm:$0xff]   ;;  %v13754_v56 = vld [vmem:[%s17789_s3 + $0x668] sm:$0xff]  }
 0x15a   :  { %12602 = vmatpush3.bf16.msra.mxu1 %v13696_v58  ;;  %v13755_v58 = vld [vmem:[%s17789_s3 + $0x6e8] sm:$0xff]  }
 0x15b   :  { %12624 = vmatpush3.bf16.msra.mxu0 %v13697_v60  ;;  %12603 = vmatprep.subr.bf16.mxu1 %v13698_v7  ;;  %v13756_v60 = vld [vmem:[%s17789_s3 + $0x628] sm:$0xff]  }
 0x15c   :  { %12625 = vmatprep.subr.bf16.mxu0 %v13699_v61  ;;  %v13757_v7 = vld [vmem:[%s17789_s3 + $0x6a8] sm:$0xff]   ;;  %v13758_v61 = vld [vmem:[%s17789_s3 + $0x670] sm:$0xff]  }
 0x15e   :  { %12604 = vmatpush3.bf16.msra.mxu1 %v13700_v63  ;;  %v13759_v63 = vld [vmem:[%s17789_s3 + $0x6f0] sm:$0xff]  }
 0x15f   :  { %12626 = vmatpush3.bf16.msra.mxu0 %v13701_v0  ;;  %12633 = vmatprep.subr.bf16.mxu1 %v13702_v1  ;;  %v13760_v0 = vld [vmem:[%s17789_s3 + $0x630] sm:$0xff]  }
 0x160   :  { %12655 = vmatprep.subr.bf16.mxu0 %v13703_v2  ;;  %v13761_v1 = vld [vmem:[%s17789_s3 + $0x6b0] sm:$0xff]   ;;  %v13762_v2 = vld [vmem:[%s17789_s3 + $0x678] sm:$0xff]  }
 0x161   :  { %10143 = vmatmul.mubr.msk.bf16.vlgmr.msra.gmra.mrb[16].mxu1 %vm10142_vm13, %v14386_v62  ;;  %vm2977_vm13 = vcmp.eq.f32.partialorder %v14736_v59, 14.0 }
 0x162   :  { %10197 = vmatmul.mubr.msk.bf16.vlgmr.msra.gmra.mrb[20].mxu0 %vm10196_vm14, %v14386_v62  ;;  %12634 = vmatpush3.bf16.msra.mxu1 %v13704_v3  ;;  %v13763_v3 = vld [vmem:[%s17789_s3 + $0x6f8] sm:$0xff]   ;;  %vm10358_vm14 = vmpackc.low %vm2620_vm11, %vm2620_vm11  ;;  %vm3332_vm11 = vcmp.eq.f32.partialorder %v14734_v57, 16.0 }
 0x163   :  { %10249 = vmatprep.mubr.msk.bf16.mxu1 %vm10248_vm1, %v14386_v62  ;;  %12656 = vmatpush3.bf16.msra.mxu0 %v13705_v4  ;;  %v13764_v4 = vld [vmem:[%s17789_s3 + $0x638] sm:$0xff]   ;;  %vm10464_vm0 = vmpackc.low %vm2977_vm13, %vm2977_vm13  ;;  %vm3155_vm1 = vcmp.eq.f32.partialorder %v14736_v59, 15.0  ;;  %vm3689_vm13 = vcmp.eq.f32.partialorder %v14736_v59, 18.0 }
 0x164   :  { %10303 = vmatprep.mubr.msk.bf16.mxu0 %vm10302_vm2, %v14386_v62  ;;  %12635 = vmatprep.subr.bf16.mxu1 %v13706_v5  ;;  %v13765_v5 = vld [vmem:[%s17789_s3 + $0x6b8] sm:$0xff]   ;;  %vm10518_vm2 = vmpackc.low %vm3155_vm1, %vm3155_vm1 }
 0x165   :  { %12657 = vmatprep.subr.bf16.mxu0 %v13707_v6  ;;  %v13766_v6 = vld [vmem:[%s17789_s3 + $0x740] sm:$0xff]   ;;  %vm15630_vm1 = vmpackc.low %vm3689_vm13, %vm3689_vm13  ;;  %vm4401_vm13 = vcmp.eq.f32.partialorder %v14736_v59, 22.0 }
 0x166   :  { %12636 = vmatpush3.bf16.msra.mxu1 %v13708_v8  ;;  %v13767_v8 = vld [vmem:[%s17789_s3 + $0x7c0] sm:$0xff]  }
 0x167   :  { %12658 = vmatpush3.bf16.msra.mxu0 %v13709_v9  ;;  %12637 = vmatprep.subr.bf16.mxu1 %v13710_v10  ;;  %v13768_v9 = vld [vmem:[%s17789_s3 + $0x700] sm:$0xff]  }
 0x168   :  { %12659 = vmatprep.subr.bf16.mxu0 %v13711_v11  ;;  %v13769_v10 = vld [vmem:[%s17789_s3 + $0x780] sm:$0xff]   ;;  %v13770_v11 = vld [vmem:[%s17789_s3 + $0x748] sm:$0xff]  }
 0x16a   :  { %12638 = vmatpush3.bf16.msra.mxu1 %v13712_v12  ;;  %v13771_v12 = vld [vmem:[%s17789_s3 + $0x7c8] sm:$0xff]  }
 0x16b   :  { %12660 = vmatpush3.bf16.msra.mxu0 %v13713_v13  ;;  %12639 = vmatprep.subr.bf16.mxu1 %v13714_v14  ;;  %v13772_v13 = vld [vmem:[%s17789_s3 + $0x708] sm:$0xff]  }
 0x16c   :  { %12661 = vmatprep.subr.bf16.mxu0 %v13715_v15  ;;  %v13773_v14 = vld [vmem:[%s17789_s3 + $0x788] sm:$0xff]   ;;  %v13774_v15 = vld [vmem:[%s17789_s3 + $0x750] sm:$0xff]  }
 0x16e   :  { %12640 = vmatpush3.bf16.msra.mxu1 %v13716_v16  ;;  %v13775_v16 = vld [vmem:[%s17789_s3 + $0x7d0] sm:$0xff]  }
 0x16f   :  { %12662 = vmatpush3.bf16.msra.mxu0 %v13717_v17  ;;  %12641 = vmatprep.subr.bf16.mxu1 %v13718_v18  ;;  %v13776_v17 = vld [vmem:[%s17789_s3 + $0x710] sm:$0xff]  }
 0x170   :  { %12663 = vmatprep.subr.bf16.mxu0 %v13719_v19  ;;  %v13777_v18 = vld [vmem:[%s17789_s3 + $0x790] sm:$0xff]   ;;  %v13778_v19 = vld [vmem:[%s17789_s3 + $0x758] sm:$0xff]  }
 0x172   :  { %12642 = vmatpush3.bf16.msra.mxu1 %v13720_v20  ;;  %v13779_v20 = vld [vmem:[%s17789_s3 + $0x7d8] sm:$0xff]  }
 0x173   :  { %12664 = vmatpush3.bf16.msra.mxu0 %v13721_v21  ;;  %12643 = vmatprep.subr.bf16.mxu1 %v13722_v22  ;;  %v13780_v21 = vld [vmem:[%s17789_s3 + $0x718] sm:$0xff]  }
 0x174   :  { %12665 = vmatprep.subr.bf16.mxu0 %v13723_v23  ;;  %v13781_v22 = vld [vmem:[%s17789_s3 + $0x798] sm:$0xff]   ;;  %v13782_v23 = vld [vmem:[%s17789_s3 + $0x760] sm:$0xff]  }
 0x176   :  { %12644 = vmatpush3.bf16.msra.mxu1 %v13724_v24  ;;  %v13783_v24 = vld [vmem:[%s17789_s3 + $0x7e0] sm:$0xff]  }
 0x177   :  { %12666 = vmatpush3.bf16.msra.mxu0 %v13725_v25  ;;  %12645 = vmatprep.subr.bf16.mxu1 %v13726_v26  ;;  %v13784_v25 = vld [vmem:[%s17789_s3 + $0x720] sm:$0xff]  }
 0x178   :  { %12667 = vmatprep.subr.bf16.mxu0 %v13727_v27  ;;  %v13785_v26 = vld [vmem:[%s17789_s3 + $0x7a0] sm:$0xff]   ;;  %v13786_v27 = vld [vmem:[%s17789_s3 + $0x768] sm:$0xff]  }
 0x17a   :  { %12646 = vmatpush3.bf16.msra.mxu1 %v13728_v28  ;;  %v13787_v28 = vld [vmem:[%s17789_s3 + $0x7e8] sm:$0xff]  }
 0x17b   :  { %12668 = vmatpush3.bf16.msra.mxu0 %v13729_v29  ;;  %12647 = vmatprep.subr.bf16.mxu1 %v13730_v36  ;;  %v13788_v29 = vld [vmem:[%s17789_s3 + $0x728] sm:$0xff]  }
 0x17c   :  { %12669 = vmatprep.subr.bf16.mxu0 %v13731_v30  ;;  %v13789_v36 = vld [vmem:[%s17789_s3 + $0x7a8] sm:$0xff]   ;;  %v13790_v30 = vld [vmem:[%s17789_s3 + $0x770] sm:$0xff]  }
 0x17e   :  { %12648 = vmatpush3.bf16.msra.mxu1 %v13732_v31  ;;  %v13791_v31 = vld [vmem:[%s17789_s3 + $0x7f0] sm:$0xff]  }
 0x17f   :  { %12670 = vmatpush3.bf16.msra.mxu0 %v13733_v33  ;;  %12677 = vmatprep.subr.bf16.mxu1 %v13734_v34  ;;  %v13792_v33 = vld [vmem:[%s17789_s3 + $0x730] sm:$0xff]  }
 0x180   :  { %12699 = vmatprep.subr.bf16.mxu0 %v13735_v35 }
 0x181   :  { %10251 = vmatmul.mubr.msk.bf16.vlgmr.msra.gmra.mrb[20].mxu1 %vm15256_vm6, %v14386_v62  ;;  %vm15481_vm6 = vmpackc.low %vm2976_vm3, %vm2976_vm3  ;;  %vm3688_vm3 = vcmp.eq.f32.partialorder %v14734_v57, 18.0 }
 0x182   :  { %10305 = vmatmul.mubr.msk.bf16.vlgmr.msra.gmra.mrb[24].mxu0 %vm10304_vm7, %v14386_v62  ;;  %12678 = vmatpush3.bf16.msra.mxu1 %v13736_v38  ;;  %v13794_v38 = vld [vmem:[%s17789_s3 + $0x778] sm:$0xff]   ;;  %vm10520_vm7 = vmpackc.low %vm3154_vm4, %vm3154_vm4  ;;  %vm3866_vm4 = vcmp.eq.f32.partialorder %v14734_v57, 19.0 }
 0x183   :  { %10357 = vmatprep.mubr.msk.bf16.mxu1 %vm15269_vm8, %v14386_v62  ;;  %12700 = vmatpush3.bf16.msra.mxu0 %v13737_v39  ;;  %vm15500_vm8 = vmpackc.low %vm3333_vm5, %vm3333_vm5  ;;  %vm4045_vm5 = vcmp.eq.f32.partialorder %v14736_v59, 20.0 }
 0x184   :  { %10411 = vmatprep.mubr.msk.bf16.mxu0 %vm10410_vm10, %v14386_v62  ;;  %12679 = vmatprep.subr.bf16.mxu1 %v13738_v40  ;;  %vm10626_vm10 = vmpackc.low %vm3511_vm9, %vm3511_vm9 }
 0x185   :  { %12701 = vmatprep.subr.bf16.mxu0 %v13739_v41  ;;  %vm15767_vm9 = vmpackc.low %vm4045_vm5, %vm4045_vm5  ;;  %vm4757_vm5 = vcmp.eq.f32.partialorder %v14736_v59, 24.0 }
 0x186   :  { %12680 = vmatpush3.bf16.msra.mxu1 %v13740_v42 }
 0x187   :  { %12702 = vmatpush3.bf16.msra.mxu0 %v13741_v43  ;;  %12681 = vmatprep.subr.bf16.mxu1 %v13742_v44 }
 0x188   :  { %12703 = vmatprep.subr.bf16.mxu0 %v13743_v54 }
 0x18a   :  { %12682 = vmatpush3.bf16.msra.mxu1 %v13744_v45  ;;  %v13795_v45 = vld [vmem:[%s17789_s3 + $0x7f8] sm:$0xff]  }
 0x18b   :  { %12704 = vmatpush3.bf16.msra.mxu0 %v13745_v46  ;;  %12683 = vmatprep.subr.bf16.mxu1 %v13746_v47  ;;  %v13796_v47 = vld [vmem:[%s17789_s3 + $0x738] sm:$0xff]  }
 0x18c   :  { %12705 = vmatprep.subr.bf16.mxu0 %v13747_v48  ;;  %v13840_v48 = vld [vmem:[%s17789_s3 + $0x910] sm:$0xff]  }
 0x18e   :  { %12684 = vmatpush3.bf16.msra.mxu1 %v13748_v49  ;;  %v13797_v49 = vld [vmem:[%s17789_s3 + $0x7b8] sm:$0xff]  }
 0x18f   :  { %12706 = vmatpush3.bf16.msra.mxu0 %v13749_v50  ;;  %12685 = vmatprep.subr.bf16.mxu1 %v13750_v51  ;;  %v13798_v50 = vld [vmem:[%s17789_s3 + $0x840] sm:$0xff]  }
 0x190   :  { %12707 = vmatprep.subr.bf16.mxu0 %v13751_v52  ;;  %v13799_v51 = vld [vmem:[%s17789_s3 + $0x8c0] sm:$0xff]   ;;  %v13844_v52 = vld [vmem:[%s17789_s3 + $0x918] sm:$0xff]  }
 0x192   :  { %12686 = vmatpush3.bf16.msra.mxu1 %v13752_v53  ;;  %v13800_v53 = vld [vmem:[%s17789_s3 + $0x800] sm:$0xff]  }
 0x193   :  { %12708 = vmatpush3.bf16.msra.mxu0 %v13753_v55  ;;  %12687 = vmatprep.subr.bf16.mxu1 %v13754_v56  ;;  %v13801_v55 = vld [vmem:[%s17789_s3 + $0x880] sm:$0xff]   ;;  %v13802_v56 = vld [vmem:[%s17789_s3 + $0x848] sm:$0xff]  }
 0x194   :  { %12709 = vmatprep.subr.bf16.mxu0 %v13755_v58  ;;  %v13803_v58 = vld [vmem:[%s17789_s3 + $0x8c8] sm:$0xff]  }
 0x196   :  { %12688 = vmatpush3.bf16.msra.mxu1 %v13756_v60  ;;  %v13804_v60 = vld [vmem:[%s17789_s3 + $0x808] sm:$0xff]  }
 0x197   :  { %12710 = vmatpush3.bf16.msra.mxu0 %v13757_v7  ;;  %12689 = vmatprep.subr.bf16.mxu1 %v13758_v61  ;;  %v13805_v7 = vld [vmem:[%s17789_s3 + $0x888] sm:$0xff]   ;;  %v13806_v61 = vld [vmem:[%s17789_s3 + $0x850] sm:$0xff]  }
 0x198   :  { %12711 = vmatprep.subr.bf16.mxu0 %v13759_v63  ;;  %v13807_v63 = vld [vmem:[%s17789_s3 + $0x8d0] sm:$0xff]  }
 0x19a   :  { %12690 = vmatpush3.bf16.msra.mxu1 %v13760_v0  ;;  %v13808_v0 = vld [vmem:[%s17789_s3 + $0x810] sm:$0xff]  }
 0x19b   :  { %12712 = vmatpush3.bf16.msra.mxu0 %v13761_v1  ;;  %12691 = vmatprep.subr.bf16.mxu1 %v13762_v2  ;;  %v13809_v1 = vld [vmem:[%s17789_s3 + $0x890] sm:$0xff]   ;;  %v13810_v2 = vld [vmem:[%s17789_s3 + $0x858] sm:$0xff]  }
 0x19c   :  { %12713 = vmatprep.subr.bf16.mxu0 %v13763_v3  ;;  %v13811_v3 = vld [vmem:[%s17789_s3 + $0x8d8] sm:$0xff]  }
 0x19e   :  { %12692 = vmatpush3.bf16.msra.mxu1 %v13764_v4  ;;  %v13812_v4 = vld [vmem:[%s17789_s3 + $0x818] sm:$0xff]  }
 0x19f   :  { %12714 = vmatpush3.bf16.msra.mxu0 %v13765_v5  ;;  %12721 = vmatprep.subr.bf16.mxu1 %v13766_v6  ;;  %v13813_v5 = vld [vmem:[%s17789_s3 + $0x898] sm:$0xff]   ;;  %v13814_v6 = vld [vmem:[%s17789_s3 + $0x860] sm:$0xff]  }
 0x1a0   :  { %12743 = vmatprep.subr.bf16.mxu0 %v13767_v8  ;;  %v13815_v8 = vld [vmem:[%s17789_s3 + $0x8e0] sm:$0xff]  }
 0x1a1   :  { %10359 = vmatmul.mubr.msk.bf16.vlgmr.msra.gmra.mrb[24].mxu1 %vm10358_vm14, %v14386_v62  ;;  %vm3867_vm14 = vcmp.eq.f32.partialorder %v14736_v59, 19.0 }
 0x1a2   :  { %10413 = vmatmul.mubr.msk.bf16.vlgmr.msra.gmra.mrb[28].mxu0 %vm10412_vm15, %v14386_v62  ;;  %12722 = vmatpush3.bf16.msra.mxu1 %v13768_v9  ;;  %v13816_v9 = vld [vmem:[%s17789_s3 + $0x820] sm:$0xff]   ;;  %vm15605_vm15 = vmpackc.low %vm3332_vm11, %vm3332_vm11  ;;  %vm4044_vm11 = vcmp.eq.f32.partialorder %v14734_v57, 20.0 }
 0x1a3   :  { %10465 = vmatprep.mubr.msk.bf16.mxu1 %vm10464_vm0, %v14386_v62  ;;  %12744 = vmatpush3.bf16.msra.mxu0 %v13769_v10  ;;  %v13817_v10 = vld [vmem:[%s17789_s3 + $0x8a0] sm:$0xff]   ;;  %vm15617_vm0 = vmpackc.low %vm3510_vm12, %vm3510_vm12  ;;  %vm4222_vm12 = vcmp.eq.f32.partialorder %v14734_v57, 21.0 }
 0x1a4   :  { %10519 = vmatprep.mubr.msk.bf16.mxu0 %vm10518_vm2, %v14386_v62  ;;  %12723 = vmatprep.subr.bf16.mxu1 %v13770_v11  ;;  %v13818_v11 = vld [vmem:[%s17789_s3 + $0x868] sm:$0xff]   ;;  %vm15643_vm2 = vmpackc.low %vm3867_vm14, %vm3867_vm14  ;;  %vm4579_vm14 = vcmp.eq.f32.partialorder %v14736_v59, 23.0 }
 0x1a5   :  { %12745 = vmatprep.subr.bf16.mxu0 %v13771_v12  ;;  %v13819_v12 = vld [vmem:[%s17789_s3 + $0x8e8] sm:$0xff]  }
 0x1a6   :  { %12724 = vmatpush3.bf16.msra.mxu1 %v13772_v13  ;;  %v13820_v13 = vld [vmem:[%s17789_s3 + $0x828] sm:$0xff]  }
 0x1a7   :  { %12746 = vmatpush3.bf16.msra.mxu0 %v13773_v14  ;;  %12725 = vmatprep.subr.bf16.mxu1 %v13774_v15  ;;  %v13821_v14 = vld [vmem:[%s17789_s3 + $0x8a8] sm:$0xff]   ;;  %v13822_v15 = vld [vmem:[%s17789_s3 + $0x870] sm:$0xff]  }
 0x1a8   :  { %12747 = vmatprep.subr.bf16.mxu0 %v13775_v16  ;;  %v13823_v16 = vld [vmem:[%s17789_s3 + $0x8f0] sm:$0xff]  }
 0x1aa   :  { %12726 = vmatpush3.bf16.msra.mxu1 %v13776_v17 }
 0x1ab   :  { %12748 = vmatpush3.bf16.msra.mxu0 %v13777_v18  ;;  %12727 = vmatprep.subr.bf16.mxu1 %v13778_v19  ;;  %v13824_v18 = vld [vmem:[%s17789_s3 + $0x830] sm:$0xff]  }
 0x1ac   :  { %12749 = vmatprep.subr.bf16.mxu0 %v13779_v20 }
 0x1ae   :  { %12728 = vmatpush3.bf16.msra.mxu1 %v13780_v21  ;;  %v13825_v21 = vld [vmem:[%s17789_s3 + $0x8b0] sm:$0xff]  }
 0x1af   :  { %12750 = vmatpush3.bf16.msra.mxu0 %v13781_v22  ;;  %12729 = vmatprep.subr.bf16.mxu1 %v13782_v23  ;;  %v13826_v22 = vld [vmem:[%s17789_s3 + $0x878] sm:$0xff]  }
 0x1b0   :  { %12751 = vmatprep.subr.bf16.mxu0 %v13783_v24 }
 0x1b2   :  { %12730 = vmatpush3.bf16.msra.mxu1 %v13784_v25 }
 0x1b3   :  { %12752 = vmatpush3.bf16.msra.mxu0 %v13785_v26  ;;  %12731 = vmatprep.subr.bf16.mxu1 %v13786_v27 }
 0x1b4   :  { %v12429_v32 = vpop.f32.mrb[0].mxu1  ;;  %12753 = vmatprep.subr.bf16.mxu0 %v13787_v28 }
 0x1b5   :  { %v12451_v34 = vpop.f32.mrb[4].mxu0  ;;  %v12430_v35 = vpop.f32.mrb[1].mxu1 }
 0x1b6   :  { %v12431_v39 = vadd.f32 %v12430_v35, %v12429_v32  ;;  %v12452_v40 = vpop.f32.mrb[5].mxu0  ;;  %12732 = vmatpush3.bf16.msra.mxu1 %v13788_v29  ;;  %v12432_v41 = vpop.f32.mrb[2].mxu1  ;;  %v13829_v35 = vld [vmem:[%s17789_s3 + $0x8b8] sm:$0xff]  }
 0x1b7   :  { %v12453_v42 = vadd.f32 %v12452_v40, %v12451_v34  ;;  %12754 = vmatpush3.bf16.msra.mxu0 %v13789_v36  ;;  %v12454_v43 = vpop.f32.mrb[6].mxu0  ;;  %v12433_v44 = vpop.f32.mrb[3].mxu1  ;;  %12733 = vmatprep.subr.bf16.mxu1 %v13790_v30  ;;  %v13827_v30 = vld [vmem:[%s17789_s3 + $0x8f8] sm:$0xff]   ;;  %v13832_v40 = vld [vmem:[%s17789_s3 + $0x900] sm:$0xff]   ;;  %v13871_v34 = vld [vmem:[%s17789_s3 + $0xad0] sm:$0xff]  }
 0x1b8   :  { %v12455_v54 = vpop.f32.mrb[7].mxu0  ;;  %12755 = vmatprep.subr.bf16.mxu0 %v13791_v31  ;;  %v13834_v43 = vld [vmem:[%s17789_s3 + $0x948] sm:$0xff]   ;;  %v13877_v41 = vld [vmem:[%s17789_s3 + $0xa98] sm:$0xff]  }
 0x1b9   :  { %v15473_v46 = vadd.f32 %v12453_v42, %v12431_v39  ;;  %v13831_v39 = vld [vmem:[%s17789_s3 + $0x9c0] sm:$0xff]   ;;  %v13835_v44 = vld [vmem:[%s17789_s3 + $0x9c8] sm:$0xff]  }
 0x1ba   :  { %12734 = vmatpush3.bf16.msra.mxu1 %v13792_v33  ;;  %v13828_v33 = vld [vmem:[%s17789_s3 + $0x838] sm:$0xff]   ;;  %v13833_v42 = vld [vmem:[%s17789_s3 + $0x980] sm:$0xff]   ;;  %v13836_v54 = vld [vmem:[%s17789_s3 + $0x908] sm:$0xff]  }
 0x1bb   :  { %12756 = vmatpush3.bf16.msra.mxu0 %v13793_v37  ;;  %12735 = vmatprep.subr.bf16.mxu1 %v13794_v38  ;;  %v13830_v37 = vld [vmem:[%s17789_s3 + $0x940] sm:$0xff]   ;;  %v13868_v31 = vld [vmem:[%s17789_s3 + $0xa08] sm:$0xff]   ;;  %v13874_v38 = vld [vmem:[%s17789_s3 + $0xa58] sm:$0xff]  }
 0x1bc   :  { %12757 = vmatprep.subr.bf16.mxu0 %v13795_v45  ;;  %v13837_v45 = vld [vmem:[%s17789_s3 + $0x988] sm:$0xff]  }
 0x1be   :  { %12736 = vmatpush3.bf16.msra.mxu1 %v13796_v47  ;;  %v13839_v47 = vld [vmem:[%s17789_s3 + $0x9d0] sm:$0xff]  }
 0x1bf   :  { %12758 = vmatpush3.bf16.msra.mxu0 %v13797_v49  ;;  %12765 = vmatprep.subr.bf16.mxu1 %v13798_v50  ;;  %v13841_v49 = vld [vmem:[%s17789_s3 + $0x990] sm:$0xff]   ;;  %v13842_v50 = vld [vmem:[%s17789_s3 + $0x958] sm:$0xff]  }
 0x1c0   :  { %12787 = vmatprep.subr.bf16.mxu0 %v13799_v51  ;;  %v13843_v51 = vld [vmem:[%s17789_s3 + $0x9d8] sm:$0xff]  }
 0x1c1   :  { %10467 = vmatmul.mubr.msk.bf16.vlgmr.msra.gmra.mrb[28].mxu1 %vm15481_vm6, %v14386_v62  ;;  %vm4223_vm6 = vcmp.eq.f32.partialorder %v14736_v59, 21.0 }
 0x1c2   :  { %10521 = vmatmul.mubr.msk.bf16.vlgmr.msra.gmra.mrb[32].mxu0 %vm10520_vm7, %v14386_v62  ;;  %12766 = vmatpush3.bf16.msra.mxu1 %v13800_v53  ;;  %v13845_v53 = vld [vmem:[%s17789_s3 + $0x998] sm:$0xff]   ;;  %vm15748_vm7 = vmpackc.low %vm3688_vm3, %vm3688_vm3  ;;  %vm4400_vm3 = vcmp.eq.f32.partialorder %v14734_v57, 22.0 }
 0x1c3   :  { %10573 = vmatprep.mubr.msk.bf16.mxu1 %vm15500_vm8, %v14386_v62  ;;  %12788 = vmatpush3.bf16.msra.mxu0 %v13801_v55  ;;  %v13846_v55 = vld [vmem:[%s17789_s3 + $0x960] sm:$0xff]   ;;  %vm15755_vm8 = vmpackc.low %vm3866_vm4, %vm3866_vm4  ;;  %vm4578_vm4 = vcmp.eq.f32.partialorder %v14734_v57, 23.0 }
 0x1c4   :  { %10627 = vmatprep.mubr.msk.bf16.mxu0 %vm10626_vm10, %v14386_v62  ;;  %12767 = vmatprep.subr.bf16.mxu1 %v13802_v56  ;;  %v13847_v56 = vld [vmem:[%s17789_s3 + $0x9e0] sm:$0xff]   ;;  %vm15783_vm10 = vmpackc.low %vm4223_vm6, %vm4223_vm6  ;;  %vm4935_vm6 = vcmp.eq.f32.partialorder %v14736_v59, 25.0 }
 0x1c5   :  { %12789 = vmatprep.subr.bf16.mxu0 %v13803_v58  ;;  %v13848_v58 = vld [vmem:[%s17789_s3 + $0x920] sm:$0xff]  }
 0x1c6   :  { %12768 = vmatpush3.bf16.msra.mxu1 %v13804_v60  ;;  %v13849_v60 = vld [vmem:[%s17789_s3 + $0x9a0] sm:$0xff]  }
 0x1c7   :  { %12790 = vmatpush3.bf16.msra.mxu0 %v13805_v7  ;;  %12769 = vmatprep.subr.bf16.mxu1 %v13806_v61  ;;  %v13850_v7 = vld [vmem:[%s17789_s3 + $0x968] sm:$0xff]  }
 0x1c8   :  { %12791 = vmatprep.subr.bf16.mxu0 %v13807_v63  ;;  %v13851_v61 = vld [vmem:[%s17789_s3 + $0x9e8] sm:$0xff]  }
 0x1c9   :  { %v13852_v63 = vld [vmem:[%s17789_s3 + $0x928] sm:$0xff]  }
 0x1ca   :  { %12770 = vmatpush3.bf16.msra.mxu1 %v13808_v0  ;;  %v13853_v0 = vld [vmem:[%s17789_s3 + $0x9a8] sm:$0xff]  }
 0x1cb   :  { %12792 = vmatpush3.bf16.msra.mxu0 %v13809_v1  ;;  %12771 = vmatprep.subr.bf16.mxu1 %v13810_v2  ;;  %v13854_v1 = vld [vmem:[%s17789_s3 + $0x970] sm:$0xff]  }
 0x1cc   :  { %12793 = vmatprep.subr.bf16.mxu0 %v13811_v3  ;;  %v13855_v2 = vld [vmem:[%s17789_s3 + $0x9f0] sm:$0xff]  }
 0x1ce   :  { %12772 = vmatpush3.bf16.msra.mxu1 %v13812_v4  ;;  %v13856_v4 = vld [vmem:[%s17789_s3 + $0x930] sm:$0xff]  }
 0x1cf   :  { %12794 = vmatpush3.bf16.msra.mxu0 %v13813_v5  ;;  %12773 = vmatprep.subr.bf16.mxu1 %v13814_v6 }
 0x1d0   :  { %12795 = vmatprep.subr.bf16.mxu0 %v13815_v8  ;;  %v13857_v8 = vld [vmem:[%s17789_s3 + $0x9b0] sm:$0xff]  }
 0x1d2   :  { %12774 = vmatpush3.bf16.msra.mxu1 %v13816_v9  ;;  %v13858_v9 = vld [vmem:[%s17789_s3 + $0x978] sm:$0xff]  }
 0x1d3   :  { %12796 = vmatpush3.bf16.msra.mxu0 %v13817_v10  ;;  %12775 = vmatprep.subr.bf16.mxu1 %v13818_v11 }
 0x1d4   :  { %v12473_v17 = vpop.f32.mrb[4].mxu1  ;;  %12797 = vmatprep.subr.bf16.mxu0 %v13819_v12 }
 0x1d5   :  { %v12495_v19 = vpop.f32.mrb[8].mxu0  ;;  %v12474_v20 = vpop.f32.mrb[5].mxu1 }
 0x1d6   :  { %v12475_v23 = vadd.f32 %v12474_v20, %v12473_v17  ;;  %v12496_v24 = vpop.f32.mrb[9].mxu0  ;;  %v12476_v25 = vpop.f32.mrb[6].mxu1  ;;  %12776 = vmatpush3.bf16.msra.mxu1 %v13820_v13  ;;  %v13901_v20 = vld [vmem:[%s17789_s3 + $0xb88] sm:$0xff]  }
 0x1d7   :  { %v12497_v26 = vadd.f32 %v12496_v24, %v12495_v19  ;;  %v12498_v27 = vpop.f32.mrb[10].mxu0  ;;  %12798 = vmatpush3.bf16.msra.mxu0 %v13821_v14  ;;  %v12477_v28 = vpop.f32.mrb[7].mxu1  ;;  %12777 = vmatprep.subr.bf16.mxu1 %v13822_v15  ;;  %v13861_v24 = vld [vmem:[%s17789_s3 + $0x9b8] sm:$0xff]   ;;  %v13862_v25 = vld [vmem:[%s17789_s3 + $0xa40] sm:$0xff]   ;;  %v13900_v19 = vld [vmem:[%s17789_s3 + $0xb08] sm:$0xff]  }
 0x1d8   :  { %v1017_v29 = vadd.f32 %v12475_v23, %v15473_v46  ;;  %v12499_v36 = vpop.f32.mrb[11].mxu0  ;;  %12799 = vmatprep.subr.bf16.mxu0 %v13823_v16  ;;  %v13838_v46 = vld [vmem:[%s17789_s3 + $0x950] sm:$0xff]   ;;  %v13864_v28 = vld [vmem:[%s17789_s3 + $0xa00] sm:$0xff]   ;;  %v13908_v27 = vld [vmem:[%s17789_s3 + $0xb18] sm:$0xff]  }
 0x1d9   :  { %v13866_v36 = vld [vmem:[%s17789_s3 + $0xa48] sm:$0xff]   ;;  %v13904_v23 = vld [vmem:[%s17789_s3 + $0xb10] sm:$0xff]  }
 0x1da   :  { %v15609_v32 = vadd.f32 %v12497_v26, %v1017_v29  ;;  %12778 = vmatpush3.bf16.msra.mxu1 %v13824_v18  ;;  %v13859_v18 = vld [vmem:[%s17789_s3 + $0x9f8] sm:$0xff]   ;;  %v13863_v26 = vld [vmem:[%s17789_s3 + $0xac0] sm:$0xff]  }
 0x1db   :  { %12800 = vmatpush3.bf16.msra.mxu0 %v13825_v21  ;;  %12779 = vmatprep.subr.bf16.mxu1 %v13826_v22  ;;  %v13860_v22 = vld [vmem:[%s17789_s3 + $0x938] sm:$0xff]   ;;  %v13865_v29 = vld [vmem:[%s17789_s3 + $0xa80] sm:$0xff]  }
 0x1dc   :  { %12801 = vmatprep.subr.bf16.mxu0 %v13827_v30  ;;  %v13867_v30 = vld [vmem:[%s17789_s3 + $0xac8] sm:$0xff]  }
 0x1de   :  { %12780 = vmatpush3.bf16.msra.mxu1 %v13828_v33  ;;  %v13870_v33 = vld [vmem:[%s17789_s3 + $0xa50] sm:$0xff]  }
 0x1df   :  { %12802 = vmatpush3.bf16.msra.mxu0 %v13829_v35  ;;  %12809 = vmatprep.subr.bf16.mxu1 %v13830_v37  ;;  %v13872_v35 = vld [vmem:[%s17789_s3 + $0xa10] sm:$0xff]  }
 0x1e0   :  { %12831 = vmatprep.subr.bf16.mxu0 %v13831_v39  ;;  %v13873_v37 = vld [vmem:[%s17789_s3 + $0xa90] sm:$0xff]   ;;  %v13875_v39 = vld [vmem:[%s17789_s3 + $0xad8] sm:$0xff]  }
 0x1e1   :  { %10575 = vmatmul.mubr.msk.bf16.vlgmr.msra.gmra.mrb[32].mxu1 %vm15605_vm15, %v14386_v62  ;;  %vm15891_vm15 = vmpackc.low %vm4044_vm11, %vm4044_vm11  ;;  %vm4756_vm11 = vcmp.eq.f32.partialorder %v14734_v57, 24.0 }
 0x1e2   :  { %10629 = vmatmul.mubr.msk.bf16.vlgmr.msra.gmra.mrb[36].mxu0 %vm15617_vm0, %v14386_v62  ;;  %12810 = vmatpush3.bf16.msra.mxu1 %v13832_v40  ;;  %v13876_v40 = vld [vmem:[%s17789_s3 + $0xa18] sm:$0xff]   ;;  %vm15898_vm0 = vmpackc.low %vm4222_vm12, %vm4222_vm12  ;;  %vm4934_vm12 = vcmp.eq.f32.partialorder %v14734_v57, 25.0 }
 0x1e3   :  { %10681 = vmatprep.mubr.msk.bf16.mxu1 %vm15630_vm1, %v14386_v62  ;;  %12832 = vmatpush3.bf16.msra.mxu0 %v13833_v42  ;;  %v13878_v42 = vld [vmem:[%s17789_s3 + $0xa60] sm:$0xff]   ;;  %vm15913_vm1 = vmpackc.low %vm4401_vm13, %vm4401_vm13  ;;  %vm5113_vm13 = vcmp.eq.f32.partialorder %v14736_v59, 26.0 }
 0x1e4   :  { %10735 = vmatprep.mubr.msk.bf16.mxu0 %vm15643_vm2, %v14386_v62  ;;  %12811 = vmatprep.subr.bf16.mxu1 %v13834_v43  ;;  %v13879_v43 = vld [vmem:[%s17789_s3 + $0xae0] sm:$0xff]   ;;  %vm15926_vm2 = vmpackc.low %vm4579_vm14, %vm4579_vm14  ;;  %vm5291_vm14 = vcmp.eq.f32.partialorder %v14736_v59, 27.0 }
 0x1e5   :  { %12833 = vmatprep.subr.bf16.mxu0 %v13835_v44  ;;  %v13880_v44 = vld [vmem:[%s17789_s3 + $0xa20] sm:$0xff]  }
 0x1e6   :  { %12812 = vmatpush3.bf16.msra.mxu1 %v13836_v54  ;;  %v13881_v54 = vld [vmem:[%s17789_s3 + $0xaa0] sm:$0xff]  }
 0x1e7   :  { %12834 = vmatpush3.bf16.msra.mxu0 %v13837_v45  ;;  %12813 = vmatprep.subr.bf16.mxu1 %v13838_v46  ;;  %v13882_v45 = vld [vmem:[%s17789_s3 + $0xa68] sm:$0xff]  }
 0x1e8   :  { %12835 = vmatprep.subr.bf16.mxu0 %v13839_v47  ;;  %v13883_v46 = vld [vmem:[%s17789_s3 + $0xae8] sm:$0xff]  }
 0x1e9   :  { %v13884_v47 = vld [vmem:[%s17789_s3 + $0xa28] sm:$0xff]  }
 0x1ea   :  { %12814 = vmatpush3.bf16.msra.mxu1 %v13840_v48  ;;  %v13885_v48 = vld [vmem:[%s17789_s3 + $0xaa8] sm:$0xff]  }
 0x1eb   :  { %12836 = vmatpush3.bf16.msra.mxu0 %v13841_v49  ;;  %12815 = vmatprep.subr.bf16.mxu1 %v13842_v50  ;;  %v13886_v49 = vld [vmem:[%s17789_s3 + $0xa70] sm:$0xff]  }
 0x1ec   :  { %12837 = vmatprep.subr.bf16.mxu0 %v13843_v51  ;;  %v13887_v50 = vld [vmem:[%s17789_s3 + $0xaf0] sm:$0xff]  }
 0x1ee   :  { %12816 = vmatpush3.bf16.msra.mxu1 %v13844_v52  ;;  %v13888_v52 = vld [vmem:[%s17789_s3 + $0xa30] sm:$0xff]  }
 0x1ef   :  { %12838 = vmatpush3.bf16.msra.mxu0 %v13845_v53  ;;  %12817 = vmatprep.subr.bf16.mxu1 %v13846_v55 }
 0x1f0   :  { %12839 = vmatprep.subr.bf16.mxu0 %v13847_v56  ;;  %v13889_v56 = vld [vmem:[%s17789_s3 + $0xab0] sm:$0xff]  }
 0x1f2   :  { %12818 = vmatpush3.bf16.msra.mxu1 %v13848_v58  ;;  %v13890_v58 = vld [vmem:[%s17789_s3 + $0xa78] sm:$0xff]  }
 0x1f3   :  { %12840 = vmatpush3.bf16.msra.mxu0 %v13849_v60  ;;  %12819 = vmatprep.subr.bf16.mxu1 %v13850_v7 }
 0x1f4   :  { %v12517_v3 = vpop.f32.mrb[8].mxu1  ;;  %12841 = vmatprep.subr.bf16.mxu0 %v13851_v61 }
 0x1f5   :  { %v12539_v5 = vpop.f32.mrb[12].mxu0  ;;  %v12518_v6 = vpop.f32.mrb[9].mxu1 }
 0x1f6   :  { %v12519_v10 = vadd.f32 %v12518_v6, %v12517_v3  ;;  %v12540_v11 = vpop.f32.mrb[13].mxu0  ;;  %v12520_v12 = vpop.f32.mrb[10].mxu1  ;;  %12820 = vmatpush3.bf16.msra.mxu1 %v13852_v63  ;;  %v13933_v6 = vld [vmem:[%s17789_s3 + $0xc88] sm:$0xff]  }
 0x1f7   :  { %v12541_v13 = vadd.f32 %v12540_v11, %v12539_v5  ;;  %v12542_v14 = vpop.f32.mrb[14].mxu0  ;;  %12842 = vmatpush3.bf16.msra.mxu0 %v13853_v0  ;;  %v12521_v15 = vpop.f32.mrb[11].mxu1  ;;  %12821 = vmatprep.subr.bf16.mxu1 %v13854_v1  ;;  %v13894_v12 = vld [vmem:[%s17789_s3 + $0xb40] sm:$0xff]   ;;  %v13932_v5 = vld [vmem:[%s17789_s3 + $0xc08] sm:$0xff]   ;;  %v13937_v11 = vld [vmem:[%s17789_s3 + $0xc90] sm:$0xff]  }
 0x1f8   :  { %v1373_v16 = vadd.f32 %v12519_v10, %v15609_v32  ;;  %v12543_v17 = vpop.f32.mrb[15].mxu0  ;;  %12843 = vmatprep.subr.bf16.mxu0 %v13855_v2  ;;  %v13869_v32 = vld [vmem:[%s17789_s3 + $0xa88] sm:$0xff]   ;;  %v13893_v10 = vld [vmem:[%s17789_s3 + $0xab8] sm:$0xff]   ;;  %v13896_v15 = vld [vmem:[%s17789_s3 + $0xb00] sm:$0xff]  }
 0x1f9   :  { %v13898_v17 = vld [vmem:[%s17789_s3 + $0xb48] sm:$0xff]   ;;  %v13940_v14 = vld [vmem:[%s17789_s3 + $0xc18] sm:$0xff]  }
 0x1fa   :  { %v15759_v21 = vadd.f32 %v12541_v13, %v1373_v16  ;;  %12822 = vmatpush3.bf16.msra.mxu1 %v13856_v4  ;;  %v13891_v4 = vld [vmem:[%s17789_s3 + $0xaf8] sm:$0xff]   ;;  %v13895_v13 = vld [vmem:[%s17789_s3 + $0xbc0] sm:$0xff]  }
 0x1fb   :  { %12844 = vmatpush3.bf16.msra.mxu0 %v13857_v8  ;;  %12823 = vmatprep.subr.bf16.mxu1 %v13858_v9  ;;  %v13892_v9 = vld [vmem:[%s17789_s3 + $0xa38] sm:$0xff]   ;;  %v13897_v16 = vld [vmem:[%s17789_s3 + $0xb80] sm:$0xff]  }
 0x1fc   :  { %12845 = vmatprep.subr.bf16.mxu0 %v13859_v18  ;;  %v13899_v18 = vld [vmem:[%s17789_s3 + $0xbc8] sm:$0xff]  }
 0x1fe   :  { %12824 = vmatpush3.bf16.msra.mxu1 %v13860_v22  ;;  %v13903_v22 = vld [vmem:[%s17789_s3 + $0xbd0] sm:$0xff]  }
 0x1ff   :  { %12846 = vmatpush3.bf16.msra.mxu0 %v13861_v24  ;;  %12853 = vmatprep.subr.bf16.mxu1 %v13862_v25  ;;  %v13905_v24 = vld [vmem:[%s17789_s3 + $0xb90] sm:$0xff]   ;;  %v13906_v25 = vld [vmem:[%s17789_s3 + $0xb58] sm:$0xff]  }
 0x200   :  { %12875 = vmatprep.subr.bf16.mxu0 %v13863_v26  ;;  %v13907_v26 = vld [vmem:[%s17789_s3 + $0xbd8] sm:$0xff]  }
 0x201   :  { %10683 = vmatmul.mubr.msk.bf16.vlgmr.msra.gmra.mrb[36].mxu1 %vm15748_vm7, %v14386_v62  ;;  %vm16034_vm7 = vmpackc.low %vm4400_vm3, %vm4400_vm3  ;;  %vm5112_vm3 = vcmp.eq.f32.partialorder %v14734_v57, 26.0 }
 0x202   :  { %10737 = vmatmul.mubr.msk.bf16.vlgmr.msra.gmra.mrb[40].mxu0 %vm15755_vm8, %v14386_v62  ;;  %12854 = vmatpush3.bf16.msra.mxu1 %v13864_v28  ;;  %v13909_v28 = vld [vmem:[%s17789_s3 + $0xb98] sm:$0xff]   ;;  %vm16041_vm8 = vmpackc.low %vm4578_vm4, %vm4578_vm4  ;;  %vm5290_vm4 = vcmp.eq.f32.partialorder %v14734_v57, 27.0 }
 0x203   :  { %10789 = vmatprep.mubr.msk.bf16.mxu1 %vm15767_vm9, %v14386_v62  ;;  %12876 = vmatpush3.bf16.msra.mxu0 %v13865_v29  ;;  %v13910_v29 = vld [vmem:[%s17789_s3 + $0xb60] sm:$0xff]   ;;  %vm16059_vm9 = vmpackc.low %vm4757_vm5, %vm4757_vm5  ;;  %vm5469_vm5 = vcmp.eq.f32.partialorder %v14736_v59, 28.0 }
 0x204   :  { %10843 = vmatprep.mubr.msk.bf16.mxu0 %vm15783_vm10, %v14386_v62  ;;  %12855 = vmatprep.subr.bf16.mxu1 %v13866_v36  ;;  %v13911_v36 = vld [vmem:[%s17789_s3 + $0xbe0] sm:$0xff]   ;;  %vm16069_vm10 = vmpackc.low %vm4935_vm6, %vm4935_vm6  ;;  %vm5647_vm6 = vcmp.eq.f32.partialorder %v14736_v59, 29.0 }
 0x205   :  { %12877 = vmatprep.subr.bf16.mxu0 %v13867_v30  ;;  %v13912_v30 = vld [vmem:[%s17789_s3 + $0xb20] sm:$0xff]  }
 0x206   :  { %12856 = vmatpush3.bf16.msra.mxu1 %v13868_v31  ;;  %v13913_v31 = vld [vmem:[%s17789_s3 + $0xba0] sm:$0xff]  }
 0x207   :  { %12878 = vmatpush3.bf16.msra.mxu0 %v13869_v32  ;;  %12857 = vmatprep.subr.bf16.mxu1 %v13870_v33  ;;  %v13914_v32 = vld [vmem:[%s17789_s3 + $0xb68] sm:$0xff]  }
 0x208   :  { %12879 = vmatprep.subr.bf16.mxu0 %v13871_v34  ;;  %v13915_v33 = vld [vmem:[%s17789_s3 + $0xbe8] sm:$0xff]  }
 0x209   :  { %v13916_v34 = vld [vmem:[%s17789_s3 + $0xb28] sm:$0xff]  }
 0x20a   :  { %12858 = vmatpush3.bf16.msra.mxu1 %v13872_v35  ;;  %v13917_v35 = vld [vmem:[%s17789_s3 + $0xba8] sm:$0xff]  }
 0x20b   :  { %12880 = vmatpush3.bf16.msra.mxu0 %v13873_v37  ;;  %12859 = vmatprep.subr.bf16.mxu1 %v13874_v38  ;;  %v13918_v37 = vld [vmem:[%s17789_s3 + $0xb70] sm:$0xff]  }
 0x20c   :  { %12881 = vmatprep.subr.bf16.mxu0 %v13875_v39  ;;  %v13919_v38 = vld [vmem:[%s17789_s3 + $0xbf0] sm:$0xff]  }
 0x20e   :  { %12860 = vmatpush3.bf16.msra.mxu1 %v13876_v40  ;;  %v13920_v40 = vld [vmem:[%s17789_s3 + $0xb30] sm:$0xff]  }
 0x20f   :  { %12882 = vmatpush3.bf16.msra.mxu0 %v13877_v41  ;;  %12861 = vmatprep.subr.bf16.mxu1 %v13878_v42 }
 0x210   :  { %12883 = vmatprep.subr.bf16.mxu0 %v13879_v43  ;;  %v13921_v43 = vld [vmem:[%s17789_s3 + $0xbb0] sm:$0xff]  }
 0x212   :  { %12862 = vmatpush3.bf16.msra.mxu1 %v13880_v44  ;;  %v13922_v44 = vld [vmem:[%s17789_s3 + $0xb78] sm:$0xff]  }
 0x213   :  { %12884 = vmatpush3.bf16.msra.mxu0 %v13881_v54  ;;  %12863 = vmatprep.subr.bf16.mxu1 %v13882_v45 }
 0x214   :  { %v12561_v51 = vpop.f32.mrb[12].mxu1  ;;  %12885 = vmatprep.subr.bf16.mxu0 %v13883_v46 }
 0x215   :  { %v12583_v53 = vpop.f32.mrb[16].mxu0  ;;  %v12562_v55 = vpop.f32.mrb[13].mxu1 }
 0x216   :  { %v12563_v60 = vadd.f32 %v12562_v55, %v12561_v51  ;;  %v12584_v7 = vpop.f32.mrb[17].mxu0  ;;  %v12564_v61 = vpop.f32.mrb[14].mxu1  ;;  %12864 = vmatpush3.bf16.msra.mxu1 %v13884_v47  ;;  %v13965_v55 = vld [vmem:[%s17789_s3 + $0xd88] sm:$0xff]  }
 0x217   :  { %v12585_v63 = vadd.f32 %v12584_v7, %v12583_v53  ;;  %v12586_v0 = vpop.f32.mrb[18].mxu0  ;;  %12886 = vmatpush3.bf16.msra.mxu0 %v13885_v48  ;;  %v12565_v1 = vpop.f32.mrb[15].mxu1  ;;  %12865 = vmatprep.subr.bf16.mxu1 %v13886_v49  ;;  %v13926_v7 = vld [vmem:[%s17789_s3 + $0xc40] sm:$0xff]   ;;  %v13964_v53 = vld [vmem:[%s17789_s3 + $0xd08] sm:$0xff]   ;;  %v13970_v61 = vld [vmem:[%s17789_s3 + $0xd58] sm:$0xff]  }
 0x218   :  { %v1729_v2 = vadd.f32 %v12563_v60, %v15759_v21  ;;  %v12587_v3 = vpop.f32.mrb[19].mxu0  ;;  %12887 = vmatprep.subr.bf16.mxu0 %v13887_v50  ;;  %v13902_v21 = vld [vmem:[%s17789_s3 + $0xb50] sm:$0xff]   ;;  %v13925_v60 = vld [vmem:[%s17789_s3 + $0xbb8] sm:$0xff]   ;;  %v13928_v1 = vld [vmem:[%s17789_s3 + $0xc00] sm:$0xff]  }
 0x219   :  { %v13930_v3 = vld [vmem:[%s17789_s3 + $0xc48] sm:$0xff]   ;;  %v13972_v0 = vld [vmem:[%s17789_s3 + $0xd18] sm:$0xff]  }
 0x21a   :  { %v15902_v8 = vadd.f32 %v12585_v63, %v1729_v2  ;;  %12866 = vmatpush3.bf16.msra.mxu1 %v13888_v52  ;;  %v13923_v52 = vld [vmem:[%s17789_s3 + $0xbf8] sm:$0xff]   ;;  %v13927_v63 = vld [vmem:[%s17789_s3 + $0xcc0] sm:$0xff]  }
 0x21b   :  { %12888 = vmatpush3.bf16.msra.mxu0 %v13889_v56  ;;  %12867 = vmatprep.subr.bf16.mxu1 %v13890_v58  ;;  %v13924_v58 = vld [vmem:[%s17789_s3 + $0xb38] sm:$0xff]   ;;  %v13929_v2 = vld [vmem:[%s17789_s3 + $0xc80] sm:$0xff]  }
 0x21c   :  { %12889 = vmatprep.subr.bf16.mxu0 %v13891_v4  ;;  %v13931_v4 = vld [vmem:[%s17789_s3 + $0xcc8] sm:$0xff]  }
 0x21e   :  { %12868 = vmatpush3.bf16.msra.mxu1 %v13892_v9  ;;  %v13935_v9 = vld [vmem:[%s17789_s3 + $0xcd0] sm:$0xff]  }
 0x21f   :  { %12890 = vmatpush3.bf16.msra.mxu0 %v13893_v10  ;;  %12897 = vmatprep.subr.bf16.mxu1 %v13894_v12  ;;  %v13936_v10 = vld [vmem:[%s17789_s3 + $0xc10] sm:$0xff]   ;;  %v13938_v12 = vld [vmem:[%s17789_s3 + $0xc58] sm:$0xff]  }
 0x220   :  { %12919 = vmatprep.subr.bf16.mxu0 %v13895_v13  ;;  %v13939_v13 = vld [vmem:[%s17789_s3 + $0xcd8] sm:$0xff]  }
 0x221   :  { %10791 = vmatmul.mubr.msk.bf16.vlgmr.msra.gmra.mrb[40].mxu1 %vm15891_vm15, %v14386_v62  ;;  %vm16177_vm15 = vmpackc.low %vm4756_vm11, %vm4756_vm11  ;;  %vm5468_vm11 = vcmp.eq.f32.partialorder %v14734_v57, 28.0 }
 0x222   :  { %10845 = vmatmul.mubr.msk.bf16.vlgmr.msra.gmra.mrb[44].mxu0 %vm15898_vm0, %v14386_v62  ;;  %12898 = vmatpush3.bf16.msra.mxu1 %v13896_v15  ;;  %v13941_v15 = vld [vmem:[%s17789_s3 + $0xc98] sm:$0xff]   ;;  %vm16184_vm0 = vmpackc.low %vm4934_vm12, %vm4934_vm12  ;;  %vm5646_vm12 = vcmp.eq.f32.partialorder %v14734_v57, 29.0 }
 0x223   :  { %10897 = vmatprep.mubr.msk.bf16.mxu1 %vm15913_vm1, %v14386_v62  ;;  %12920 = vmatpush3.bf16.msra.mxu0 %v13897_v16  ;;  %v13942_v16 = vld [vmem:[%s17789_s3 + $0xc60] sm:$0xff]   ;;  %vm16199_vm1 = vmpackc.low %vm5113_vm13, %vm5113_vm13  ;;  %vm5825_vm13 = vcmp.eq.f32.partialorder %v14736_v59, 30.0 }
 0x224   :  { %10951 = vmatprep.mubr.msk.bf16.mxu0 %vm15926_vm2, %v14386_v62  ;;  %12899 = vmatprep.subr.bf16.mxu1 %v13898_v17  ;;  %v13943_v17 = vld [vmem:[%s17789_s3 + $0xce0] sm:$0xff]   ;;  %vm16209_vm2 = vmpackc.low %vm5291_vm14, %vm5291_vm14  ;;  %vm6003_vm14 = vcmp.eq.f32.partialorder %v14736_v59, 31.0 }
 0x225   :  { %12921 = vmatprep.subr.bf16.mxu0 %v13899_v18  ;;  %v13944_v18 = vld [vmem:[%s17789_s3 + $0xc20] sm:$0xff]  }
 0x226   :  { %12900 = vmatpush3.bf16.msra.mxu1 %v13900_v19  ;;  %v13945_v19 = vld [vmem:[%s17789_s3 + $0xca0] sm:$0xff]  }
 0x227   :  { %12922 = vmatpush3.bf16.msra.mxu0 %v13901_v20  ;;  %12901 = vmatprep.subr.bf16.mxu1 %v13902_v21  ;;  %v13946_v20 = vld [vmem:[%s17789_s3 + $0xc68] sm:$0xff]  }
 0x228   :  { %12923 = vmatprep.subr.bf16.mxu0 %v13903_v22  ;;  %v13947_v21 = vld [vmem:[%s17789_s3 + $0xce8] sm:$0xff]  }
 0x229   :  { %v13948_v22 = vld [vmem:[%s17789_s3 + $0xc28] sm:$0xff]  }
 0x22a   :  { %12902 = vmatpush3.bf16.msra.mxu1 %v13904_v23  ;;  %v13949_v23 = vld [vmem:[%s17789_s3 + $0xca8] sm:$0xff]  }
 0x22b   :  { %12924 = vmatpush3.bf16.msra.mxu0 %v13905_v24  ;;  %12903 = vmatprep.subr.bf16.mxu1 %v13906_v25  ;;  %v13950_v24 = vld [vmem:[%s17789_s3 + $0xc70] sm:$0xff]  }
 0x22c   :  { %12925 = vmatprep.subr.bf16.mxu0 %v13907_v26  ;;  %v13951_v25 = vld [vmem:[%s17789_s3 + $0xcf0] sm:$0xff]  }
 0x22e   :  { %12904 = vmatpush3.bf16.msra.mxu1 %v13908_v27  ;;  %v13952_v27 = vld [vmem:[%s17789_s3 + $0xc30] sm:$0xff]  }
 0x22f   :  { %12926 = vmatpush3.bf16.msra.mxu0 %v13909_v28  ;;  %12905 = vmatprep.subr.bf16.mxu1 %v13910_v29 }
 0x230   :  { %12927 = vmatprep.subr.bf16.mxu0 %v13911_v36  ;;  %v13953_v36 = vld [vmem:[%s17789_s3 + $0xcb0] sm:$0xff]  }
 0x232   :  { %12906 = vmatpush3.bf16.msra.mxu1 %v13912_v30  ;;  %v13954_v30 = vld [vmem:[%s17789_s3 + $0xc78] sm:$0xff]  }
 0x233   :  { %12928 = vmatpush3.bf16.msra.mxu0 %v13913_v31  ;;  %12907 = vmatprep.subr.bf16.mxu1 %v13914_v32 }
 0x234   :  { %v12605_v39 = vpop.f32.mrb[16].mxu1  ;;  %12929 = vmatprep.subr.bf16.mxu0 %v13915_v33 }
 0x235   :  { %v12627_v41 = vpop.f32.mrb[20].mxu0  ;;  %v12606_v42 = vpop.f32.mrb[17].mxu1 }
 0x236   :  { %v12607_v54 = vadd.f32 %v12606_v42, %v12605_v39  ;;  %v12628_v45 = vpop.f32.mrb[21].mxu0  ;;  %v12608_v46 = vpop.f32.mrb[18].mxu1  ;;  %12908 = vmatpush3.bf16.msra.mxu1 %v13916_v34  ;;  %v13997_v42 = vld [vmem:[%s17789_s3 + $0xe88] sm:$0xff]  }
 0x237   :  { %v12629_v47 = vadd.f32 %v12628_v45, %v12627_v41  ;;  %v12630_v48 = vpop.f32.mrb[22].mxu0  ;;  %12930 = vmatpush3.bf16.msra.mxu0 %v13917_v35  ;;  %v12609_v49 = vpop.f32.mrb[19].mxu1  ;;  %12909 = vmatprep.subr.bf16.mxu1 %v13918_v37  ;;  %v13958_v46 = vld [vmem:[%s17789_s3 + $0xd40] sm:$0xff]   ;;  %v13996_v41 = vld [vmem:[%s17789_s3 + $0xe08] sm:$0xff]   ;;  %v14001_v45 = vld [vmem:[%s17789_s3 + $0xe90] sm:$0xff]  }
 0x238   :  { %v2085_v50 = vadd.f32 %v12607_v54, %v15902_v8  ;;  %v12631_v51 = vpop.f32.mrb[23].mxu0  ;;  %12931 = vmatprep.subr.bf16.mxu0 %v13919_v38  ;;  %v13934_v8 = vld [vmem:[%s17789_s3 + $0xc50] sm:$0xff]   ;;  %v13957_v54 = vld [vmem:[%s17789_s3 + $0xcb8] sm:$0xff]   ;;  %v13959_v48 = vld [vmem:[%s17789_s3 + $0xdc0] sm:$0xff]  }
 0x239   :  { %v13960_v49 = vld [vmem:[%s17789_s3 + $0xd00] sm:$0xff]   ;;  %v13962_v51 = vld [vmem:[%s17789_s3 + $0xd48] sm:$0xff]  }
 0x23a   :  { %v16045_v56 = vadd.f32 %v12629_v47, %v2085_v50  ;;  %12910 = vmatpush3.bf16.msra.mxu1 %v13920_v40  ;;  %v13955_v40 = vld [vmem:[%s17789_s3 + $0xcf8] sm:$0xff]   ;;  %v13961_v50 = vld [vmem:[%s17789_s3 + $0xd80] sm:$0xff]  }
 0x23b   :  { %12932 = vmatpush3.bf16.msra.mxu0 %v13921_v43  ;;  %12911 = vmatprep.subr.bf16.mxu1 %v13922_v44  ;;  %v13956_v44 = vld [vmem:[%s17789_s3 + $0xc38] sm:$0xff]  }
 0x23c   :  { %12933 = vmatprep.subr.bf16.mxu0 %v13923_v52  ;;  %v13963_v52 = vld [vmem:[%s17789_s3 + $0xdc8] sm:$0xff]   ;;  %v14003_v47 = vld [vmem:[%s17789_s3 + $0xed8] sm:$0xff]  }
 0x23e   :  { %12912 = vmatpush3.bf16.msra.mxu1 %v13924_v58  ;;  %v13967_v58 = vld [vmem:[%s17789_s3 + $0xdd0] sm:$0xff]  }
 0x23f   :  { %12934 = vmatpush3.bf16.msra.mxu0 %v13925_v60  ;;  %12941 = vmatprep.subr.bf16.mxu1 %v13926_v7  ;;  %v13968_v60 = vld [vmem:[%s17789_s3 + $0xd10] sm:$0xff]  }
 0x240   :  { %12963 = vmatprep.subr.bf16.mxu0 %v13927_v63  ;;  %v13969_v7 = vld [vmem:[%s17789_s3 + $0xd90] sm:$0xff]   ;;  %v13971_v63 = vld [vmem:[%s17789_s3 + $0xdd8] sm:$0xff]  }
 0x241   :  { %10899 = vmatmul.mubr.msk.bf16.vlgmr.msra.gmra.mrb[44].mxu1 %vm16034_vm7, %v14386_v62  ;;  %vm16320_vm7 = vmpackc.low %vm5112_vm3, %vm5112_vm3  ;;  %vm5824_vm3 = vcmp.eq.f32.partialorder %v14734_v57, 30.0 }
 0x242   :  { %10953 = vmatmul.mubr.msk.bf16.vlgmr.msra.gmra.mrb[48].mxu0 %vm16041_vm8, %v14386_v62  ;;  %12942 = vmatpush3.bf16.msra.mxu1 %v13928_v1  ;;  %v13973_v1 = vld [vmem:[%s17789_s3 + $0xd98] sm:$0xff]   ;;  %vm16327_vm8 = vmpackc.low %vm5290_vm4, %vm5290_vm4  ;;  %vm6002_vm4 = vcmp.eq.f32.partialorder %v14734_v57, 31.0 }
 0x243   :  { %11005 = vmatprep.mubr.msk.bf16.mxu1 %vm16059_vm9, %v14386_v62  ;;  %12964 = vmatpush3.bf16.msra.mxu0 %v13929_v2  ;;  %v13974_v2 = vld [vmem:[%s17789_s3 + $0xd60] sm:$0xff]   ;;  %vm16342_vm9 = vmpackc.low %vm5469_vm5, %vm5469_vm5  ;;  %vm6181_vm5 = vcmp.eq.f32.partialorder %v14736_v59, 32.0 }
 0x244   :  { %11059 = vmatprep.mubr.msk.bf16.mxu0 %vm16069_vm10, %v14386_v62  ;;  %12943 = vmatprep.subr.bf16.mxu1 %v13930_v3  ;;  %v13975_v3 = vld [vmem:[%s17789_s3 + $0xde0] sm:$0xff]   ;;  %vm16352_vm10 = vmpackc.low %vm5647_vm6, %vm5647_vm6  ;;  %vm6359_vm6 = vcmp.eq.f32.partialorder %v14736_v59, 33.0 }
 0x245   :  { %12965 = vmatprep.subr.bf16.mxu0 %v13931_v4  ;;  %v13976_v4 = vld [vmem:[%s17789_s3 + $0xd20] sm:$0xff]  }
 0x246   :  { %12944 = vmatpush3.bf16.msra.mxu1 %v13932_v5  ;;  %v13977_v5 = vld [vmem:[%s17789_s3 + $0xda0] sm:$0xff]  }
 0x247   :  { %12966 = vmatpush3.bf16.msra.mxu0 %v13933_v6  ;;  %12945 = vmatprep.subr.bf16.mxu1 %v13934_v8  ;;  %v13978_v6 = vld [vmem:[%s17789_s3 + $0xd68] sm:$0xff]  }
 0x248   :  { %12967 = vmatprep.subr.bf16.mxu0 %v13935_v9  ;;  %v13979_v8 = vld [vmem:[%s17789_s3 + $0xde8] sm:$0xff]  }
 0x249   :  { %v13980_v9 = vld [vmem:[%s17789_s3 + $0xd28] sm:$0xff]  }
 0x24a   :  { %12946 = vmatpush3.bf16.msra.mxu1 %v13936_v10  ;;  %v13981_v10 = vld [vmem:[%s17789_s3 + $0xda8] sm:$0xff]  }
 0x24b   :  { %12968 = vmatpush3.bf16.msra.mxu0 %v13937_v11  ;;  %12947 = vmatprep.subr.bf16.mxu1 %v13938_v12  ;;  %v13982_v11 = vld [vmem:[%s17789_s3 + $0xd70] sm:$0xff]  }
 0x24c   :  { %12969 = vmatprep.subr.bf16.mxu0 %v13939_v13  ;;  %v13983_v13 = vld [vmem:[%s17789_s3 + $0xdf0] sm:$0xff]  }
 0x24e   :  { %12948 = vmatpush3.bf16.msra.mxu1 %v13940_v14 }
 0x24f   :  { %12970 = vmatpush3.bf16.msra.mxu0 %v13941_v15  ;;  %12949 = vmatprep.subr.bf16.mxu1 %v13942_v16  ;;  %v13984_v16 = vld [vmem:[%s17789_s3 + $0xd30] sm:$0xff]  }
 0x250   :  { %12971 = vmatprep.subr.bf16.mxu0 %v13943_v17 }
 0x252   :  { %12950 = vmatpush3.bf16.msra.mxu1 %v13944_v18 }
 0x253   :  { %12972 = vmatpush3.bf16.msra.mxu0 %v13945_v19  ;;  %12951 = vmatprep.subr.bf16.mxu1 %v13946_v20 }
 0x254   :  { %v12649_v26 = vpop.f32.mrb[20].mxu1  ;;  %12973 = vmatprep.subr.bf16.mxu0 %v13947_v21 }
 0x255   :  { %v12671_v28 = vpop.f32.mrb[24].mxu0  ;;  %v12650_v29 = vpop.f32.mrb[21].mxu1 }
 0x256   :  { %v12651_v31 = vadd.f32 %v12650_v29, %v12649_v26  ;;  %v12672_v32 = vpop.f32.mrb[25].mxu0  ;;  %v12652_v33 = vpop.f32.mrb[22].mxu1  ;;  %12952 = vmatpush3.bf16.msra.mxu1 %v13948_v22  ;;  %v14029_v29 = vld [vmem:[%s17789_s3 + $0xf88] sm:$0xff]  }
 0x257   :  { %v12673_v34 = vadd.f32 %v12672_v32, %v12671_v28  ;;  %v12674_v35 = vpop.f32.mrb[26].mxu0  ;;  %12974 = vmatpush3.bf16.msra.mxu0 %v13949_v23  ;;  %v12653_v37 = vpop.f32.mrb[23].mxu1  ;;  %12953 = vmatprep.subr.bf16.mxu1 %v13950_v24  ;;  %v13985_v23 = vld [vmem:[%s17789_s3 + $0xdb0] sm:$0xff]   ;;  %v13986_v24 = vld [vmem:[%s17789_s3 + $0xd78] sm:$0xff]   ;;  %v13990_v33 = vld [vmem:[%s17789_s3 + $0xe40] sm:$0xff]  }
 0x258   :  { %v2441_v38 = vadd.f32 %v12651_v31, %v16045_v56  ;;  %v12675_v39 = vpop.f32.mrb[27].mxu0  ;;  %12975 = vmatprep.subr.bf16.mxu0 %v13951_v25  ;;  %v13966_v56 = vld [vmem:[%s17789_s3 + $0xd50] sm:$0xff]   ;;  %v13989_v31 = vld [vmem:[%s17789_s3 + $0xdb8] sm:$0xff]   ;;  %v13991_v35 = vld [vmem:[%s17789_s3 + $0xec0] sm:$0xff]  }
 0x259   :  { %v13992_v37 = vld [vmem:[%s17789_s3 + $0xe00] sm:$0xff]   ;;  %v13994_v39 = vld [vmem:[%s17789_s3 + $0xe48] sm:$0xff]   ;;  %v14033_v32 = vld [vmem:[%s17789_s3 + $0xf90] sm:$0xff]  }
 0x25a   :  { %v16188_v43 = vadd.f32 %v12673_v34, %v2441_v38  ;;  %12954 = vmatpush3.bf16.msra.mxu1 %v13952_v27  ;;  %v13987_v27 = vld [vmem:[%s17789_s3 + $0xdf8] sm:$0xff]   ;;  %v13993_v38 = vld [vmem:[%s17789_s3 + $0xe80] sm:$0xff]   ;;  %v14028_v28 = vld [vmem:[%s17789_s3 + $0xf08] sm:$0xff]  }
 0x25b   :  { %12976 = vmatpush3.bf16.msra.mxu0 %v13953_v36  ;;  %12955 = vmatprep.subr.bf16.mxu1 %v13954_v30  ;;  %v13988_v30 = vld [vmem:[%s17789_s3 + $0xd38] sm:$0xff]  }
 0x25c   :  { %12977 = vmatprep.subr.bf16.mxu0 %v13955_v40  ;;  %v13995_v40 = vld [vmem:[%s17789_s3 + $0xec8] sm:$0xff]   ;;  %v14035_v34 = vld [vmem:[%s17789_s3 + $0xfd8] sm:$0xff]  }
 0x25e   :  { %12956 = vmatpush3.bf16.msra.mxu1 %v13956_v44  ;;  %v13999_v44 = vld [vmem:[%s17789_s3 + $0xed0] sm:$0xff]  }
 0x25f   :  { %12978 = vmatpush3.bf16.msra.mxu0 %v13957_v54  ;;  %12985 = vmatprep.subr.bf16.mxu1 %v13958_v46  ;;  %v14000_v54 = vld [vmem:[%s17789_s3 + $0xe10] sm:$0xff]   ;;  %v14002_v46 = vld [vmem:[%s17789_s3 + $0xe58] sm:$0xff]  }
 0x260   :  { %13007 = vmatprep.subr.bf16.mxu0 %v13959_v48  ;;  %v14004_v48 = vld [vmem:[%s17789_s3 + $0xe18] sm:$0xff]  }
 0x261   :  { %11007 = vmatmul.mubr.msk.bf16.vlgmr.msra.gmra.mrb[48].mxu1 %vm16177_vm15, %v14386_v62  ;;  %vm16463_vm15 = vmpackc.low %vm5468_vm11, %vm5468_vm11  ;;  %vm6180_vm11 = vcmp.eq.f32.partialorder %v14734_v57, 32.0 }
 0x262   :  { %11061 = vmatmul.mubr.msk.bf16.vlgmr.msra.gmra.mrb[52].mxu0 %vm16184_vm0, %v14386_v62  ;;  %12986 = vmatpush3.bf16.msra.mxu1 %v13960_v49  ;;  %v14005_v49 = vld [vmem:[%s17789_s3 + $0xe98] sm:$0xff]   ;;  %vm16473_vm0 = vmpackc.low %vm5646_vm12, %vm5646_vm12  ;;  %vm6358_vm12 = vcmp.eq.f32.partialorder %v14734_v57, 33.0 }
 0x263   :  { %11113 = vmatprep.mubr.msk.bf16.mxu1 %vm16199_vm1, %v14386_v62  ;;  %13008 = vmatpush3.bf16.msra.mxu0 %v13961_v50  ;;  %v14006_v50 = vld [vmem:[%s17789_s3 + $0xe60] sm:$0xff]   ;;  %vm16485_vm1 = vmpackc.low %vm5825_vm13, %vm5825_vm13  ;;  %vm6537_vm13 = vcmp.eq.f32.partialorder %v14736_v59, 34.0 }
 0x264   :  { %11167 = vmatprep.mubr.msk.bf16.mxu0 %vm16209_vm2, %v14386_v62  ;;  %12987 = vmatprep.subr.bf16.mxu1 %v13962_v51  ;;  %v14007_v51 = vld [vmem:[%s17789_s3 + $0xee0] sm:$0xff]   ;;  %vm16495_vm2 = vmpackc.low %vm6003_vm14, %vm6003_vm14  ;;  %vm6715_vm14 = vcmp.eq.f32.partialorder %v14736_v59, 35.0 }
 0x265   :  { %13009 = vmatprep.subr.bf16.mxu0 %v13963_v52  ;;  %v14008_v52 = vld [vmem:[%s17789_s3 + $0xe20] sm:$0xff]  }
 0x266   :  { %12988 = vmatpush3.bf16.msra.mxu1 %v13964_v53  ;;  %v14009_v53 = vld [vmem:[%s17789_s3 + $0xea0] sm:$0xff]  }
 0x267   :  { %13010 = vmatpush3.bf16.msra.mxu0 %v13965_v55  ;;  %12989 = vmatprep.subr.bf16.mxu1 %v13966_v56  ;;  %v14010_v55 = vld [vmem:[%s17789_s3 + $0xe68] sm:$0xff]  }
 0x268   :  { %13011 = vmatprep.subr.bf16.mxu0 %v13967_v58  ;;  %v14011_v56 = vld [vmem:[%s17789_s3 + $0xee8] sm:$0xff]  }
 0x269   :  { %v14012_v58 = vld [vmem:[%s17789_s3 + $0xe28] sm:$0xff]  }
 0x26a   :  { %12990 = vmatpush3.bf16.msra.mxu1 %v13968_v60  ;;  %v14013_v60 = vld [vmem:[%s17789_s3 + $0xea8] sm:$0xff]  }
 0x26b   :  { %13012 = vmatpush3.bf16.msra.mxu0 %v13969_v7  ;;  %12991 = vmatprep.subr.bf16.mxu1 %v13970_v61  ;;  %v14014_v7 = vld [vmem:[%s17789_s3 + $0xe70] sm:$0xff]  }
 0x26c   :  { %13013 = vmatprep.subr.bf16.mxu0 %v13971_v63  ;;  %v14015_v61 = vld [vmem:[%s17789_s3 + $0xef0] sm:$0xff]  }
 0x26e   :  { %12992 = vmatpush3.bf16.msra.mxu1 %v13972_v0  ;;  %v14016_v0 = vld [vmem:[%s17789_s3 + $0xe30] sm:$0xff]  }
 0x26f   :  { %13014 = vmatpush3.bf16.msra.mxu0 %v13973_v1  ;;  %12993 = vmatprep.subr.bf16.mxu1 %v13974_v2 }
 0x270   :  { %13015 = vmatprep.subr.bf16.mxu0 %v13975_v3  ;;  %v14017_v3 = vld [vmem:[%s17789_s3 + $0xeb0] sm:$0xff]  }
 0x272   :  { %12994 = vmatpush3.bf16.msra.mxu1 %v13976_v4  ;;  %v14018_v4 = vld [vmem:[%s17789_s3 + $0xe78] sm:$0xff]  }
 0x273   :  { %13016 = vmatpush3.bf16.msra.mxu0 %v13977_v5  ;;  %12995 = vmatprep.subr.bf16.mxu1 %v13978_v6 }
 0x274   :  { %v12693_v12 = vpop.f32.mrb[24].mxu1  ;;  %13017 = vmatprep.subr.bf16.mxu0 %v13979_v8 }
 0x275   :  { %v12715_v14 = vpop.f32.mrb[28].mxu0  ;;  %v12694_v15 = vpop.f32.mrb[25].mxu1 }
 0x276   :  { %v12695_v17 = vadd.f32 %v12694_v15, %v12693_v12  ;;  %v12716_v18 = vpop.f32.mrb[29].mxu0  ;;  %v12696_v19 = vpop.f32.mrb[26].mxu1  ;;  %12996 = vmatpush3.bf16.msra.mxu1 %v13980_v9  ;;  %v14060_v15 = vld [vmem:[%s17789_s3 + $0x1008] sm:$0xff]  }
 0x277   :  { %v12717_v20 = vadd.f32 %v12716_v18, %v12715_v14  ;;  %v12718_v21 = vpop.f32.mrb[30].mxu0  ;;  %13018 = vmatpush3.bf16.msra.mxu0 %v13981_v10  ;;  %v12697_v22 = vpop.f32.mrb[27].mxu1  ;;  %12997 = vmatprep.subr.bf16.mxu1 %v13982_v11  ;;  %v14019_v14 = vld [vmem:[%s17789_s3 + $0xef8] sm:$0xff]  }
 0x278   :  { %v2797_v25 = vadd.f32 %v12695_v17, %v16188_v43  ;;  %v12719_v26 = vpop.f32.mrb[31].mxu0  ;;  %13019 = vmatprep.subr.bf16.mxu0 %v13983_v13  ;;  %v13998_v43 = vld [vmem:[%s17789_s3 + $0xe50] sm:$0xff]   ;;  %v14021_v19 = vld [vmem:[%s17789_s3 + $0xeb8] sm:$0xff]   ;;  %v14022_v21 = vld [vmem:[%s17789_s3 + $0xf40] sm:$0xff]  }
 0x279   :  { %v14026_v26 = vld [vmem:[%s17789_s3 + $0xf48] sm:$0xff]   ;;  %v14062_v17 = vld [vmem:[%s17789_s3 + $0x1050] sm:$0xff]   ;;  %v14067_v22 = vld [vmem:[%s17789_s3 + $0x10d8] sm:$0xff]  }
 0x27a   :  { %v16331_v36 = vadd.f32 %v12717_v20, %v2797_v25  ;;  %12998 = vmatpush3.bf16.msra.mxu1 %v13984_v16  ;;  %v14020_v16 = vld [vmem:[%s17789_s3 + $0xe38] sm:$0xff]   ;;  %v14025_v25 = vld [vmem:[%s17789_s3 + $0xf80] sm:$0xff]   ;;  %v14065_v20 = vld [vmem:[%s17789_s3 + $0x1090] sm:$0xff]  }
 0x27b   :  { %13020 = vmatpush3.bf16.msra.mxu0 %v13985_v23  ;;  %12999 = vmatprep.subr.bf16.mxu1 %v13986_v24  ;;  %v14023_v23 = vld [vmem:[%s17789_s3 + $0xfc0] sm:$0xff]  }
 0x27c   :  { %13021 = vmatprep.subr.bf16.mxu0 %v13987_v27  ;;  %v14024_v24 = vld [vmem:[%s17789_s3 + $0xf00] sm:$0xff]   ;;  %v14027_v27 = vld [vmem:[%s17789_s3 + $0xfc8] sm:$0xff]  }
 0x27e   :  { %13000 = vmatpush3.bf16.msra.mxu1 %v13988_v30  ;;  %v14031_v30 = vld [vmem:[%s17789_s3 + $0xfd0] sm:$0xff]  }
 0x27f   :  { %13022 = vmatpush3.bf16.msra.mxu0 %v13989_v31  ;;  %13029 = vmatprep.subr.bf16.mxu1 %v13990_v33  ;;  %v14032_v31 = vld [vmem:[%s17789_s3 + $0xf10] sm:$0xff]   ;;  %v14034_v33 = vld [vmem:[%s17789_s3 + $0xf58] sm:$0xff]  }
 0x280   :  { %13051 = vmatprep.subr.bf16.mxu0 %v13991_v35  ;;  %v14036_v35 = vld [vmem:[%s17789_s3 + $0xf18] sm:$0xff]  }
 0x281   :  { %11115 = vmatmul.mubr.msk.bf16.vlgmr.msra.gmra.mrb[52].mxu1 %vm16320_vm7, %v14386_v62  ;;  %vm16606_vm7 = vmpackc.low %vm5824_vm3, %vm5824_vm3  ;;  %vm6536_vm3 = vcmp.eq.f32.partialorder %v14734_v57, 34.0 }
 0x282   :  { %11169 = vmatmul.mubr.msk.bf16.vlgmr.msra.gmra.mrb[56].mxu0 %vm16327_vm8, %v14386_v62  ;;  %13030 = vmatpush3.bf16.msra.mxu1 %v13992_v37  ;;  %v14037_v37 = vld [vmem:[%s17789_s3 + $0xf98] sm:$0xff]   ;;  %vm16616_vm8 = vmpackc.low %vm6002_vm4, %vm6002_vm4  ;;  %vm6714_vm4 = vcmp.eq.f32.partialorder %v14734_v57, 35.0 }
 0x283   :  { %11221 = vmatprep.mubr.msk.bf16.mxu1 %vm16342_vm9, %v14386_v62  ;;  %13052 = vmatpush3.bf16.msra.mxu0 %v13993_v38  ;;  %v14038_v38 = vld [vmem:[%s17789_s3 + $0xf60] sm:$0xff]   ;;  %vm16628_vm9 = vmpackc.low %vm6181_vm5, %vm6181_vm5 }
 0x284   :  { %11275 = vmatprep.mubr.msk.bf16.mxu0 %vm16352_vm10, %v14386_v62  ;;  %13031 = vmatprep.subr.bf16.mxu1 %v13994_v39  ;;  %v14039_v39 = vld [vmem:[%s17789_s3 + $0xfe0] sm:$0xff]   ;;  %vm16638_vm10 = vmpackc.low %vm6359_vm6, %vm6359_vm6 }
 0x285   :  { %13053 = vmatprep.subr.bf16.mxu0 %v13995_v40  ;;  %v14040_v40 = vld [vmem:[%s17789_s3 + $0xf20] sm:$0xff]   ;;  %vm16893_vm5 = vmpackc.low %vm6536_vm3, %vm6536_vm3  ;;  %vm7248_vm3 = vcmp.eq.f32.partialorder %v14734_v57, 38.0 }
 0x286   :  { %13032 = vmatpush3.bf16.msra.mxu1 %v13996_v41  ;;  %v14041_v41 = vld [vmem:[%s17789_s3 + $0xfa0] sm:$0xff]   ;;  %vm16903_vm6 = vmpackc.low %vm6714_vm4, %vm6714_vm4  ;;  %vm7426_vm4 = vcmp.eq.f32.partialorder %v14734_v57, 39.0 }
 0x287   :  { %13054 = vmatpush3.bf16.msra.mxu0 %v13997_v42  ;;  %13033 = vmatprep.subr.bf16.mxu1 %v13998_v43  ;;  %v14042_v42 = vld [vmem:[%s17789_s3 + $0xf68] sm:$0xff]  }
 0x288   :  { %13055 = vmatprep.subr.bf16.mxu0 %v13999_v44  ;;  %v14043_v43 = vld [vmem:[%s17789_s3 + $0xfe8] sm:$0xff]  }
 0x289   :  { %v14044_v44 = vld [vmem:[%s17789_s3 + $0xf28] sm:$0xff]  }
 0x28a   :  { %13034 = vmatpush3.bf16.msra.mxu1 %v14000_v54  ;;  %v14045_v54 = vld [vmem:[%s17789_s3 + $0xfa8] sm:$0xff]  }
 0x28b   :  { %13056 = vmatpush3.bf16.msra.mxu0 %v14001_v45  ;;  %13035 = vmatprep.subr.bf16.mxu1 %v14002_v46  ;;  %v14046_v45 = vld [vmem:[%s17789_s3 + $0xf70] sm:$0xff]  }
 0x28c   :  { %13057 = vmatprep.subr.bf16.mxu0 %v14003_v47  ;;  %v14047_v46 = vld [vmem:[%s17789_s3 + $0xff0] sm:$0xff]  }
 0x28e   :  { %13036 = vmatpush3.bf16.msra.mxu1 %v14004_v48  ;;  %v14048_v48 = vld [vmem:[%s17789_s3 + $0xf30] sm:$0xff]  }
 0x28f   :  { %13058 = vmatpush3.bf16.msra.mxu0 %v14005_v49  ;;  %13037 = vmatprep.subr.bf16.mxu1 %v14006_v50 }
 0x290   :  { %13059 = vmatprep.subr.bf16.mxu0 %v14007_v51 }
 0x292   :  { %13038 = vmatpush3.bf16.msra.mxu1 %v14008_v52 }
 0x293   :  { %13060 = vmatpush3.bf16.msra.mxu0 %v14009_v53  ;;  %13039 = vmatprep.subr.bf16.mxu1 %v14010_v55  ;;  %v14049_v55 = vld [vmem:[%s17789_s3 + $0xfb0] sm:$0xff]  }
 0x294   :  { %v12737_v63 = vpop.f32.mrb[28].mxu1  ;;  %13061 = vmatprep.subr.bf16.mxu0 %v14011_v56  ;;  %v14050_v56 = vld [vmem:[%s17789_s3 + $0xf78] sm:$0xff]  }
 0x295   :  { %v12759_v1 = vpop.f32.mrb[32].mxu0  ;;  %v12738_v2 = vpop.f32.mrb[29].mxu1 }
 0x296   :  { %v12739_v5 = vadd.f32 %v12738_v2, %v12737_v63  ;;  %v12760_v6 = vpop.f32.mrb[33].mxu0  ;;  %v12740_v8 = vpop.f32.mrb[30].mxu1  ;;  %13040 = vmatpush3.bf16.msra.mxu1 %v14012_v58  ;;  %v14052_v2 = vld [vmem:[%s17789_s3 + $0xf38] sm:$0xff]  }
 0x297   :  { %v12761_v9 = vadd.f32 %v12760_v6, %v12759_v1  ;;  %v12762_v10 = vpop.f32.mrb[34].mxu0  ;;  %13062 = vmatpush3.bf16.msra.mxu0 %v14013_v60  ;;  %v12741_v11 = vpop.f32.mrb[31].mxu1  ;;  %13041 = vmatprep.subr.bf16.mxu1 %v14014_v7  ;;  %v14054_v8 = vld [vmem:[%s17789_s3 + $0x1040] sm:$0xff]   ;;  %v14092_v1 = vld [vmem:[%s17789_s3 + $0x1108] sm:$0xff]   ;;  %v14097_v6 = vld [vmem:[%s17789_s3 + $0x1190] sm:$0xff]  }
 0x298   :  { %v3153_v12 = vadd.f32 %v12739_v5, %v16331_v36  ;;  %v12763_v13 = vpop.f32.mrb[35].mxu0  ;;  %13063 = vmatprep.subr.bf16.mxu0 %v14015_v61  ;;  %v14030_v36 = vld [vmem:[%s17789_s3 + $0xf50] sm:$0xff]   ;;  %v14053_v5 = vld [vmem:[%s17789_s3 + $0xfb8] sm:$0xff]   ;;  %v14055_v10 = vld [vmem:[%s17789_s3 + $0x10c0] sm:$0xff]  }
 0x299   :  { %v14056_v11 = vld [vmem:[%s17789_s3 + $0x1000] sm:$0xff]   ;;  %v14058_v13 = vld [vmem:[%s17789_s3 + $0x1048] sm:$0xff]  }
 0x29a   :  { %v16477_v18 = vadd.f32 %v12761_v9, %v3153_v12  ;;  %13042 = vmatpush3.bf16.msra.mxu1 %v14016_v0  ;;  %v14051_v0 = vld [vmem:[%s17789_s3 + $0xff8] sm:$0xff]   ;;  %v14057_v12 = vld [vmem:[%s17789_s3 + $0x1080] sm:$0xff]  }
 0x29b   :  { %13064 = vmatpush3.bf16.msra.mxu0 %v14017_v3  ;;  %13043 = vmatprep.subr.bf16.mxu1 %v14018_v4  ;;  %v14094_v3 = vld [vmem:[%s17789_s3 + $0x1150] sm:$0xff]   ;;  %v14099_v9 = vld [vmem:[%s17789_s3 + $0x11d8] sm:$0xff]  }
 0x29c   :  { %13065 = vmatprep.subr.bf16.mxu0 %v14019_v14  ;;  %v14059_v14 = vld [vmem:[%s17789_s3 + $0x10c8] sm:$0xff]  }
 0x29e   :  { %13044 = vmatpush3.bf16.msra.mxu1 %v14020_v16  ;;  %v14061_v16 = vld [vmem:[%s17789_s3 + $0x1088] sm:$0xff]  }
 0x29f   :  { %13066 = vmatpush3.bf16.msra.mxu0 %v14021_v19  ;;  %13073 = vmatprep.subr.bf16.mxu1 %v14022_v21  ;;  %v14064_v19 = vld [vmem:[%s17789_s3 + $0x1010] sm:$0xff]   ;;  %v14066_v21 = vld [vmem:[%s17789_s3 + $0x1058] sm:$0xff]  }
 0x2a0   :  { %13095 = vmatprep.subr.bf16.mxu0 %v14023_v23  ;;  %v14068_v23 = vld [vmem:[%s17789_s3 + $0x1018] sm:$0xff]  }
 0x2a1   :  { %11223 = vmatmul.mubr.msk.bf16.vlgmr.msra.gmra.mrb[56].mxu1 %vm16463_vm15, %v14386_v62  ;;  %vm16752_vm15 = vmpackc.low %vm6180_vm11, %vm6180_vm11  ;;  %vm6892_vm11 = vcmp.eq.f32.partialorder %v14734_v57, 36.0 }
 0x2a2   :  { %11277 = vmatmul.mubr.msk.bf16.vlgmr.msra.gmra.mrb[60].mxu0 %vm16473_vm0, %v14386_v62  ;;  %13074 = vmatpush3.bf16.msra.mxu1 %v14024_v24  ;;  %v14069_v24 = vld [vmem:[%s17789_s3 + $0x1098] sm:$0xff]   ;;  %vm16759_vm0 = vmpackc.low %vm6358_vm12, %vm6358_vm12  ;;  %vm7070_vm12 = vcmp.eq.f32.partialorder %v14734_v57, 37.0 }
 0x2a3   :  { %11329 = vmatprep.mubr.msk.bf16.mxu1 %vm16485_vm1, %v14386_v62  ;;  %13096 = vmatpush3.bf16.msra.mxu0 %v14025_v25  ;;  %v14070_v25 = vld [vmem:[%s17789_s3 + $0x1060] sm:$0xff]   ;;  %vm16771_vm1 = vmpackc.low %vm6537_vm13, %vm6537_vm13 }
 0x2a4   :  { %11383 = vmatprep.mubr.msk.bf16.mxu0 %vm16495_vm2, %v14386_v62  ;;  %13075 = vmatprep.subr.bf16.mxu1 %v14026_v26  ;;  %v14071_v26 = vld [vmem:[%s17789_s3 + $0x10e0] sm:$0xff]   ;;  %vm16781_vm2 = vmpackc.low %vm6715_vm14, %vm6715_vm14 }
 0x2a5   :  { %13097 = vmatprep.subr.bf16.mxu0 %v14027_v27  ;;  %v14072_v27 = vld [vmem:[%s17789_s3 + $0x1020] sm:$0xff]   ;;  %vm17018_vm13 = vmpackc.low %vm6892_vm11, %vm6892_vm11  ;;  %vm7604_vm11 = vcmp.eq.f32.partialorder %v14734_v57, 40.0 }
 0x2a6   :  { %13076 = vmatpush3.bf16.msra.mxu1 %v14028_v28  ;;  %v14073_v28 = vld [vmem:[%s17789_s3 + $0x10a0] sm:$0xff]   ;;  %vm17028_vm14 = vmpackc.low %vm7070_vm12, %vm7070_vm12  ;;  %vm7782_vm12 = vcmp.eq.f32.partialorder %v14734_v57, 41.0 }
 0x2a7   :  { %13098 = vmatpush3.bf16.msra.mxu0 %v14029_v29  ;;  %13077 = vmatprep.subr.bf16.mxu1 %v14030_v36  ;;  %v14074_v29 = vld [vmem:[%s17789_s3 + $0x1068] sm:$0xff]  }
 0x2a8   :  { %13099 = vmatprep.subr.bf16.mxu0 %v14031_v30  ;;  %v14075_v36 = vld [vmem:[%s17789_s3 + $0x10e8] sm:$0xff]  }
 0x2a9   :  { %v14076_v30 = vld [vmem:[%s17789_s3 + $0x1028] sm:$0xff]  }
 0x2aa   :  { %13078 = vmatpush3.bf16.msra.mxu1 %v14032_v31  ;;  %v14077_v31 = vld [vmem:[%s17789_s3 + $0x10a8] sm:$0xff]  }
 0x2ab   :  { %13100 = vmatpush3.bf16.msra.mxu0 %v14033_v32  ;;  %13079 = vmatprep.subr.bf16.mxu1 %v14034_v33  ;;  %v14078_v32 = vld [vmem:[%s17789_s3 + $0x1070] sm:$0xff]  }
 0x2ac   :  { %13101 = vmatprep.subr.bf16.mxu0 %v14035_v34  ;;  %v14079_v34 = vld [vmem:[%s17789_s3 + $0x10f0] sm:$0xff]  }
 0x2ae   :  { %13080 = vmatpush3.bf16.msra.mxu1 %v14036_v35 }
 0x2af   :  { %13102 = vmatpush3.bf16.msra.mxu0 %v14037_v37  ;;  %13081 = vmatprep.subr.bf16.mxu1 %v14038_v38  ;;  %v14080_v38 = vld [vmem:[%s17789_s3 + $0x1030] sm:$0xff]  }
 0x2b0   :  { %13103 = vmatprep.subr.bf16.mxu0 %v14039_v39  ;;  %v14081_v39 = vld [vmem:[%s17789_s3 + $0x10b0] sm:$0xff]  }
 0x2b2   :  { %13082 = vmatpush3.bf16.msra.mxu1 %v14040_v40 }
 0x2b3   :  { %13104 = vmatpush3.bf16.msra.mxu0 %v14041_v41  ;;  %13083 = vmatprep.subr.bf16.mxu1 %v14042_v42 }
 0x2b4   :  { %v12781_v47 = vpop.f32.mrb[32].mxu1  ;;  %13105 = vmatprep.subr.bf16.mxu0 %v14043_v43 }
 0x2b5   :  { %v12803_v49 = vpop.f32.mrb[36].mxu0  ;;  %v12782_v50 = vpop.f32.mrb[33].mxu1 }
 0x2b6   :  { %v12783_v51 = vadd.f32 %v12782_v50, %v12781_v47  ;;  %v12804_v52 = vpop.f32.mrb[37].mxu0  ;;  %v12784_v53 = vpop.f32.mrb[34].mxu1  ;;  %13084 = vmatpush3.bf16.msra.mxu1 %v14044_v44  ;;  %v14127_v50 = vld [vmem:[%s17789_s3 + $0x12d0] sm:$0xff]  }
 0x2b7   :  { %v12805_v58 = vadd.f32 %v12804_v52, %v12803_v49  ;;  %v12806_v60 = vpop.f32.mrb[38].mxu0  ;;  %13106 = vmatpush3.bf16.msra.mxu0 %v14045_v54  ;;  %v12785_v7 = vpop.f32.mrb[35].mxu1  ;;  %13085 = vmatprep.subr.bf16.mxu1 %v14046_v45  ;;  %v14082_v45 = vld [vmem:[%s17789_s3 + $0x1078] sm:$0xff]  }
 0x2b8   :  { %v3509_v61 = vadd.f32 %v12783_v51, %v16477_v18  ;;  %v12807_v63 = vpop.f32.mrb[39].mxu0  ;;  %13107 = vmatprep.subr.bf16.mxu0 %v14047_v46  ;;  %v14063_v18 = vld [vmem:[%s17789_s3 + $0x10d0] sm:$0xff]   ;;  %v14083_v46 = vld [vmem:[%s17789_s3 + $0x10f8] sm:$0xff]   ;;  %v14087_v60 = vld [vmem:[%s17789_s3 + $0x11c0] sm:$0xff]  }
 0x2b9   :  { %v14084_v49 = vld [vmem:[%s17789_s3 + $0x1038] sm:$0xff]   ;;  %v14088_v7 = vld [vmem:[%s17789_s3 + $0x1100] sm:$0xff]   ;;  %v14090_v63 = vld [vmem:[%s17789_s3 + $0x1148] sm:$0xff]  }
 0x2ba   :  { %v16620_v4 = vadd.f32 %v12805_v58, %v3509_v61  ;;  %13086 = vmatpush3.bf16.msra.mxu1 %v14048_v48  ;;  %v14085_v53 = vld [vmem:[%s17789_s3 + $0x10b8] sm:$0xff]   ;;  %v14089_v61 = vld [vmem:[%s17789_s3 + $0x1180] sm:$0xff]   ;;  %v14128_v51 = vld [vmem:[%s17789_s3 + $0x1210] sm:$0xff]  }
 0x2bb   :  { %13108 = vmatpush3.bf16.msra.mxu0 %v14049_v55  ;;  %13087 = vmatprep.subr.bf16.mxu1 %v14050_v56  ;;  %v14086_v56 = vld [vmem:[%s17789_s3 + $0x1140] sm:$0xff]   ;;  %v14131_v55 = vld [vmem:[%s17789_s3 + $0x12d8] sm:$0xff]  }
 0x2bc   :  { %13109 = vmatprep.subr.bf16.mxu0 %v14051_v0  ;;  %v14091_v0 = vld [vmem:[%s17789_s3 + $0x11c8] sm:$0xff]   ;;  %v14133_v58 = vld [vmem:[%s17789_s3 + $0x1298] sm:$0xff]  }
 0x2be   :  { %13088 = vmatpush3.bf16.msra.mxu1 %v14052_v2  ;;  %v14093_v2 = vld [vmem:[%s17789_s3 + $0x1188] sm:$0xff]  }
 0x2bf   :  { %13110 = vmatpush3.bf16.msra.mxu0 %v14053_v5  ;;  %13117 = vmatprep.subr.bf16.mxu1 %v14054_v8  ;;  %v14096_v5 = vld [vmem:[%s17789_s3 + $0x1110] sm:$0xff]   ;;  %v14098_v8 = vld [vmem:[%s17789_s3 + $0x1158] sm:$0xff]  }
 0x2c0   :  { %13139 = vmatprep.subr.bf16.mxu0 %v14055_v10  ;;  %v14100_v10 = vld [vmem:[%s17789_s3 + $0x1118] sm:$0xff]  }
 0x2c1   :  { %11331 = vmatmul.mubr.msk.bf16.vlgmr.msra.gmra.mrb[60].mxu1 %vm16606_vm7, %v14386_v62  ;;  %vm6893_vm7 = vcmp.eq.f32.partialorder %v14736_v59, 36.0 }
 0x2c2   :  { %11385 = vmatmul.mubr.msk.bf16.vlgmr.msra.gmra.mrb[64].mxu0 %vm16616_vm8, %v14386_v62  ;;  %13118 = vmatpush3.bf16.msra.mxu1 %v14056_v11  ;;  %v14101_v11 = vld [vmem:[%s17789_s3 + $0x1198] sm:$0xff]   ;;  %vm7071_vm8 = vcmp.eq.f32.partialorder %v14736_v59, 37.0 }
 0x2c3   :  { %11437 = vmatprep.mubr.msk.bf16.mxu1 %vm16628_vm9, %v14386_v62  ;;  %13140 = vmatpush3.bf16.msra.mxu0 %v14057_v12  ;;  %v14102_v12 = vld [vmem:[%s17789_s3 + $0x1160] sm:$0xff]   ;;  %vm11652_vm9 = vmpackc.low %vm6893_vm7, %vm6893_vm7 }
 0x2c4   :  { %11491 = vmatprep.mubr.msk.bf16.mxu0 %vm16638_vm10, %v14386_v62  ;;  %13119 = vmatprep.subr.bf16.mxu1 %v14058_v13  ;;  %v14103_v13 = vld [vmem:[%s17789_s3 + $0x11e0] sm:$0xff]   ;;  %vm11706_vm10 = vmpackc.low %vm7071_vm8, %vm7071_vm8  ;;  %vm7783_vm8 = vcmp.eq.f32.partialorder %v14736_v59, 41.0 }
 0x2c5   :  { %13141 = vmatprep.subr.bf16.mxu0 %v14059_v14  ;;  %v14104_v14 = vld [vmem:[%s17789_s3 + $0x1120] sm:$0xff]   ;;  %vm17154_vm7 = vmpackc.low %vm7426_vm4, %vm7426_vm4  ;;  %vm8138_vm4 = vcmp.eq.f32.partialorder %v14734_v57, 43.0 }
 0x2c6   :  { %13120 = vmatpush3.bf16.msra.mxu1 %v14060_v15  ;;  %v14105_v15 = vld [vmem:[%s17789_s3 + $0x11a0] sm:$0xff]  }
 0x2c7   :  { %13142 = vmatpush3.bf16.msra.mxu0 %v14061_v16  ;;  %13121 = vmatprep.subr.bf16.mxu1 %v14062_v17  ;;  %v14106_v16 = vld [vmem:[%s17789_s3 + $0x1168] sm:$0xff]  }
 0x2c8   :  { %13143 = vmatprep.subr.bf16.mxu0 %v14063_v18  ;;  %v14107_v17 = vld [vmem:[%s17789_s3 + $0x11e8] sm:$0xff]  }
 0x2c9   :  { %v14108_v18 = vld [vmem:[%s17789_s3 + $0x1128] sm:$0xff]  }
 0x2ca   :  { %13122 = vmatpush3.bf16.msra.mxu1 %v14064_v19  ;;  %v14109_v19 = vld [vmem:[%s17789_s3 + $0x11a8] sm:$0xff]  }
 0x2cb   :  { %13144 = vmatpush3.bf16.msra.mxu0 %v14065_v20  ;;  %13123 = vmatprep.subr.bf16.mxu1 %v14066_v21  ;;  %v14110_v20 = vld [vmem:[%s17789_s3 + $0x1170] sm:$0xff]  }
 0x2cc   :  { %13145 = vmatprep.subr.bf16.mxu0 %v14067_v22  ;;  %v14111_v21 = vld [vmem:[%s17789_s3 + $0x11f0] sm:$0xff]  }
 0x2ce   :  { %13124 = vmatpush3.bf16.msra.mxu1 %v14068_v23  ;;  %v14112_v23 = vld [vmem:[%s17789_s3 + $0x1130] sm:$0xff]  }
 0x2cf   :  { %13146 = vmatpush3.bf16.msra.mxu0 %v14069_v24  ;;  %13125 = vmatprep.subr.bf16.mxu1 %v14070_v25 }
 0x2d0   :  { %13147 = vmatprep.subr.bf16.mxu0 %v14071_v26  ;;  %v14113_v26 = vld [vmem:[%s17789_s3 + $0x11b0] sm:$0xff]  }
 0x2d2   :  { %13126 = vmatpush3.bf16.msra.mxu1 %v14072_v27  ;;  %v14114_v27 = vld [vmem:[%s17789_s3 + $0x1178] sm:$0xff]  }
 0x2d3   :  { %13148 = vmatpush3.bf16.msra.mxu0 %v14073_v28  ;;  %13127 = vmatprep.subr.bf16.mxu1 %v14074_v29 }
 0x2d4   :  { %v12825_v33 = vpop.f32.mrb[36].mxu1  ;;  %13149 = vmatprep.subr.bf16.mxu0 %v14075_v36 }
 0x2d5   :  { %v12847_v35 = vpop.f32.mrb[40].mxu0  ;;  %v12826_v37 = vpop.f32.mrb[37].mxu1 }
 0x2d6   :  { %v12827_v40 = vadd.f32 %v12826_v37, %v12825_v33  ;;  %v12848_v41 = vpop.f32.mrb[41].mxu0  ;;  %v12828_v42 = vpop.f32.mrb[38].mxu1  ;;  %13128 = vmatpush3.bf16.msra.mxu1 %v14076_v30  ;;  %v14115_v30 = vld [vmem:[%s17789_s3 + $0x11f8] sm:$0xff]  }
 0x2d7   :  { %v12849_v43 = vadd.f32 %v12848_v41, %v12847_v35  ;;  %v12850_v44 = vpop.f32.mrb[42].mxu0  ;;  %13150 = vmatpush3.bf16.msra.mxu0 %v14077_v31  ;;  %v12829_v54 = vpop.f32.mrb[39].mxu1  ;;  %13129 = vmatprep.subr.bf16.mxu1 %v14078_v32  ;;  %v14116_v37 = vld [vmem:[%s17789_s3 + $0x1138] sm:$0xff]   ;;  %v14118_v42 = vld [vmem:[%s17789_s3 + $0x1240] sm:$0xff]  }
 0x2d8   :  { %v3865_v47 = vadd.f32 %v12827_v40, %v16620_v4  ;;  %v12851_v48 = vpop.f32.mrb[43].mxu0  ;;  %13151 = vmatprep.subr.bf16.mxu0 %v14079_v34  ;;  %v14095_v4 = vld [vmem:[%s17789_s3 + $0x11d0] sm:$0xff]   ;;  %v14120_v44 = vld [vmem:[%s17789_s3 + $0x1200] sm:$0xff]   ;;  %v14163_v40 = vld [vmem:[%s17789_s3 + $0x13d8] sm:$0xff]  }
 0x2d9   :  { %v14121_v54 = vld [vmem:[%s17789_s3 + $0x1280] sm:$0xff]   ;;  %v14125_v48 = vld [vmem:[%s17789_s3 + $0x1288] sm:$0xff]  }
 0x2da   :  { %v16763_v52 = vadd.f32 %v12849_v43, %v3865_v47  ;;  %13130 = vmatpush3.bf16.msra.mxu1 %v14080_v38  ;;  %v14119_v43 = vld [vmem:[%s17789_s3 + $0x12c0] sm:$0xff]   ;;  %v14124_v47 = vld [vmem:[%s17789_s3 + $0x1208] sm:$0xff]   ;;  %v14161_v38 = vld [vmem:[%s17789_s3 + $0x1390] sm:$0xff]  }
 0x2db   :  { %13152 = vmatpush3.bf16.msra.mxu0 %v14081_v39  ;;  %13131 = vmatprep.subr.bf16.mxu1 %v14082_v45  ;;  %v14117_v39 = vld [vmem:[%s17789_s3 + $0x11b8] sm:$0xff]   ;;  %v14122_v45 = vld [vmem:[%s17789_s3 + $0x1248] sm:$0xff]  }
 0x2dc   :  { %13153 = vmatprep.subr.bf16.mxu0 %v14083_v46  ;;  %v14123_v46 = vld [vmem:[%s17789_s3 + $0x12c8] sm:$0xff]  }
 0x2de   :  { %13132 = vmatpush3.bf16.msra.mxu1 %v14084_v49  ;;  %v14126_v49 = vld [vmem:[%s17789_s3 + $0x1250] sm:$0xff]  }
 0x2df   :  { %13154 = vmatpush3.bf16.msra.mxu0 %v14085_v53  ;;  %13161 = vmatprep.subr.bf16.mxu1 %v14086_v56  ;;  %v14130_v53 = vld [vmem:[%s17789_s3 + $0x1258] sm:$0xff]  }
 0x2e0   :  { %13183 = vmatprep.subr.bf16.mxu0 %v14087_v60  ;;  %v14132_v56 = vld [vmem:[%s17789_s3 + $0x1218] sm:$0xff]   ;;  %v14134_v60 = vld [vmem:[%s17789_s3 + $0x1260] sm:$0xff]  }
 0x2e1   :  { %11439 = vmatmul.mubr.msk.bf16.vlgmr.msra.gmra.mrb[64].mxu1 %vm16752_vm15, %v14386_v62  ;;  %vm7249_vm15 = vcmp.eq.f32.partialorder %v14736_v59, 38.0 }
 0x2e2   :  { %11493 = vmatmul.mubr.msk.bf16.vlgmr.msra.gmra.mrb[68].mxu0 %vm16759_vm0, %v14386_v62  ;;  %13162 = vmatpush3.bf16.msra.mxu1 %v14088_v7  ;;  %v14135_v7 = vld [vmem:[%s17789_s3 + $0x12e0] sm:$0xff]   ;;  %vm7427_vm0 = vcmp.eq.f32.partialorder %v14736_v59, 39.0 }
 0x2e3   :  { %11545 = vmatprep.mubr.msk.bf16.mxu1 %vm16771_vm1, %v14386_v62  ;;  %13184 = vmatpush3.bf16.msra.mxu0 %v14089_v61  ;;  %v14136_v61 = vld [vmem:[%s17789_s3 + $0x1220] sm:$0xff]   ;;  %vm11760_vm1 = vmpackc.low %vm7249_vm15, %vm7249_vm15  ;;  %vm7961_vm15 = vcmp.eq.f32.partialorder %v14736_v59, 42.0 }
 0x2e4   :  { %11599 = vmatprep.mubr.msk.bf16.mxu0 %vm16781_vm2, %v14386_v62  ;;  %13163 = vmatprep.subr.bf16.mxu1 %v14090_v63  ;;  %v14137_v63 = vld [vmem:[%s17789_s3 + $0x12a0] sm:$0xff]   ;;  %vm11814_vm2 = vmpackc.low %vm7427_vm0, %vm7427_vm0  ;;  %vm8139_vm0 = vcmp.eq.f32.partialorder %v14736_v59, 43.0 }
 0x2e5   :  { %13185 = vmatprep.subr.bf16.mxu0 %v14091_v0  ;;  %v14138_v0 = vld [vmem:[%s17789_s3 + $0x1268] sm:$0xff]  }
 0x2e6   :  { %13164 = vmatpush3.bf16.msra.mxu1 %v14092_v1  ;;  %v14139_v1 = vld [vmem:[%s17789_s3 + $0x12e8] sm:$0xff]  }
 0x2e7   :  { %13186 = vmatpush3.bf16.msra.mxu0 %v14093_v2  ;;  %13165 = vmatprep.subr.bf16.mxu1 %v14094_v3  ;;  %v14140_v2 = vld [vmem:[%s17789_s3 + $0x1228] sm:$0xff]  }
 0x2e8   :  { %13187 = vmatprep.subr.bf16.mxu0 %v14095_v4  ;;  %v14141_v3 = vld [vmem:[%s17789_s3 + $0x12a8] sm:$0xff]   ;;  %v14142_v4 = vld [vmem:[%s17789_s3 + $0x1270] sm:$0xff]  }
 0x2ea   :  { %13166 = vmatpush3.bf16.msra.mxu1 %v14096_v5  ;;  %v14143_v5 = vld [vmem:[%s17789_s3 + $0x12f0] sm:$0xff]  }
 0x2eb   :  { %13188 = vmatpush3.bf16.msra.mxu0 %v14097_v6  ;;  %13167 = vmatprep.subr.bf16.mxu1 %v14098_v8  ;;  %v14144_v8 = vld [vmem:[%s17789_s3 + $0x1230] sm:$0xff]  }
 0x2ec   :  { %13189 = vmatprep.subr.bf16.mxu0 %v14099_v9 }
 0x2ee   :  { %13168 = vmatpush3.bf16.msra.mxu1 %v14100_v10 }
 0x2ef   :  { %13190 = vmatpush3.bf16.msra.mxu0 %v14101_v11  ;;  %13169 = vmatprep.subr.bf16.mxu1 %v14102_v12  ;;  %v14145_v11 = vld [vmem:[%s17789_s3 + $0x12b0] sm:$0xff]  }
 0x2f0   :  { %13191 = vmatprep.subr.bf16.mxu0 %v14103_v13 }
 0x2f2   :  { %13170 = vmatpush3.bf16.msra.mxu1 %v14104_v14 }
 0x2f3   :  { %13192 = vmatpush3.bf16.msra.mxu0 %v14105_v15  ;;  %13171 = vmatprep.subr.bf16.mxu1 %v14106_v16  ;;  %v14146_v15 = vld [vmem:[%s17789_s3 + $0x1278] sm:$0xff]  }
 0x2f4   :  { %v12869_v22 = vpop.f32.mrb[40].mxu1  ;;  %13193 = vmatprep.subr.bf16.mxu0 %v14107_v17  ;;  %v14147_v16 = vld [vmem:[%s17789_s3 + $0x12f8] sm:$0xff]  }
 0x2f5   :  { %v12891_v24 = vpop.f32.mrb[44].mxu0  ;;  %v12870_v25 = vpop.f32.mrb[41].mxu1 }
 0x2f6   :  { %v12871_v28 = vadd.f32 %v12870_v25, %v12869_v22  ;;  %v12892_v29 = vpop.f32.mrb[45].mxu0  ;;  %v12872_v36 = vpop.f32.mrb[42].mxu1  ;;  %13172 = vmatpush3.bf16.msra.mxu1 %v14108_v18  ;;  %v14148_v22 = vld [vmem:[%s17789_s3 + $0x1238] sm:$0xff]  }
 0x2f7   :  { %v12893_v31 = vadd.f32 %v12892_v29, %v12891_v24  ;;  %v12894_v32 = vpop.f32.mrb[46].mxu0  ;;  %13194 = vmatpush3.bf16.msra.mxu0 %v14109_v19  ;;  %v12873_v33 = vpop.f32.mrb[43].mxu1  ;;  %13173 = vmatprep.subr.bf16.mxu1 %v14110_v20  ;;  %v14149_v24 = vld [vmem:[%s17789_s3 + $0x12b8] sm:$0xff]   ;;  %v14152_v29 = vld [vmem:[%s17789_s3 + $0x1300] sm:$0xff]  }
 0x2f8   :  { %v4221_v34 = vadd.f32 %v12871_v28, %v16763_v52  ;;  %v12895_v35 = vpop.f32.mrb[47].mxu0  ;;  %13195 = vmatprep.subr.bf16.mxu0 %v14111_v21  ;;  %v14129_v52 = vld [vmem:[%s17789_s3 + $0x1290] sm:$0xff]   ;;  %v14151_v28 = vld [vmem:[%s17789_s3 + $0x13c0] sm:$0xff]   ;;  %v14156_v32 = vld [vmem:[%s17789_s3 + $0x1308] sm:$0xff]  }
 0x2f9   :  { %v14153_v36 = vld [vmem:[%s17789_s3 + $0x1380] sm:$0xff]   ;;  %v14157_v33 = vld [vmem:[%s17789_s3 + $0x1388] sm:$0xff]   ;;  %v14159_v35 = vld [vmem:[%s17789_s3 + $0x13d0] sm:$0xff]  }
 0x2fa   :  { %v16908_v41 = vadd.f32 %v12893_v31, %v4221_v34  ;;  %13174 = vmatpush3.bf16.msra.mxu1 %v14112_v23  ;;  %v14155_v31 = vld [vmem:[%s17789_s3 + $0x13c8] sm:$0xff]   ;;  %v14158_v34 = vld [vmem:[%s17789_s3 + $0x1350] sm:$0xff]   ;;  %v14195_v25 = vld [vmem:[%s17789_s3 + $0x14d8] sm:$0xff]  }
 0x2fb   :  { %13196 = vmatpush3.bf16.msra.mxu0 %v14113_v26  ;;  %13175 = vmatprep.subr.bf16.mxu1 %v14114_v27  ;;  %v14150_v27 = vld [vmem:[%s17789_s3 + $0x1340] sm:$0xff]   ;;  %v14193_v23 = vld [vmem:[%s17789_s3 + $0x1490] sm:$0xff]  }
 0x2fc   :  { %13197 = vmatprep.subr.bf16.mxu0 %v14115_v30  ;;  %v14154_v30 = vld [vmem:[%s17789_s3 + $0x1348] sm:$0xff]  }
 0x2fe   :  { %13176 = vmatpush3.bf16.msra.mxu1 %v14116_v37  ;;  %v14160_v37 = vld [vmem:[%s17789_s3 + $0x1310] sm:$0xff]  }
 0x2ff   :  { %13198 = vmatpush3.bf16.msra.mxu0 %v14117_v39  ;;  %13205 = vmatprep.subr.bf16.mxu1 %v14118_v42  ;;  %v14162_v39 = vld [vmem:[%s17789_s3 + $0x1358] sm:$0xff]  }
 0x300   :  { %13227 = vmatprep.subr.bf16.mxu0 %v14119_v43  ;;  %v14165_v42 = vld [vmem:[%s17789_s3 + $0x1398] sm:$0xff]   ;;  %v14166_v43 = vld [vmem:[%s17789_s3 + $0x1360] sm:$0xff]  }
 0x301   :  { %11547 = vmatmul.mubr.msk.bf16.vlgmr.msra.gmra.mrb[68].mxu1 %vm16893_vm5, %v14386_v62  ;;  %vm7605_vm5 = vcmp.eq.f32.partialorder %v14736_v59, 40.0 }
 0x302   :  { %11601 = vmatmul.mubr.msk.bf16.vlgmr.msra.gmra.mrb[72].mxu0 %vm16903_vm6, %v14386_v62  ;;  %13206 = vmatpush3.bf16.msra.mxu1 %v14120_v44  ;;  %v14167_v44 = vld [vmem:[%s17789_s3 + $0x13e0] sm:$0xff]   ;;  %vm17144_vm6 = vmpackc.low %vm7248_vm3, %vm7248_vm3  ;;  %vm7960_vm3 = vcmp.eq.f32.partialorder %v14734_v57, 42.0 }
 0x303   :  { %11653 = vmatprep.mubr.msk.bf16.mxu1 %vm11652_vm9, %v14386_v62  ;;  %13228 = vmatpush3.bf16.msra.mxu0 %v14121_v54  ;;  %v14168_v54 = vld [vmem:[%s17789_s3 + $0x1320] sm:$0xff]   ;;  %vm11868_vm9 = vmpackc.low %vm7605_vm5, %vm7605_vm5  ;;  %vm8317_vm5 = vcmp.eq.f32.partialorder %v14736_v59, 44.0 }
 0x304   :  { %11707 = vmatprep.mubr.msk.bf16.mxu0 %vm11706_vm10, %v14386_v62  ;;  %13207 = vmatprep.subr.bf16.mxu1 %v14122_v45  ;;  %v14169_v45 = vld [vmem:[%s17789_s3 + $0x13a0] sm:$0xff]   ;;  %vm11922_vm10 = vmpackc.low %vm7783_vm8, %vm7783_vm8 }
 0x305   :  { %13229 = vmatprep.subr.bf16.mxu0 %v14123_v46  ;;  %v14170_v46 = vld [vmem:[%s17789_s3 + $0x1368] sm:$0xff]  }
 0x306   :  { %13208 = vmatpush3.bf16.msra.mxu1 %v14124_v47  ;;  %v14171_v47 = vld [vmem:[%s17789_s3 + $0x13e8] sm:$0xff]  }
 0x307   :  { %13230 = vmatpush3.bf16.msra.mxu0 %v14125_v48  ;;  %13209 = vmatprep.subr.bf16.mxu1 %v14126_v49  ;;  %v14172_v48 = vld [vmem:[%s17789_s3 + $0x1328] sm:$0xff]  }
 0x308   :  { %13231 = vmatprep.subr.bf16.mxu0 %v14127_v50  ;;  %v14173_v49 = vld [vmem:[%s17789_s3 + $0x13a8] sm:$0xff]   ;;  %v14174_v50 = vld [vmem:[%s17789_s3 + $0x1370] sm:$0xff]  }
 0x30a   :  { %13210 = vmatpush3.bf16.msra.mxu1 %v14128_v51 }
 0x30b   :  { %13232 = vmatpush3.bf16.msra.mxu0 %v14129_v52  ;;  %13211 = vmatprep.subr.bf16.mxu1 %v14130_v53  ;;  %v14175_v52 = vld [vmem:[%s17789_s3 + $0x13f0] sm:$0xff]  }
 0x30c   :  { %13233 = vmatprep.subr.bf16.mxu0 %v14131_v55 }
 0x30e   :  { %13212 = vmatpush3.bf16.msra.mxu1 %v14132_v56  ;;  %v14176_v56 = vld [vmem:[%s17789_s3 + $0x1330] sm:$0xff]  }
 0x30f   :  { %13234 = vmatpush3.bf16.msra.mxu0 %v14133_v58  ;;  %13213 = vmatprep.subr.bf16.mxu1 %v14134_v60  ;;  %v14177_v58 = vld [vmem:[%s17789_s3 + $0x13b0] sm:$0xff]  }
 0x310   :  { %13235 = vmatprep.subr.bf16.mxu0 %v14135_v7 }
 0x312   :  { %13214 = vmatpush3.bf16.msra.mxu1 %v14136_v61 }
 0x313   :  { %13236 = vmatpush3.bf16.msra.mxu0 %v14137_v63  ;;  %13215 = vmatprep.subr.bf16.mxu1 %v14138_v0 }
 0x314   :  { %v12913_v6 = vpop.f32.mrb[44].mxu1  ;;  %13237 = vmatprep.subr.bf16.mxu0 %v14139_v1 }
 0x315   :  { %v12935_v9 = vpop.f32.mrb[48].mxu0  ;;  %v12914_v10 = vpop.f32.mrb[45].mxu1 }
 0x316   :  { %v12915_v12 = vadd.f32 %v12914_v10, %v12913_v6  ;;  %v12936_v13 = vpop.f32.mrb[49].mxu0  ;;  %v12916_v14 = vpop.f32.mrb[46].mxu1  ;;  %13216 = vmatpush3.bf16.msra.mxu1 %v14140_v2  ;;  %v14178_v2 = vld [vmem:[%s17789_s3 + $0x1378] sm:$0xff]  }
 0x317   :  { %v12937_v17 = vadd.f32 %v12936_v13, %v12935_v9  ;;  %v12938_v18 = vpop.f32.mrb[50].mxu0  ;;  %13238 = vmatpush3.bf16.msra.mxu0 %v14141_v3  ;;  %v12917_v19 = vpop.f32.mrb[47].mxu1  ;;  %13217 = vmatprep.subr.bf16.mxu1 %v14142_v4  ;;  %v14179_v3 = vld [vmem:[%s17789_s3 + $0x13f8] sm:$0xff]   ;;  %v14183_v13 = vld [vmem:[%s17789_s3 + $0x14c0] sm:$0xff]  }
 0x318   :  { %v4577_v20 = vadd.f32 %v12915_v12, %v16908_v41  ;;  %v12939_v21 = vpop.f32.mrb[51].mxu0  ;;  %13239 = vmatprep.subr.bf16.mxu0 %v14143_v5  ;;  %v14164_v41 = vld [vmem:[%s17789_s3 + $0x1318] sm:$0xff]   ;;  %v14182_v12 = vld [vmem:[%s17789_s3 + $0x1440] sm:$0xff]   ;;  %v14188_v18 = vld [vmem:[%s17789_s3 + $0x1408] sm:$0xff]  }
 0x319   :  { %v14180_v6 = vld [vmem:[%s17789_s3 + $0x1338] sm:$0xff]   ;;  %v14184_v14 = vld [vmem:[%s17789_s3 + $0x1400] sm:$0xff]   ;;  %v14189_v19 = vld [vmem:[%s17789_s3 + $0x1488] sm:$0xff]  }
 0x31a   :  { %v17033_v26 = vadd.f32 %v12937_v17, %v4577_v20  ;;  %13218 = vmatpush3.bf16.msra.mxu1 %v14144_v8  ;;  %v14181_v9 = vld [vmem:[%s17789_s3 + $0x13b8] sm:$0xff]   ;;  %v14187_v17 = vld [vmem:[%s17789_s3 + $0x14c8] sm:$0xff]   ;;  %v14190_v20 = vld [vmem:[%s17789_s3 + $0x1450] sm:$0xff]  }
 0x31b   :  { %13240 = vmatpush3.bf16.msra.mxu0 %v14145_v11  ;;  %13219 = vmatprep.subr.bf16.mxu1 %v14146_v15  ;;  %v14185_v15 = vld [vmem:[%s17789_s3 + $0x1480] sm:$0xff]   ;;  %v14191_v21 = vld [vmem:[%s17789_s3 + $0x14d0] sm:$0xff]   ;;  %v14227_v10 = vld [vmem:[%s17789_s3 + $0x15d8] sm:$0xff]  }
 0x31c   :  { %13241 = vmatprep.subr.bf16.mxu0 %v14147_v16  ;;  %v14186_v16 = vld [vmem:[%s17789_s3 + $0x1448] sm:$0xff]   ;;  %v14225_v8 = vld [vmem:[%s17789_s3 + $0x1590] sm:$0xff]  }
 0x31e   :  { %13220 = vmatpush3.bf16.msra.mxu1 %v14148_v22  ;;  %v14192_v22 = vld [vmem:[%s17789_s3 + $0x1410] sm:$0xff]  }
 0x31f   :  { %13242 = vmatpush3.bf16.msra.mxu0 %v14149_v24  ;;  %13249 = vmatprep.subr.bf16.mxu1 %v14150_v27  ;;  %v14194_v24 = vld [vmem:[%s17789_s3 + $0x1458] sm:$0xff]  }
 0x320   :  { %13271 = vmatprep.subr.bf16.mxu0 %v14151_v28  ;;  %v14197_v27 = vld [vmem:[%s17789_s3 + $0x1498] sm:$0xff]   ;;  %v14198_v28 = vld [vmem:[%s17789_s3 + $0x1460] sm:$0xff]  }
 0x321   :  { %11655 = vmatmul.mubr.msk.bf16.vlgmr.msra.gmra.mrb[72].mxu1 %vm17018_vm13, %v14386_v62  ;;  %vm17271_vm13 = vmpackc.low %vm7604_vm11, %vm7604_vm11 }
 0x322   :  { %11709 = vmatmul.mubr.msk.bf16.vlgmr.msra.gmra.mrb[76].mxu0 %vm17028_vm14, %v14386_v62  ;;  %13250 = vmatpush3.bf16.msra.mxu1 %v14152_v29  ;;  %v14199_v29 = vld [vmem:[%s17789_s3 + $0x14e0] sm:$0xff]   ;;  %vm17281_vm14 = vmpackc.low %vm7782_vm12, %vm7782_vm12 }
 0x323   :  { %11761 = vmatprep.mubr.msk.bf16.mxu1 %vm11760_vm1, %v14386_v62  ;;  %13272 = vmatpush3.bf16.msra.mxu0 %v14153_v36  ;;  %v14200_v36 = vld [vmem:[%s17789_s3 + $0x1420] sm:$0xff]   ;;  %vm11976_vm1 = vmpackc.low %vm7961_vm15, %vm7961_vm15 }
 0x324   :  { %11815 = vmatprep.mubr.msk.bf16.mxu0 %vm11814_vm2, %v14386_v62  ;;  %13251 = vmatprep.subr.bf16.mxu1 %v14154_v30  ;;  %v14201_v30 = vld [vmem:[%s17789_s3 + $0x14a0] sm:$0xff]   ;;  %vm12030_vm2 = vmpackc.low %vm8139_vm0, %vm8139_vm0 }
 0x325   :  { %13273 = vmatprep.subr.bf16.mxu0 %v14155_v31  ;;  %v14202_v31 = vld [vmem:[%s17789_s3 + $0x1468] sm:$0xff]  }
 0x326   :  { %13252 = vmatpush3.bf16.msra.mxu1 %v14156_v32  ;;  %v14203_v32 = vld [vmem:[%s17789_s3 + $0x14e8] sm:$0xff]  }
 0x327   :  { %13274 = vmatpush3.bf16.msra.mxu0 %v14157_v33  ;;  %13253 = vmatprep.subr.bf16.mxu1 %v14158_v34  ;;  %v14204_v33 = vld [vmem:[%s17789_s3 + $0x1428] sm:$0xff]  }
 0x328   :  { %13275 = vmatprep.subr.bf16.mxu0 %v14159_v35  ;;  %v14205_v34 = vld [vmem:[%s17789_s3 + $0x14a8] sm:$0xff]   ;;  %v14206_v35 = vld [vmem:[%s17789_s3 + $0x1470] sm:$0xff]  }
 0x32a   :  { %13254 = vmatpush3.bf16.msra.mxu1 %v14160_v37  ;;  %v14207_v37 = vld [vmem:[%s17789_s3 + $0x14f0] sm:$0xff]  }
 0x32b   :  { %13276 = vmatpush3.bf16.msra.mxu0 %v14161_v38  ;;  %13255 = vmatprep.subr.bf16.mxu1 %v14162_v39  ;;  %v14208_v39 = vld [vmem:[%s17789_s3 + $0x1430] sm:$0xff]  }
 0x32c   :  { %13277 = vmatprep.subr.bf16.mxu0 %v14163_v40 }
 0x32e   :  { %13256 = vmatpush3.bf16.msra.mxu1 %v14164_v41 }
 0x32f   :  { %13278 = vmatpush3.bf16.msra.mxu0 %v14165_v42  ;;  %13257 = vmatprep.subr.bf16.mxu1 %v14166_v43  ;;  %v14209_v42 = vld [vmem:[%s17789_s3 + $0x14b0] sm:$0xff]   ;;  %v14210_v43 = vld [vmem:[%s17789_s3 + $0x1478] sm:$0xff]  }
 0x330   :  { %13279 = vmatprep.subr.bf16.mxu0 %v14167_v44 }
 0x332   :  { %13258 = vmatpush3.bf16.msra.mxu1 %v14168_v54 }
 0x333   :  { %13280 = vmatpush3.bf16.msra.mxu0 %v14169_v45  ;;  %13259 = vmatprep.subr.bf16.mxu1 %v14170_v46  ;;  %v14211_v46 = vld [vmem:[%s17789_s3 + $0x14f8] sm:$0xff]  }
 0x334   :  { %v12957_v51 = vpop.f32.mrb[48].mxu1  ;;  %13281 = vmatprep.subr.bf16.mxu0 %v14171_v47 }
 0x335   :  { %v12979_v53 = vpop.f32.mrb[52].mxu0  ;;  %v12958_v55 = vpop.f32.mrb[49].mxu1 }
 0x336   :  { %v12959_v60 = vadd.f32 %v12958_v55, %v12957_v51  ;;  %v12980_v7 = vpop.f32.mrb[53].mxu0  ;;  %v12960_v61 = vpop.f32.mrb[50].mxu1  ;;  %13260 = vmatpush3.bf16.msra.mxu1 %v14172_v48  ;;  %v14213_v55 = vld [vmem:[%s17789_s3 + $0x14b8] sm:$0xff]  }
 0x337   :  { %v12981_v63 = vadd.f32 %v12980_v7, %v12979_v53  ;;  %v12982_v0 = vpop.f32.mrb[54].mxu0  ;;  %13282 = vmatpush3.bf16.msra.mxu0 %v14173_v49  ;;  %v12961_v1 = vpop.f32.mrb[51].mxu1  ;;  %13261 = vmatprep.subr.bf16.mxu1 %v14174_v50  ;;  %v14215_v7 = vld [vmem:[%s17789_s3 + $0x15c0] sm:$0xff]  }
 0x338   :  { %v4933_v4 = vadd.f32 %v12959_v60, %v17033_v26  ;;  %v12983_v5 = vpop.f32.mrb[55].mxu0  ;;  %13283 = vmatprep.subr.bf16.mxu0 %v14175_v52  ;;  %v14196_v26 = vld [vmem:[%s17789_s3 + $0x1418] sm:$0xff]   ;;  %v14214_v60 = vld [vmem:[%s17789_s3 + $0x1540] sm:$0xff]   ;;  %v14218_v0 = vld [vmem:[%s17789_s3 + $0x1548] sm:$0xff]  }
 0x339   :  { %v14212_v52 = vld [vmem:[%s17789_s3 + $0x1438] sm:$0xff]   ;;  %v14216_v61 = vld [vmem:[%s17789_s3 + $0x1500] sm:$0xff]   ;;  %v14219_v1 = vld [vmem:[%s17789_s3 + $0x15c8] sm:$0xff]  }
 0x33a   :  { %v17158_v11 = vadd.f32 %v12981_v63, %v4933_v4  ;;  %13262 = vmatpush3.bf16.msra.mxu1 %v14176_v56  ;;  %v14217_v63 = vld [vmem:[%s17789_s3 + $0x1580] sm:$0xff]   ;;  %v14222_v4 = vld [vmem:[%s17789_s3 + $0x1550] sm:$0xff]  }
 0x33b   :  { %13284 = vmatpush3.bf16.msra.mxu0 %v14177_v58  ;;  %13263 = vmatprep.subr.bf16.mxu1 %v14178_v2  ;;  %v14220_v2 = vld [vmem:[%s17789_s3 + $0x1508] sm:$0xff]   ;;  %v14223_v5 = vld [vmem:[%s17789_s3 + $0x15d0] sm:$0xff]  }
 0x33c   :  { %13285 = vmatprep.subr.bf16.mxu0 %v14179_v3  ;;  %v14221_v3 = vld [vmem:[%s17789_s3 + $0x1588] sm:$0xff]  }
 0x33e   :  { %13264 = vmatpush3.bf16.msra.mxu1 %v14180_v6  ;;  %v14224_v6 = vld [vmem:[%s17789_s3 + $0x1510] sm:$0xff]  }
 0x33f   :  { %13286 = vmatpush3.bf16.msra.mxu0 %v14181_v9  ;;  %13293 = vmatprep.subr.bf16.mxu1 %v14182_v12  ;;  %v14226_v9 = vld [vmem:[%s17789_s3 + $0x1558] sm:$0xff]  }
 0x340   :  { %13315 = vmatprep.subr.bf16.mxu0 %v14183_v13  ;;  %v14229_v12 = vld [vmem:[%s17789_s3 + $0x1598] sm:$0xff]   ;;  %v14230_v13 = vld [vmem:[%s17789_s3 + $0x1560] sm:$0xff]  }
 0x341   :  { %11763 = vmatmul.mubr.msk.bf16.vlgmr.msra.gmra.mrb[76].mxu1 %vm17144_vm6, %v14386_v62 }
 0x342   :  { %11817 = vmatmul.mubr.msk.bf16.vlgmr.msra.gmra.mrb[80].mxu0 %vm17154_vm7, %v14386_v62  ;;  %13294 = vmatpush3.bf16.msra.mxu1 %v14184_v14  ;;  %v14231_v14 = vld [vmem:[%s17789_s3 + $0x15e0] sm:$0xff]  }
 0x343   :  { %11869 = vmatprep.mubr.msk.bf16.mxu1 %vm11868_vm9, %v14386_v62  ;;  %13316 = vmatpush3.bf16.msra.mxu0 %v14185_v15  ;;  %v14232_v15 = vld [vmem:[%s17789_s3 + $0x1520] sm:$0xff]  }
 0x344   :  { %11923 = vmatprep.mubr.msk.bf16.mxu0 %vm11922_vm10, %v14386_v62  ;;  %13295 = vmatprep.subr.bf16.mxu1 %v14186_v16  ;;  %v14233_v16 = vld [vmem:[%s17789_s3 + $0x15a0] sm:$0xff]  }
 0x345   :  { %13317 = vmatprep.subr.bf16.mxu0 %v14187_v17  ;;  %v14234_v17 = vld [vmem:[%s17789_s3 + $0x1568] sm:$0xff]  }
 0x346   :  { %13296 = vmatpush3.bf16.msra.mxu1 %v14188_v18  ;;  %v14235_v18 = vld [vmem:[%s17789_s3 + $0x15e8] sm:$0xff]  }
 0x347   :  { %13318 = vmatpush3.bf16.msra.mxu0 %v14189_v19  ;;  %13297 = vmatprep.subr.bf16.mxu1 %v14190_v20  ;;  %v14236_v19 = vld [vmem:[%s17789_s3 + $0x1528] sm:$0xff]  }
 0x348   :  { %13319 = vmatprep.subr.bf16.mxu0 %v14191_v21  ;;  %v14237_v20 = vld [vmem:[%s17789_s3 + $0x15a8] sm:$0xff]   ;;  %v14238_v21 = vld [vmem:[%s17789_s3 + $0x1570] sm:$0xff]  }
 0x34a   :  { %13298 = vmatpush3.bf16.msra.mxu1 %v14192_v22  ;;  %v14239_v22 = vld [vmem:[%s17789_s3 + $0x15f0] sm:$0xff]  }
 0x34b   :  { %13320 = vmatpush3.bf16.msra.mxu0 %v14193_v23  ;;  %13299 = vmatprep.subr.bf16.mxu1 %v14194_v24  ;;  %v14240_v24 = vld [vmem:[%s17789_s3 + $0x1530] sm:$0xff]  }
 0x34c   :  { %13321 = vmatprep.subr.bf16.mxu0 %v14195_v25 }
 0x34e   :  { %13300 = vmatpush3.bf16.msra.mxu1 %v14196_v26 }
 0x34f   :  { %13322 = vmatpush3.bf16.msra.mxu0 %v14197_v27  ;;  %13301 = vmatprep.subr.bf16.mxu1 %v14198_v28  ;;  %v14241_v27 = vld [vmem:[%s17789_s3 + $0x15b0] sm:$0xff]   ;;  %v14242_v28 = vld [vmem:[%s17789_s3 + $0x1578] sm:$0xff]  }
 0x350   :  { %13323 = vmatprep.subr.bf16.mxu0 %v14199_v29 }
 0x352   :  { %13302 = vmatpush3.bf16.msra.mxu1 %v14200_v36 }
 0x353   :  { %13324 = vmatpush3.bf16.msra.mxu0 %v14201_v30  ;;  %13303 = vmatprep.subr.bf16.mxu1 %v14202_v31 }
 0x354   :  { %v13001_v38 = vpop.f32.mrb[52].mxu1  ;;  %13325 = vmatprep.subr.bf16.mxu0 %v14203_v32 }
 0x355   :  { %v13023_v40 = vpop.f32.mrb[56].mxu0  ;;  %v13002_v41 = vpop.f32.mrb[53].mxu1 }
 0x356   :  { %v13003_v44 = vadd.f32 %v13002_v41, %v13001_v38  ;;  %v13024_v54 = vpop.f32.mrb[57].mxu0  ;;  %v13004_v45 = vpop.f32.mrb[54].mxu1  ;;  %13304 = vmatpush3.bf16.msra.mxu1 %v14204_v33  ;;  %v14244_v38 = vld [vmem:[%s17789_s3 + $0x1538] sm:$0xff]   ;;  %v14246_v41 = vld [vmem:[%s17789_s3 + $0x1640] sm:$0xff]  }
 0x357   :  { %v13025_v47 = vadd.f32 %v13024_v54, %v13023_v40  ;;  %v13026_v48 = vpop.f32.mrb[58].mxu0  ;;  %13326 = vmatpush3.bf16.msra.mxu0 %v14205_v34  ;;  %v13005_v49 = vpop.f32.mrb[55].mxu1  ;;  %13305 = vmatprep.subr.bf16.mxu1 %v14206_v35  ;;  %v14245_v40 = vld [vmem:[%s17789_s3 + $0x15b8] sm:$0xff]  }
 0x358   :  { %v5289_v50 = vadd.f32 %v13003_v44, %v17158_v11  ;;  %v13027_v51 = vpop.f32.mrb[59].mxu0  ;;  %13327 = vmatprep.subr.bf16.mxu0 %v14207_v37  ;;  %v14228_v11 = vld [vmem:[%s17789_s3 + $0x1518] sm:$0xff]   ;;  %v14249_v44 = vld [vmem:[%s17789_s3 + $0x1680] sm:$0xff]  }
 0x359   :  { %v14243_v37 = vld [vmem:[%s17789_s3 + $0x15f8] sm:$0xff]  }
 0x35a   :  { %v17286_v58 = vadd.f32 %v13025_v47, %v5289_v50  ;;  %13306 = vmatpush3.bf16.msra.mxu1 %v14208_v39 }
 0x35b   :  { %13328 = vmatpush3.bf16.msra.mxu0 %v14209_v42  ;;  %13307 = vmatprep.subr.bf16.mxu1 %v14210_v43  ;;  %v14247_v42 = vld [vmem:[%s17789_s3 + $0x16c0] sm:$0xff]  }
 0x35c   :  { %13329 = vmatprep.subr.bf16.mxu0 %v14211_v46  ;;  %v14248_v43 = vld [vmem:[%s17789_s3 + $0x1600] sm:$0xff]  }
 0x35e   :  { %13308 = vmatpush3.bf16.msra.mxu1 %v14212_v52 }
 0x35f   :  { %13330 = vmatpush3.bf16.msra.mxu0 %v14213_v55  ;;  %13337 = vmatprep.subr.bf16.mxu1 %v14214_v60 }
 0x360   :  { %13359 = vmatprep.subr.bf16.mxu0 %v14215_v7 }
 0x361   :  { %11871 = vmatmul.mubr.msk.bf16.vlgmr.msra.gmra.mrb[80].mxu1 %vm17271_vm13, %v14386_v62 }
 0x362   :  { %11925 = vmatmul.mubr.msk.bf16.vlgmr.msra.gmra.mrb[84].mxu0 %vm17281_vm14, %v14386_v62  ;;  %13338 = vmatpush3.bf16.msra.mxu1 %v14216_v61 }
 0x363   :  { %11977 = vmatprep.mubr.msk.bf16.mxu1 %vm11976_vm1, %v14386_v62  ;;  %13360 = vmatpush3.bf16.msra.mxu0 %v14217_v63 }
 0x364   :  { %12031 = vmatprep.mubr.msk.bf16.mxu0 %vm12030_vm2, %v14386_v62  ;;  %13339 = vmatprep.subr.bf16.mxu1 %v14218_v0 }
 0x365   :  { %13361 = vmatprep.subr.bf16.mxu0 %v14219_v1 }
 0x366   :  { %13340 = vmatpush3.bf16.msra.mxu1 %v14220_v2 }
 0x367   :  { %13362 = vmatpush3.bf16.msra.mxu0 %v14221_v3  ;;  %13341 = vmatprep.subr.bf16.mxu1 %v14222_v4 }
 0x368   :  { %13363 = vmatprep.subr.bf16.mxu0 %v14223_v5 }
 0x36a   :  { %13342 = vmatpush3.bf16.msra.mxu1 %v14224_v6 }
 0x36b   :  { %13364 = vmatpush3.bf16.msra.mxu0 %v14225_v8  ;;  %13343 = vmatprep.subr.bf16.mxu1 %v14226_v9 }
 0x36c   :  { %13365 = vmatprep.subr.bf16.mxu0 %v14227_v10 }
 0x36e   :  { %13344 = vmatpush3.bf16.msra.mxu1 %v14228_v11 }
 0x36f   :  { %13366 = vmatpush3.bf16.msra.mxu0 %v14229_v12  ;;  %13345 = vmatprep.subr.bf16.mxu1 %v14230_v13 }
 0x370   :  { %13367 = vmatprep.subr.bf16.mxu0 %v14231_v14 }
 0x372   :  { %13346 = vmatpush3.bf16.msra.mxu1 %v14232_v15 }
 0x373   :  { %13368 = vmatpush3.bf16.msra.mxu0 %v14233_v16  ;;  %13347 = vmatprep.subr.bf16.mxu1 %v14234_v17 }
 0x374   :  { %v13045_v23 = vpop.f32.mrb[56].mxu1  ;;  %13369 = vmatprep.subr.bf16.mxu0 %v14235_v18 }
 0x375   :  { %v13067_v25 = vpop.f32.mrb[60].mxu0  ;;  %v13046_v26 = vpop.f32.mrb[57].mxu1 }
 0x376   :  { %v13047_v29 = vadd.f32 %v13046_v26, %v13045_v23  ;;  %v13068_v36 = vpop.f32.mrb[61].mxu0  ;;  %v13048_v30 = vpop.f32.mrb[58].mxu1  ;;  %13348 = vmatpush3.bf16.msra.mxu1 %v14236_v19 }
 0x377   :  { %v13069_v31 = vadd.f32 %v13068_v36, %v13067_v25  ;;  %v13070_v32 = vpop.f32.mrb[62].mxu0  ;;  %13370 = vmatpush3.bf16.msra.mxu0 %v14237_v20  ;;  %v13049_v33 = vpop.f32.mrb[59].mxu1  ;;  %13349 = vmatprep.subr.bf16.mxu1 %v14238_v21 }
 0x378   :  { %v5645_v34 = vadd.f32 %v13047_v29, %v17286_v58  ;;  %v13071_v35 = vpop.f32.mrb[63].mxu0  ;;  %13371 = vmatprep.subr.bf16.mxu0 %v14239_v22 }
 0x37a   :  { %v17391_v39 = vadd.f32 %v13069_v31, %v5645_v34  ;;  %13350 = vmatpush3.bf16.msra.mxu1 %v14240_v24 }
 0x37b   :  { %13372 = vmatpush3.bf16.msra.mxu0 %v14241_v27  ;;  %13351 = vmatprep.subr.bf16.mxu1 %v14242_v28 }
 0x37c   :  { %13373 = vmatprep.subr.bf16.mxu0 %v14243_v37 }
 0x37e   :  { %13352 = vmatpush3.bf16.msra.mxu1 %v14244_v38 }
 0x37f   :  { %13374 = vmatpush3.bf16.msra.mxu0 %v14245_v40  ;;  %13381 = vmatprep.subr.bf16.mxu1 %v14246_v41 }
 0x380   :  { %10 = vsyncpa [#allocation3], 0  ;;  %13403 = vmatprep.subr.bf16.mxu0 %v14247_v42  ;;  %vm8495_vm7 = vcmp.eq.f32.partialorder %v14736_v59, 45.0  ;;  %v14250_v54 = vld [vmem:[%s17789_s3 + $0x1648] sm:$0xff]   ;;  %v14254_v48 = vld [vmem:[%s17789_s3 + $0x1650] sm:$0xff]   ;;  %vm8316_vm11 = vcmp.eq.f32.partialorder %v14734_v57, 44.0 }
 0x381   :  { %vm11978_vm6 = vmpackc.low %vm7960_vm3, %vm7960_vm3  ;;  %v14251_v45 = vld [vmem:[%s17789_s3 + $0x16c8] sm:$0xff]   ;;  %v14255_v49 = vld [vmem:[%s17789_s3 + $0x16d0] sm:$0xff]   ;;  %vm8494_vm12 = vcmp.eq.f32.partialorder %v14734_v57, 45.0  ;;  %vm8673_vm13 = vcmp.eq.f32.partialorder %v14736_v59, 46.0  ;;  %vm8851_vm15 = vcmp.eq.f32.partialorder %v14736_v59, 47.0  ;;  %vm8672_vm3 = vcmp.eq.f32.partialorder %v14734_v57, 46.0 }
 0x382   :  { %11979 = vmatmul.mubr.msk.bf16.vlgmr.msra.gmra.mrb[84].mxu1 %vm11978_vm6, %v14386_v62  ;;  %vm12032_vm8 = vmpackc.low %vm8138_vm4, %vm8138_vm4  ;;  %v14252_v46 = vld [vmem:[%s17789_s3 + $0x1608] sm:$0xff]   ;;  %v14256_v50 = vld [vmem:[%s17789_s3 + $0x1610] sm:$0xff]   ;;  %vm8850_vm4 = vcmp.eq.f32.partialorder %v14734_v57, 47.0  ;;  %s14387_s16 = smov [#allocation2]  }
 0x383   :  { %12033 = vmatmul.mubr.msk.bf16.vlgmr.msra.gmra.mrb[88].mxu0 %vm12032_vm8, %v14386_v62  ;;  %13382 = vmatpush3.bf16.msra.mxu1 %v14248_v43  ;;  %vm12084_vm9 = vmpackc.low %vm8317_vm5, %vm8317_vm5  ;;  %v14253_v47 = vld [vmem:[%s17789_s3 + $0x1688] sm:$0xff]   ;;  %v14257_v51 = vld [vmem:[%s17789_s3 + $0x1690] sm:$0xff]   ;;  %vm9029_vm5 = vcmp.eq.f32.partialorder %v14736_v59, 48.0  ;;  %s9579_s17 = sshll.u32 %s14387_s16, 4  ;;  %s9580_s17 = int_to_ptr.vmem [resolvable:$true] %s9579_s17 }
 0x384   :  { %12085 = vmatprep.mubr.msk.bf16.mxu1 %vm12084_vm9, %v14386_v62  ;;  %13404 = vmatpush3.bf16.msra.mxu0 %v14249_v44  ;;  %vm12138_vm10 = vmpackc.low %vm8495_vm7, %vm8495_vm7  ;;  %v14258_v52 = vld [vmem:[%s17789_s3 + $0x1658] sm:$0xff]   ;;  %v14262_v58 = vld [vmem:[%s17789_s3 + $0x1660] sm:$0xff]   ;;  %vm9207_vm7 = vcmp.eq.f32.partialorder %v14736_v59, 49.0  ;;  %s14360_s18 = scalar_lea.vmem %s9580_s17, 128  ;;  %p14365_p1 = scmp.lt.s32.totalorder %s9580_s17, %s9580_s17 }
 0x385   :  { %12139 = vmatprep.mubr.msk.bf16.mxu0 %vm12138_vm10, %v14386_v62  ;;  %13383 = vmatprep.subr.bf16.mxu1 %v14250_v54  ;;  %v14259_v53 = vld [vmem:[%s17789_s3 + $0x16d8] sm:$0xff]   ;;  %v14263_v60 = vld [vmem:[%s17789_s3 + $0x16e0] sm:$0xff]   ;;  %v14266_v63 = vld [vmem:[%s17789_s3 + $0x1668] sm:$0xff]   ;;  %p14361_p0 = scmp.ne.s32.totalorder %s9580_s17, %s14360_s18  ;;  %p14366_p2 = scmp.lt.s32.totalorder %s14360_s18, %s14360_s18 }
 0x386   :  { %13405 = vmatprep.subr.bf16.mxu0 %v14251_v45  ;;  %v14260_v55 = vld [vmem:[%s17789_s3 + $0x1618] sm:$0xff]   ;;  %v14264_v7 = vld [vmem:[%s17789_s3 + $0x1620] sm:$0xff]   ;;  %v14267_v0 = vld [vmem:[%s17789_s3 + $0x16e8] sm:$0xff]  }
 0x387   :  { %13384 = vmatpush3.bf16.msra.mxu1 %v14252_v46  ;;  %v14261_v56 = vld [vmem:[%s17789_s3 + $0x1698] sm:$0xff]   ;;  %v14265_v61 = vld [vmem:[%s17789_s3 + $0x16a0] sm:$0xff]   ;;  %v14268_v1 = vld [vmem:[%s17789_s3 + $0x1628] sm:$0xff]   ;;  %p14367_p3 = por %p14366_p2, %p14365_p1 }
 0x388   :  { %13406 = vmatpush3.bf16.msra.mxu0 %v14253_v47  ;;  %13385 = vmatprep.subr.bf16.mxu1 %v14254_v48  ;;  %v14269_v2 = vld [vmem:[%s17789_s3 + $0x16a8] sm:$0xff]   ;;  %v14270_v3 = vld [vmem:[%s17789_s3 + $0x1670] sm:$0xff]   ;;  %v14274_v17 = vld [vmem:[%s17789_s3 + $0x1678] sm:$0xff]  }
 0x389   :  { %13407 = vmatprep.subr.bf16.mxu0 %v14255_v49  ;;  %v14271_v5 = vld [vmem:[%s17789_s3 + $0x16f0] sm:$0xff]   ;;  %v14275_v20 = vld [vmem:[%s17789_s3 + $0x16f8] sm:$0xff]   ;;  %v14278_v24 = vld [vmem:[%s17789_s3 + $0x1740] sm:$0xff]   ;;  %p14368_p4 = pnand %p14367_p3, %p14361_p0 }
 0x38a   :  { %v14272_v12 = vld [vmem:[%s17789_s3 + $0x1630] sm:$0xff]   ;;  %v14276_v22 = vld [vmem:[%s17789_s3 + $0x1638] sm:$0xff]   ;;  %v14279_v25 = vld [vmem:[%s17789_s3 + $0x17c0] sm:$0xff]  }
 0x38b   :  { %13386 = vmatpush3.bf16.msra.mxu1 %v14256_v50  ;;  %v14273_v16 = vld [vmem:[%s17789_s3 + $0x16b0] sm:$0xff]   ;;  %v14277_v23 = vld [vmem:[%s17789_s3 + $0x16b8] sm:$0xff]   ;;  %v14280_v26 = vld [vmem:[%s17789_s3 + $0x1700] sm:$0xff]  }
 0x38c   :  { %13408 = vmatpush3.bf16.msra.mxu0 %v14257_v51  ;;  %13387 = vmatprep.subr.bf16.mxu1 %v14258_v52  ;;  %v14281_v27 = vld [vmem:[%s17789_s3 + $0x1780] sm:$0xff]   ;;  %vm12086_vm14 = vmpackc.low %vm8316_vm11, %vm8316_vm11  ;;  %v14282_v28 = vld [vmem:[%s17789_s3 + $0x1748] sm:$0xff]   ;;  %vm9028_vm11 = vcmp.eq.f32.partialorder %v14734_v57, 48.0 }
 0x38d   :  { %13409 = vmatprep.subr.bf16.mxu0 %v14259_v53  ;;  %vm12140_vm0 = vmpackc.low %vm8494_vm12, %vm8494_vm12  ;;  %v14283_v29 = vld [vmem:[%s17789_s3 + $0x17c8] sm:$0xff]   ;;  %v14286_v31 = vld [vmem:[%s17789_s3 + $0x1750] sm:$0xff]   ;;  %vm9206_vm12 = vcmp.eq.f32.partialorder %v14734_v57, 49.0 }
 0x38e   :  { %vm12192_vm1 = vmpackc.low %vm8673_vm13, %vm8673_vm13  ;;  %v14284_v36 = vld [vmem:[%s17789_s3 + $0x1708] sm:$0xff]   ;;  %v14287_v32 = vld [vmem:[%s17789_s3 + $0x17d0] sm:$0xff]   ;;  %vm9385_vm13 = vcmp.eq.f32.partialorder %v14736_v59, 50.0 }
 0x38f   :  { %13388 = vmatpush3.bf16.msra.mxu1 %v14260_v55  ;;  %vm12246_vm2 = vmpackc.low %vm8851_vm15, %vm8851_vm15  ;;  %v14285_v30 = vld [vmem:[%s17789_s3 + $0x1788] sm:$0xff]   ;;  %v14288_v33 = vld [vmem:[%s17789_s3 + $0x1710] sm:$0xff]  }
 0x390   :  { %13410 = vmatpush3.bf16.msra.mxu0 %v14261_v56  ;;  %13389 = vmatprep.subr.bf16.mxu1 %v14262_v58  ;;  %v14289_v34 = vld [vmem:[%s17789_s3 + $0x1790] sm:$0xff]   ;;  %v14290_v35 = vld [vmem:[%s17789_s3 + $0x1758] sm:$0xff]   ;;  %v14294_v40 = vld [vmem:[%s17789_s3 + $0x1760] sm:$0xff]  }
 0x391   :  { %13411 = vmatprep.subr.bf16.mxu0 %v14263_v60  ;;  %v14291_v37 = vld [vmem:[%s17789_s3 + $0x17d8] sm:$0xff]   ;;  %v14295_v41 = vld [vmem:[%s17789_s3 + $0x17e0] sm:$0xff]   ;;  %v14298_v44 = vld [vmem:[%s17789_s3 + $0x1768] sm:$0xff]  }
 0x392   :  { %v14292_v38 = vld [vmem:[%s17789_s3 + $0x1718] sm:$0xff]   ;;  %v14296_v42 = vld [vmem:[%s17789_s3 + $0x1720] sm:$0xff]   ;;  %v14299_v54 = vld [vmem:[%s17789_s3 + $0x17e8] sm:$0xff]  }
 0x393   :  { %13390 = vmatpush3.bf16.msra.mxu1 %v14264_v7  ;;  %v14297_v43 = vld [vmem:[%s17789_s3 + $0x17a0] sm:$0xff]   ;;  %v14300_v45 = vld [vmem:[%s17789_s3 + $0x1728] sm:$0xff]   ;;  %v14302_v47 = vld [vmem:[%s17789_s3 + $0x1770] sm:$0xff]  }
 0x394   :  { %13412 = vmatpush3.bf16.msra.mxu0 %v14265_v61  ;;  %13391 = vmatprep.subr.bf16.mxu1 %v14266_v63  ;;  %v13089_v4 = vpop.f32.mrb[60].mxu1  ;;  %v14301_v46 = vld [vmem:[%s17789_s3 + $0x17a8] sm:$0xff]   ;;  %v14303_v49 = vld [vmem:[%s17789_s3 + $0x17f0] sm:$0xff]   ;;  %v14306_v63 = vld [vmem:[%s17789_s3 + $0x1778] sm:$0xff]  }
 0x395   :  { %13413 = vmatprep.subr.bf16.mxu0 %v14267_v0  ;;  %v13111_v6 = vpop.f32.mrb[64].mxu0  ;;  %v13090_v8 = vpop.f32.mrb[61].mxu1  ;;  %v14304_v56 = vld [vmem:[%s17789_s3 + $0x1730] sm:$0xff]   ;;  %vm12194_vm6 = vmpackc.low %vm8672_vm3, %vm8672_vm3  ;;  %vm9571_vm3 = vcmask 261120  }
 0x396   :  { %v13091_v9 = vadd.f32 %v13090_v8, %v13089_v4  ;;  %v13112_v10 = vpop.f32.mrb[65].mxu0  ;;  %v13092_v11 = vpop.f32.mrb[62].mxu1  ;;  %v14305_v61 = vld [vmem:[%s17789_s3 + $0x17b0] sm:$0xff]   ;;  %v14308_v4 = vld [vmem:[%s17789_s3 + $0x1738] sm:$0xff]   ;;  %v14311_v8 = vld [vmem:[%s17789_s3 + $0x18c0] sm:$0xff]  }
 0x397   :  { %13392 = vmatpush3.bf16.msra.mxu1 %v14268_v1  ;;  %v13113_v13 = vadd.f32 %v13112_v10, %v13111_v6  ;;  %v13114_v14 = vpop.f32.mrb[66].mxu0  ;;  %v13093_v15 = vpop.f32.mrb[63].mxu1  ;;  %v14310_v6 = vld [vmem:[%s17789_s3 + $0x1840] sm:$0xff]   ;;  %v14314_v11 = vld [vmem:[%s17789_s3 + $0x1848] sm:$0xff]   ;;  %vm12248_vm8 = vmpackc.low %vm8850_vm4, %vm8850_vm4 }
 0x398   :  { %13414 = vmatpush3.bf16.msra.mxu0 %v14269_v2  ;;  %13393 = vmatprep.subr.bf16.mxu1 %v14270_v3  ;;  %v6001_v18 = vadd.f32 %v13091_v9, %v17391_v39  ;;  %v13115_v19 = vpop.f32.mrb[67].mxu0  ;;  %v14293_v39 = vld [vmem:[%s17789_s3 + $0x1798] sm:$0xff]   ;;  %v14312_v9 = vld [vmem:[%s17789_s3 + $0x1800] sm:$0xff]   ;;  %vm12300_vm9 = vmpackc.low %vm9029_vm5, %vm9029_vm5 }
 0x399   :  { %13415 = vmatprep.subr.bf16.mxu0 %v14271_v5  ;;  %v14307_v2 = vld [vmem:[%s17789_s3 + $0x17f8] sm:$0xff]   ;;  %v14313_v10 = vld [vmem:[%s17789_s3 + $0x1880] sm:$0xff]   ;;  %vm12354_vm10 = vmpackc.low %vm9207_vm7, %vm9207_vm7 }
 0x39a   :  { %v17495_v21 = vadd.f32 %v13113_v13, %v6001_v18  ;;  %v14309_v5 = vld [vmem:[%s17789_s3 + $0x17b8] sm:$0xff]   ;;  %v14316_v13 = vld [vmem:[%s17789_s3 + $0x1808] sm:$0xff]   ;;  %v14318_v15 = vld [vmem:[%s17789_s3 + $0x1850] sm:$0xff]  }
 0x39b   :  { %13394 = vmatpush3.bf16.msra.mxu1 %v14272_v12  ;;  %v14315_v12 = vld [vmem:[%s17789_s3 + $0x18c8] sm:$0xff]   ;;  %v14321_v18 = vld [vmem:[%s17789_s3 + $0x1890] sm:$0xff]   ;;  %v14322_v19 = vld [vmem:[%s17789_s3 + $0x1858] sm:$0xff]  }
 0x39c   :  { %13416 = vmatpush3.bf16.msra.mxu0 %v14273_v16  ;;  %13395 = vmatprep.subr.bf16.mxu1 %v14274_v17  ;;  %v14317_v14 = vld [vmem:[%s17789_s3 + $0x1888] sm:$0xff]   ;;  %v14319_v16 = vld [vmem:[%s17789_s3 + $0x18d0] sm:$0xff]   ;;  %vm12356_vm15 = vmpackc.low %vm9206_vm12, %vm9206_vm12 }
 0x39d   :  { %13417 = vmatprep.subr.bf16.mxu0 %v14275_v20  ;;  %v14320_v17 = vld [vmem:[%s17789_s3 + $0x1810] sm:$0xff]   ;;  %v14323_v20 = vld [vmem:[%s17789_s3 + $0x18d8] sm:$0xff]  }
 0x39e   :  { %v14346_v59 = vld [vmem:[%s17789_s3 + $0x1950] sm:$0xff]  }
 0x39f   :  { %13396 = vmatpush3.bf16.msra.mxu1 %v14276_v22  ;;  %v14325_v22 = vld [vmem:[%s17789_s3 + $0x1898] sm:$0xff]  }
 0x3a0   :  { %13418 = vmatpush3.bf16.msra.mxu0 %v14277_v23  ;;  %13425 = vmatprep.subr.bf16.mxu1 %v14278_v24  ;;  %v14326_v23 = vld [vmem:[%s17789_s3 + $0x1860] sm:$0xff]  }
 0x3a1   :  { %13447 = vmatprep.subr.bf16.mxu0 %v14279_v25  ;;  %v14327_v24 = vld [vmem:[%s17789_s3 + $0x18e0] sm:$0xff]  }
 0x3a2   :  { %12087 = vmatmul.mubr.msk.bf16.vlgmr.msra.gmra.mrb[88].mxu1 %vm12086_vm14, %v14386_v62  ;;  %v14328_v25 = vld [vmem:[%s17789_s3 + $0x1820] sm:$0xff]   ;;  %vm12302_vm14 = vmpackc.low %vm9028_vm11, %vm9028_vm11 }
 0x3a3   :  { %12141 = vmatmul.mubr.msk.bf16.vlgmr.msra.gmra.mrb[92].mxu0 %vm12140_vm0, %v14386_v62  ;;  %13426 = vmatpush3.bf16.msra.mxu1 %v14280_v26  ;;  %v14329_v26 = vld [vmem:[%s17789_s3 + $0x18a0] sm:$0xff]   ;;  %vm12408_vm0 = vmpackc.low %vm9385_vm13, %vm9385_vm13 }
 0x3a4   :  { %12193 = vmatprep.mubr.msk.bf16.mxu1 %vm12192_vm1, %v14386_v62  ;;  %13448 = vmatpush3.bf16.msra.mxu0 %v14281_v27  ;;  %v14330_v27 = vld [vmem:[%s17789_s3 + $0x1868] sm:$0xff]   ;;  %vm9384_vm1 = vcmp.eq.f32.partialorder %v14734_v57, 50.0 }
 0x3a5   :  { %12247 = vmatprep.mubr.msk.bf16.mxu0 %vm12246_vm2, %v14386_v62  ;;  %13427 = vmatprep.subr.bf16.mxu1 %v14282_v28  ;;  %v14331_v28 = vld [vmem:[%s17789_s3 + $0x18e8] sm:$0xff]   ;;  %vm12410_vm2 = vmpackc.low %vm9384_vm1, %vm9384_vm1 }
 0x3a6   :  { %13449 = vmatprep.subr.bf16.mxu0 %v14283_v29  ;;  %v14332_v29 = vld [vmem:[%s17789_s3 + $0x1828] sm:$0xff]  }
 0x3a7   :  { %13428 = vmatpush3.bf16.msra.mxu1 %v14284_v36  ;;  %v14333_v36 = vld [vmem:[%s17789_s3 + $0x18a8] sm:$0xff]  }
 0x3a8   :  { %13450 = vmatpush3.bf16.msra.mxu0 %v14285_v30  ;;  %13429 = vmatprep.subr.bf16.mxu1 %v14286_v31  ;;  %v14334_v30 = vld [vmem:[%s17789_s3 + $0x1870] sm:$0xff]  }
 0x3a9   :  { %13451 = vmatprep.subr.bf16.mxu0 %v14287_v32  ;;  %v14335_v32 = vld [vmem:[%s17789_s3 + $0x18f0] sm:$0xff]  }
 0x3ab   :  { %13430 = vmatpush3.bf16.msra.mxu1 %v14288_v33 }
 0x3ac   :  { %13452 = vmatpush3.bf16.msra.mxu0 %v14289_v34  ;;  %13431 = vmatprep.subr.bf16.mxu1 %v14290_v35 }
 0x3ad   :  { %13453 = vmatprep.subr.bf16.mxu0 %v14291_v37 }
 0x3af   :  { %13432 = vmatpush3.bf16.msra.mxu1 %v14292_v38 }
 0x3b0   :  { %13454 = vmatpush3.bf16.msra.mxu0 %v14293_v39  ;;  %13433 = vmatprep.subr.bf16.mxu1 %v14294_v40  ;;  %v14336_v39 = vld [vmem:[%s17789_s3 + $0x1830] sm:$0xff]  }
 0x3b1   :  { %13455 = vmatprep.subr.bf16.mxu0 %v14295_v41 }
 0x3b3   :  { %13434 = vmatpush3.bf16.msra.mxu1 %v14296_v42 }
 0x3b4   :  { %13456 = vmatpush3.bf16.msra.mxu0 %v14297_v43  ;;  %13435 = vmatprep.subr.bf16.mxu1 %v14298_v44  ;;  %v13133_v48 = vpop.f32.mrb[64].mxu1  ;;  %v14337_v43 = vld [vmem:[%s17789_s3 + $0x18b0] sm:$0xff]   ;;  %v14338_v44 = vld [vmem:[%s17789_s3 + $0x1878] sm:$0xff]  }
 0x3b5   :  { %13457 = vmatprep.subr.bf16.mxu0 %v14299_v54  ;;  %v13155_v50 = vpop.f32.mrb[68].mxu0  ;;  %v13134_v51 = vpop.f32.mrb[65].mxu1 }
 0x3b6   :  { %v13135_v52 = vadd.f32 %v13134_v51, %v13133_v48  ;;  %v13156_v53 = vpop.f32.mrb[69].mxu0  ;;  %v13136_v55 = vpop.f32.mrb[66].mxu1  ;;  %v14340_v48 = vld [vmem:[%s17789_s3 + $0x1838] sm:$0xff]   ;;  %v14343_v51 = vld [vmem:[%s17789_s3 + $0x1900] sm:$0xff]  }
 0x3b7   :  { %13436 = vmatpush3.bf16.msra.mxu1 %v14300_v45  ;;  %v13157_v58 = vadd.f32 %v13156_v53, %v13155_v50  ;;  %v13158_v60 = vpop.f32.mrb[70].mxu0  ;;  %v13137_v7 = vpop.f32.mrb[67].mxu1  ;;  %v14342_v50 = vld [vmem:[%s17789_s3 + $0x1940] sm:$0xff]   ;;  %v14345_v53 = vld [vmem:[%s17789_s3 + $0x1908] sm:$0xff]   ;;  %v14347_v55 = vld [vmem:[%s17789_s3 + $0x1910] sm:$0xff]  }
 0x3b8   :  { %13458 = vmatpush3.bf16.msra.mxu0 %v14301_v46  ;;  %13437 = vmatprep.subr.bf16.mxu1 %v14302_v47  ;;  %v6357_v0 = vadd.f32 %v13135_v52, %v17495_v21  ;;  %v13159_v1 = vpop.f32.mrb[71].mxu0  ;;  %v14324_v21 = vld [vmem:[%s17789_s3 + $0x1818] sm:$0xff]   ;;  %v14344_v52 = vld [vmem:[%s17789_s3 + $0x1948] sm:$0xff]   ;;  %v14350_v60 = vld [vmem:[%s17789_s3 + $0x1960] sm:$0xff]  }
 0x3b9   :  { %13459 = vmatprep.subr.bf16.mxu0 %v14303_v49  ;;  %v14339_v46 = vld [vmem:[%s17789_s3 + $0x18f8] sm:$0xff]   ;;  %v14351_v7 = vld [vmem:[%s17789_s3 + $0x1920] sm:$0xff]  }
 0x3ba   :  { %v17602_v3 = vadd.f32 %v13157_v58, %v6357_v0  ;;  %v14341_v49 = vld [vmem:[%s17789_s3 + $0x18b8] sm:$0xff]   ;;  %v14354_v0 = vld [vmem:[%s17789_s3 + $0x1970] sm:$0xff]  }
 0x3bb   :  { %13438 = vmatpush3.bf16.msra.mxu1 %v14304_v56  ;;  %v14348_v56 = vld [vmem:[%s17789_s3 + $0x1958] sm:$0xff]  }
 0x3bc   :  { %13460 = vmatpush3.bf16.msra.mxu0 %v14305_v61  ;;  %13439 = vmatprep.subr.bf16.mxu1 %v14306_v63  ;;  %v14349_v58 = vld [vmem:[%s17789_s3 + $0x1918] sm:$0xff]   ;;  %v14352_v61 = vld [vmem:[%s17789_s3 + $0x1968] sm:$0xff]  }
 0x3bd   :  { %13461 = vmatprep.subr.bf16.mxu0 %v14307_v2  ;;  %v14353_v63 = vld [vmem:[%s17789_s3 + $0x1928] sm:$0xff]  }
 0x3bf   :  { %13440 = vmatpush3.bf16.msra.mxu1 %v14308_v4 }
 0x3c0   :  { %13462 = vmatpush3.bf16.msra.mxu0 %v14309_v5  ;;  %13469 = vmatprep.subr.bf16.mxu1 %v14310_v6 }
 0x3c1   :  { %13491 = vmatprep.subr.bf16.mxu0 %v14311_v8  ;;  %v14355_v8 = vld [vmem:[%s17789_s3 + $0x1930] sm:$0xff]  }
 0x3c2   :  { %12195 = vmatmul.mubr.msk.bf16.vlgmr.msra.gmra.mrb[92].mxu1 %vm12194_vm6, %v14386_v62 }
 0x3c3   :  { %12249 = vmatmul.mubr.msk.bf16.vlgmr.msra.gmra.mrb[96].mxu0 %vm12248_vm8, %v14386_v62  ;;  %13470 = vmatpush3.bf16.msra.mxu1 %v14312_v9 }
 0x3c4   :  { %12301 = vmatprep.mubr.msk.bf16.mxu1 %vm12300_vm9, %v14386_v62  ;;  %13492 = vmatpush3.bf16.msra.mxu0 %v14313_v10 }
 0x3c5   :  { %12355 = vmatprep.mubr.msk.bf16.mxu0 %vm12354_vm10, %v14386_v62  ;;  %13471 = vmatprep.subr.bf16.mxu1 %v14314_v11 }
 0x3c6   :  { %13493 = vmatprep.subr.bf16.mxu0 %v14315_v12  ;;  %v14356_v12 = vld [vmem:[%s17789_s3 + $0x1978] sm:$0xff]  }
 0x3c7   :  { %13472 = vmatpush3.bf16.msra.mxu1 %v14316_v13 }
 0x3c8   :  { %13494 = vmatpush3.bf16.msra.mxu0 %v14317_v14  ;;  %13473 = vmatprep.subr.bf16.mxu1 %v14318_v15 }
 0x3c9   :  { %13495 = vmatprep.subr.bf16.mxu0 %v14319_v16  ;;  %v14357_v16 = vld [vmem:[%s17789_s3 + $0x1938] sm:$0xff]  }
 0x3cb   :  { %13474 = vmatpush3.bf16.msra.mxu1 %v14320_v17 }
 0x3cc   :  { %13496 = vmatpush3.bf16.msra.mxu0 %v14321_v18  ;;  %13475 = vmatprep.subr.bf16.mxu1 %v14322_v19 }
 0x3cd   :  { %13497 = vmatprep.subr.bf16.mxu0 %v14323_v20 }
 0x3cf   :  { %13476 = vmatpush3.bf16.msra.mxu1 %v14324_v21 }
 0x3d0   :  { %13498 = vmatpush3.bf16.msra.mxu0 %v14325_v22  ;;  %13477 = vmatprep.subr.bf16.mxu1 %v14326_v23 }
 0x3d1   :  { %13499 = vmatprep.subr.bf16.mxu0 %v14327_v24 }
 0x3d3   :  { %13478 = vmatpush3.bf16.msra.mxu1 %v14328_v25 }
 0x3d4   :  { %13500 = vmatpush3.bf16.msra.mxu0 %v14329_v26  ;;  %13479 = vmatprep.subr.bf16.mxu1 %v14330_v27  ;;  %v13177_v31 = vpop.f32.mrb[68].mxu1 }
 0x3d5   :  { %13501 = vmatprep.subr.bf16.mxu0 %v14331_v28  ;;  %v13199_v33 = vpop.f32.mrb[72].mxu0  ;;  %v13178_v34 = vpop.f32.mrb[69].mxu1 }
 0x3d6   :  { %v13179_v35 = vadd.f32 %v13178_v34, %v13177_v31  ;;  %v13200_v37 = vpop.f32.mrb[73].mxu0  ;;  %v13180_v38 = vpop.f32.mrb[70].mxu1 }
 0x3d7   :  { %13480 = vmatpush3.bf16.msra.mxu1 %v14332_v29  ;;  %v13201_v40 = vadd.f32 %v13200_v37, %v13199_v33  ;;  %v13202_v41 = vpop.f32.mrb[74].mxu0  ;;  %v13181_v42 = vpop.f32.mrb[71].mxu1 }
 0x3d8   :  { %13502 = vmatpush3.bf16.msra.mxu0 %v14333_v36  ;;  %13481 = vmatprep.subr.bf16.mxu1 %v14334_v30  ;;  %v6713_v54 = vadd.f32 %v13179_v35, %v17602_v3  ;;  %v13203_v45 = vpop.f32.mrb[75].mxu0 }
 0x3d9   :  { %13503 = vmatprep.subr.bf16.mxu0 %v14335_v32 }
 0x3da   :  { %v6891_v47 = vadd.f32 %v13201_v40, %v6713_v54 }
 0x3db   :  { %13482 = vmatpush3.bf16.msra.mxu1 %v14336_v39 }
 0x3dc   :  { %13504 = vmatpush3.bf16.msra.mxu0 %v14337_v43  ;;  %13483 = vmatprep.subr.bf16.mxu1 %v14338_v44 }
 0x3dd   :  { %13505 = vmatprep.subr.bf16.mxu0 %v14339_v46 }
 0x3df   :  { %13484 = vmatpush3.bf16.msra.mxu1 %v14340_v48 }
 0x3e0   :  { %13506 = vmatpush3.bf16.msra.mxu0 %v14341_v49  ;;  %13513 = vmatprep.subr.bf16.mxu1 %v14342_v50 }
 0x3e2   :  { %12303 = vmatmul.mubr.msk.bf16.vlgmr.msra.gmra.mrb[96].mxu1 %vm12302_vm14, %v14386_v62 }
 0x3e3   :  { %12357 = vmatmul.mubr.msk.bf16.vlgmr.msra.gmra.mrb[100].mxu0 %vm12356_vm15, %v14386_v62  ;;  %13514 = vmatpush3.bf16.msra.mxu1 %v14343_v51 }
 0x3e4   :  { %12409 = vmatprep.mubr.msk.bf16.mxu1 %vm12408_vm0, %v14386_v62  ;;  %13515 = vmatprep.subr.bf16.mxu1 %v14344_v52 }
 0x3e7   :  { %13516 = vmatpush3.bf16.msra.mxu1 %v14345_v53 }
 0x3e8   :  { %13517 = vmatprep.subr.bf16.mxu1 %v14346_v59 }
 0x3eb   :  { %13518 = vmatpush3.bf16.msra.mxu1 %v14347_v55 }
 0x3ec   :  { %13519 = vmatprep.subr.bf16.mxu1 %v14348_v56 }
 0x3ef   :  { %13520 = vmatpush3.bf16.msra.mxu1 %v14349_v58 }
 0x3f0   :  { %13521 = vmatprep.subr.bf16.mxu1 %v14350_v60 }
 0x3f3   :  { %13522 = vmatpush3.bf16.msra.mxu1 %v14351_v7 }
 0x3f4   :  { %13523 = vmatprep.subr.bf16.mxu1 %v14352_v61  ;;  %v13221_v1 = vpop.f32.mrb[72].mxu1 }
 0x3f5   :  { %v13243_v2 = vpop.f32.mrb[76].mxu0  ;;  %v13222_v3 = vpop.f32.mrb[73].mxu1 }
 0x3f6   :  { %v13223_v4 = vadd.f32 %v13222_v3, %v13221_v1  ;;  %v13244_v5 = vpop.f32.mrb[77].mxu0  ;;  %v13224_v6 = vpop.f32.mrb[74].mxu1 }
 0x3f7   :  { %13524 = vmatpush3.bf16.msra.mxu1 %v14353_v63  ;;  %v13245_v9 = vadd.f32 %v13244_v5, %v13243_v2  ;;  %v13246_v10 = vpop.f32.mrb[78].mxu0  ;;  %v13225_v11 = vpop.f32.mrb[75].mxu1 }
 0x3f8   :  { %13525 = vmatprep.subr.bf16.mxu1 %v14354_v0  ;;  %v7069_v13 = vadd.f32 %v13223_v4, %v6891_v47  ;;  %v13247_v14 = vpop.f32.mrb[79].mxu0 }
 0x3fa   :  { %v7247_v15 = vadd.f32 %v13245_v9, %v7069_v13 }
 0x3fb   :  { %13526 = vmatpush3.bf16.msra.mxu1 %v14355_v8 }
 0x3fc   :  { %13527 = vmatprep.subr.bf16.mxu1 %v14356_v12 }
 0x3ff   :  { %13528 = vmatpush3.bf16.msra.mxu1 %v14357_v16 }
 0x402   :  { %12411 = vmatmul.mubr.msk.bf16.vlgmr.msra.gmra.mrb[100].mxu1 %vm12410_vm2, %v14386_v62 }
 0x414   :  { %v13265_v17 = vpop.f32.mrb[76].mxu1 }
 0x415   :  { %v13287_v18 = vpop.f32.mrb[80].mxu0  ;;  %v13266_v19 = vpop.f32.mrb[77].mxu1 }
 0x416   :  { %v13267_v20 = vadd.f32 %v13266_v19, %v13265_v17  ;;  %v13288_v21 = vpop.f32.mrb[81].mxu0  ;;  %v13268_v22 = vpop.f32.mrb[78].mxu1 }
 0x417   :  { %v13289_v23 = vadd.f32 %v13288_v21, %v13287_v18  ;;  %v13290_v24 = vpop.f32.mrb[82].mxu0  ;;  %v13269_v25 = vpop.f32.mrb[79].mxu1 }
 0x418   :  { %v7425_v26 = vadd.f32 %v13267_v20, %v7247_v15  ;;  %v13291_v27 = vpop.f32.mrb[83].mxu0 }
 0x41a   :  { %v7603_v28 = vadd.f32 %v13289_v23, %v7425_v26 }
 0x434   :  { %v13309_v29 = vpop.f32.mrb[80].mxu1 }
 0x435   :  { %v13331_v36 = vpop.f32.mrb[84].mxu0  ;;  %v13310_v30 = vpop.f32.mrb[81].mxu1 }
 0x436   :  { %v13311_v57 = vadd.f32 %v13310_v30, %v13309_v29  ;;  %v13332_v31 = vpop.f32.mrb[85].mxu0  ;;  %v13312_v32 = vpop.f32.mrb[82].mxu1 }
 0x437   :  { %v13333_v33 = vadd.f32 %v13332_v31, %v13331_v36  ;;  %v13334_v62 = vpop.f32.mrb[86].mxu0  ;;  %v13313_v34 = vpop.f32.mrb[83].mxu1  ;;  %v12412_v36 = vld [vmem:[%s17790_s4] ss:$0 sm:$0xff] }
 0x438   :  { %v7781_v35 = vadd.f32 %v13311_v57, %v7603_v28  ;;  %v13335_v37 = vpop.f32.mrb[87].mxu0 }
 0x43a   :  { %v7959_v38 = vadd.f32 %v13333_v33, %v7781_v35 }
 0x455   :  { %v13353_v39 = vpop.f32.mrb[84].mxu1 }
 0x456   :  { %v13375_v40 = vpop.f32.mrb[88].mxu0  ;;  %v13354_v41 = vpop.f32.mrb[85].mxu1 }
 0x457   :  { %v13355_v42 = vadd.f32 %v13354_v41, %v13353_v39  ;;  %v13376_v43 = vpop.f32.mrb[89].mxu0  ;;  %v13356_v44 = vpop.f32.mrb[86].mxu1 }
 0x458   :  { %v13377_v54 = vadd.f32 %v13376_v43, %v13375_v40  ;;  %v13378_v45 = vpop.f32.mrb[90].mxu0  ;;  %v13357_v46 = vpop.f32.mrb[87].mxu1 }
 0x459   :  { %v8137_v47 = vadd.f32 %v13355_v42, %v7959_v38  ;;  %v13379_v48 = vpop.f32.mrb[91].mxu0 }
 0x45b   :  { %v8315_v49 = vadd.f32 %v13377_v54, %v8137_v47 }
 0x475   :  { %v13397_v50 = vpop.f32.mrb[88].mxu1 }
 0x476   :  { %v13419_v51 = vpop.f32.mrb[92].mxu0  ;;  %v13398_v52 = vpop.f32.mrb[89].mxu1 }
 0x477   :  { %v13399_v53 = vadd.f32 %v13398_v52, %v13397_v50  ;;  %v13420_v59 = vpop.f32.mrb[93].mxu0  ;;  %v13400_v55 = vpop.f32.mrb[90].mxu1 }
 0x478   :  { %v13421_v56 = vadd.f32 %v13420_v59, %v13419_v51  ;;  %v13422_v58 = vpop.f32.mrb[94].mxu0  ;;  %v13401_v60 = vpop.f32.mrb[91].mxu1 }
 0x479   :  { %v8493_v7 = vadd.f32 %v13399_v53, %v8315_v49  ;;  %v13423_v61 = vpop.f32.mrb[95].mxu0 }
 0x47b   :  { %v8671_v63 = vadd.f32 %v13421_v56, %v8493_v7 }
 0x495   :  { %v13441_v0 = vpop.f32.mrb[92].mxu1 }
 0x496   :  { %v13463_v1 = vpop.f32.mrb[96].mxu0  ;;  %v13442_v2 = vpop.f32.mrb[93].mxu1 }
 0x497   :  { %v13443_v3 = vadd.f32 %v13442_v2, %v13441_v0  ;;  %v13464_v4 = vpop.f32.mrb[97].mxu0  ;;  %v13444_v5 = vpop.f32.mrb[94].mxu1 }
 0x498   :  { %v13465_v6 = vadd.f32 %v13464_v4, %v13463_v1  ;;  %v13466_v8 = vpop.f32.mrb[98].mxu0  ;;  %v13445_v9 = vpop.f32.mrb[95].mxu1 }
 0x499   :  { %v8849_v10 = vadd.f32 %v13443_v3, %v8671_v63  ;;  %v13467_v11 = vpop.f32.mrb[99].mxu0 }
 0x49b   :  { %v9027_v12 = vadd.f32 %v13465_v6, %v8849_v10 }
 0x4b5   :  { %v13485_v13 = vpop.f32.mrb[96].mxu1 }
 0x4b6   :  { %v13507_v14 = vpop.f32.mrb[100].mxu0  ;;  %v13486_v15 = vpop.f32.mrb[97].mxu1 }
 0x4b7   :  { %v13487_v16 = vadd.f32 %v13486_v15, %v13485_v13  ;;  %v13508_v17 = vpop.f32.mrb[101].mxu0  ;;  %v13488_v18 = vpop.f32.mrb[98].mxu1 }
 0x4b8   :  { %v13509_v19 = vadd.f32 %v13508_v17, %v13507_v14  ;;  %v13510_v20 = vpop.f32.mrb[102].mxu0  ;;  %v13489_v21 = vpop.f32.mrb[99].mxu1 }
 0x4b9   :  { %v9205_v22 = vadd.f32 %v13487_v16, %v9027_v12  ;;  %v13511_v23 = vpop.f32.mrb[103].mxu0 }
 0x4bb   :  { %v9383_v24 = vadd.f32 %v13509_v19, %v9205_v22 }
 0x4d5   :  { %v13529_v25 = vpop.f32.mrb[100].mxu1 }
 0x4d6   :  { %v13530_v26 = vpop.f32.mrb[101].mxu1 }
 0x4d7   :  { %v13531_v27 = vadd.f32 %v13530_v26, %v13529_v25  ;;  %v13532_v28 = vpop.f32.mrb[102].mxu1 }
 0x4d8   :  { %v13533_v29 = vpop.f32.mrb[103].mxu1 }
 0x4d9   :  { %v9561_v30 = vadd.f32 %v13531_v27, %v9383_v24 }
 0x4db   :  { %v9569_v57 = vadd.f32 %v12412_v36, %v9561_v30 }
 0x4dd   :  { %v9570_v31 = vmax.f32 %v9569_v57, 0.0 }
 0x4df   :  { %9572 = vst.msk [vmem:[#allocation2] sm:$0xff] %vm9571_vm3, %v9570_v31 }
 0x4e0   :  { %14371 = shalt.err (!%p14368_p4)
}
 0x4e1   :  { %s14372_s20 = scalar_lea.hbm %s17791_s5, 128 }
 0x4e2   :  { %p14373_p5 = scmp.ne.s32.totalorder %s17791_s5, %s14372_s20  ;;  %p14376_p6 = scmp.lt.u32.totalorder %s14372_s20, %s17791_s5 }
 0x4e4   :  { %p14378_p7 = pnand %p14376_p6, %p14373_p5 }
 0x4e6   :  { %14381 = shalt.err (!%p14378_p7)
}
 0x4e7   :  { %9582 = dma.vmem_to_hbm [thread:$0]  %s9580_s17, 128, %s17791_s5, [#allocation3]  }
 0x4e8   :  { %14382 = dma.done.wait [#allocation3], 128  }
 0x4e9   :  { %14383 = vsyncadd [#allocation3], 4294967168 }
 0x4ea   :  { %9586 = vsyncpa [#allocation3], 1 }

</bundles_post_ra>
